<compile_context>
chip_gen: v6e
topology: v6e:2x2x1
jax: 0.10.0
libtpu: 0.0.40
codegen_flags: <defaults>
</compile_context>

<pallas_src>
import functools

import jax
import jax.numpy as jnp
from jax.experimental import pallas as pl
from jax.experimental.pallas import tpu as pltpu

MAX_LENGTH = 160   # module constant (demo below uses a shorter sequence for speed)
SOS_TOKEN = 0
EMB_DIM = 64       # hard-coded in the PyTorch module: nn.Embedding(output_size, 64)
NEG_INF = -1e30


def _round_up(x, m):
  return (x + m - 1) // m * m


def _pick_block_steps(t, cap=32):
  """Largest divisor of t that is <= cap (decode steps unrolled per grid iteration)."""
  for d in range(min(cap, t), 0, -1):
    if t % d == 0:
      return d
  return 1


def _nbytes(shape):
  n = 4
  for d in shape:
    n *= int(d)
  return n


def _decoder_rnn_kernel(ts, h0_ref, xtab_ref, whhT_ref, bhh_ref, woutT_ref, bout_ref,
                        logits_ref, hidf_ref, h_scr, onehot_scr):
  g = pl.program_id(0)
  Bp, H = h_scr.shape
  Opad = onehot_scr.shape[1]
  Gpad = whhT_ref.shape[1] // 3          # 128-aligned per-gate lane block
  f32 = jnp.float32

  col = jax.lax.broadcasted_iota(jnp.int32, (Bp, Opad), 1)   # hoisted, reused each step

  @pl.when(g == 0)
  def _init():
    h_scr[...] = h0_ref[...]
    onehot_scr[...] = (col == SOS_TOKEN).astype(f32)         # decoder_input = SOS

  h = h_scr[...]                                             # (Bp, H) recurrent carry
  onehot = onehot_scr[...]                                   # (Bp, Opad) greedy feedback

  # ts decode steps per grid iteration, fully unrolled with static indices so every
  # store into the (ts, Bp, Opad) output block is a static-offset full-vreg store.
  for s in range(ts):
    # fused: relu(embedding(idx)) @ W_ih^T + b_ih (+ b_hh_r, b_hh_z) via one-hot lookup
    gi = jnp.dot(onehot, xtab_ref[...], preferred_element_type=f32)     # (Bp, 3*Gpad)
    # recurrent gates; bhh_ref is zero in the r/z blocks and holds b_hh_n in the n block
    gh = jnp.dot(h, whhT_ref[...], preferred_element_type=f32) + bhh_ref[...]

    # 128-aligned gate slices (zero-cost views)
    r = jax.nn.sigmoid(gi[:, 0:H] + gh[:, 0:H])
    z = jax.nn.sigmoid(gi[:, Gpad:Gpad + H] + gh[:, Gpad:Gpad + H])
    n = jnp.tanh(gi[:, 2 * Gpad:2 * Gpad + H] + r * gh[:, 2 * Gpad:2 * Gpad + H])
    h = (1.0 - z) * n + z * h                                           # (Bp, H)

    # output projection; raw logits streamed out, log_softmax applied outside the kernel
    logits = jnp.dot(h, woutT_ref[...], preferred_element_type=f32) + bout_ref[...]
    logits_ref[s] = logits

    # greedy feedback: next input = argmax of raw logits (first max on ties);
    # padded lanes carry a -1e30 bias so they never win.
    lmax = jnp.max(logits, axis=-1, keepdims=True)
    nxt = jnp.min(jnp.where(logits >= lmax, col, Opad), axis=-1, keepdims=True)
    onehot = (col == nxt).astype(f32)

  h_scr[...] = h
  onehot_scr[...] = onehot

  @pl.when(g == pl.num_programs(0) - 1)
  def _final():
    hidf_ref[...] = h                     # store the final hidden only once


def make_params(key, hidden_size, output_size):
  """Deterministic init matching the nn.Module's parameter shapes."""
  H, O, E = hidden_size, output_size, EMB_DIM
  ks = jax.random.split(key, 7)

  def u(k, shape, fan_in):
    b = 1.0 / float(fan_in ** 0.5)
    return jax.random.uniform(k, shape, jnp.float32, -b, b)

  return dict(
      emb=jax.random.normal(ks[0], (O, E), jnp.float32),          # nn.Embedding(O, 64)
      W_ih=u(ks[1], (3 * H, E), H), b_ih=u(ks[2], (3 * H,), H),   # gru.weight/bias_ih_l0
      W_hh=u(ks[3], (3 * H, H), H), b_hh=u(ks[4], (3 * H,), H),   # gru.weight/bias_hh_l0
      W_out=u(ks[5], (O, H), H), b_out=u(ks[6], (O,), H),         # out Linear
  )


@functools.partial(jax.jit, static_argnames=("max_length",))
def decoder_rnn_forward(params, encoder_outputs, encoder_hidden, max_length=MAX_LENGTH):
  """Returns (log_probs (T,B,O), decoder_hidden (1,B,H), None) like the PyTorch module."""
  B = encoder_outputs.shape[0]             # encoder_outputs only supplies the batch size
  H = params["W_hh"].shape[1]
  O, E = params["emb"].shape
  T = max_length
  ts = _pick_block_steps(T)
  Opad = _round_up(O, 128)                 # lane-dense output / one-hot width
  Gpad = _round_up(H, 128)                 # 128-aligned per-gate lane block
  Bp = _round_up(B, 8)                     # full-sublane batch

  hi = jnp.float32
  highest = jax.lax.Precision.HIGHEST

  # ---- padded initial hidden (zeros in padded batch rows) ----
  h0 = jnp.zeros((Bp, H), hi).at[:B].set(encoder_hidden[0].astype(hi))

  # ---- fused input-gate table: relu(emb) @ W_ih^T + b_ih (+ b_hh_r, b_hh_z) ----
  emb = params["emb"].astype(hi)
  W_ih = params["W_ih"].astype(hi)
  b_ih = params["b_ih"].astype(hi)
  W_hh = params["W_hh"].astype(hi)
  b_hh = params["b_hh"].astype(hi)

  gi_full = jnp.dot(jnp.maximum(emb, 0.0), W_ih.T, precision=highest) + b_ih[None, :]
  gi_full = gi_full.at[:, 0:H].add(b_hh[0:H])             # fold b_hh_r
  gi_full = gi_full.at[:, H:2 * H].add(b_hh[H:2 * H])     # fold b_hh_z

  # Scatter each gate into its own 128-lane block (lanes [g*Gpad : g*Gpad+H]).
  xtab = jnp.zeros((Opad, 3 * Gpad), hi)
  whhT = jnp.zeros((H, 3 * Gpad), hi)
  for gidx in range(3):
    xtab = xtab.at[:O, gidx * Gpad:gidx * Gpad + H].set(gi_full[:, gidx * H:(gidx + 1) * H])
    whhT = whhT.at[:, gidx * Gpad:gidx * Gpad + H].set(W_hh[gidx * H:(gidx + 1) * H, :].T)
  # Only b_hh_n must stay separate (it sits inside r * (...) in PyTorch's GRU).
  bhh = jnp.zeros((1, 3 * Gpad), hi).at[0, 2 * Gpad:2 * Gpad + H].set(b_hh[2 * H:3 * H])

  # ---- output projection, padded lanes get a -1e30 bias (never win argmax) ----
  woutT = jnp.zeros((H, Opad), hi).at[:, :O].set(params["W_out"].T.astype(hi))
  bout = jnp.full((1, Opad), NEG_INF, hi).at[:, :O].set(params["b_out"][None, :].astype(hi))

  inputs = (h0, xtab, whhT, bhh, woutT, bout)
  # Whole-array, un-pipelined VMEM residency for the constants (no double-buffering).
  in_specs = [pl.BlockSpec(memory_space=pltpu.MemorySpace.VMEM) for _ in inputs]

  grid_spec = pltpu.PrefetchScalarGridSpec(
      num_scalar_prefetch=0,
      grid=(T // ts,),
      in_specs=in_specs,
      out_specs=[
          pl.BlockSpec((ts, Bp, Opad), lambda g: (g, 0, 0)),   # ts-step raw-logit slab
          pl.BlockSpec((Bp, H), lambda g: (0, 0)),             # final hidden (resident)
      ],
      scratch_shapes=[
          pltpu.VMEM((Bp, H), jnp.float32),      # GRU hidden carry
          pltpu.VMEM((Bp, Opad), jnp.float32),   # one-hot of current decoder_input
      ],
  )

  # VMEM budget derived from the actual footprint (fits comfortably on v7x's 64 MiB).
  resident = sum(_nbytes(x.shape) for x in inputs)
  streamed = 2 * _nbytes((ts, Bp, Opad)) + 2 * _nbytes((Bp, H))
  scratch = _nbytes((Bp, H)) + _nbytes((Bp, Opad))
  vmem_limit = min(64 * 1024 * 1024, resident + streamed + scratch + 4 * 1024 * 1024)

  logits_pad, h_final = pl.pallas_call(
      functools.partial(_decoder_rnn_kernel, ts),
      grid_spec=grid_spec,
      out_shape=(
          jax.ShapeDtypeStruct((T, Bp, Opad), jnp.float32),
          jax.ShapeDtypeStruct((Bp, H), jnp.float32),
      ),
      compiler_params=pltpu.CompilerParams(
          dimension_semantics=("arbitrary",),          # sequential recurrence over T
          vmem_limit_bytes=vmem_limit),
  )(*inputs)

  # Drop lane/batch padding, then apply the post-loop log_softmax (exact, parallel).
  logits = logits_pad[:, :B, :O]
  logp = jax.nn.log_softmax(logits, axis=-1)
  decoder_hidden = h_final[None, :B, :]             # (1, B, H)
  return logp, decoder_hidden, None                 # matches (outputs, hidden, None)


def _reference_step0(params, encoder_hidden):
  """Pure-JAX step 0 (no greedy-feedback cascade) for a numerical sanity check."""
  H = params["W_hh"].shape[1]
  h = encoder_hidden[0].astype(jnp.float32)
  B = h.shape[0]
  dot = lambda a, b: jnp.dot(a, b, precision=jax.lax.Precision.HIGHEST)
  x = jnp.maximum(params["emb"][jnp.full((B,), SOS_TOKEN, jnp.int32)], 0.0)
  gi = dot(x, params["W_ih"].T) + params["b_ih"]
  gh = dot(h, params["W_hh"].T) + params["b_hh"]
  r = jax.nn.sigmoid(gi[:, :H] + gh[:, :H])
  z = jax.nn.sigmoid(gi[:, H:2 * H] + gh[:, H:2 * H])
  n = jnp.tanh(gi[:, 2 * H:] + r * gh[:, 2 * H:])
  h1 = (1.0 - z) * n + z * h
  logits = dot(h1, params["W_out"].T) + params["b_out"]
  return jax.nn.log_softmax(logits, axis=-1)


if __name__ == "__main__":
  key = jax.random.PRNGKey(0)
  hidden_size = 32
  output_size = 32
  B = 2
  T = 8   # small demo sequence; module default MAX_LENGTH is 160

  kp, ke, kh = jax.random.split(key, 3)
  params = make_params(kp, hidden_size, output_size)
  encoder_outputs = jax.random.normal(ke, (B, 4, 16, 16), jnp.float32)  # only batch dim used
  encoder_hidden = jax.random.normal(kh, (1, B, hidden_size), jnp.float32)

  logp, dec_hidden, attn = decoder_rnn_forward(
      params, encoder_outputs, encoder_hidden, max_length=T)
  logp, dec_hidden = jax.block_until_ready((logp, dec_hidden))

  assert logp.shape == (T, B, output_size)
  assert dec_hidden.shape == (1, B, hidden_size)
  assert attn is None
  assert bool(jnp.all(jnp.isfinite(logp)))
  assert bool(jnp.all(jnp.isfinite(dec_hidden)))
  # rows are log_softmax -> exp sums to 1
  assert bool(jnp.allclose(jnp.sum(jnp.exp(logp), axis=-1), 1.0, atol=1e-4))
  # step-0 matches a pure-JAX reference (no feedback dependence at t=0);
  # tolerance covers default (bf16-pass) MXU precision inside the kernel.
  ref0 = _reference_step0(params, encoder_hidden)
  assert bool(jnp.allclose(logp[0], ref0, atol=5e-2, rtol=0.0))

  print("KERNEL_OK")
</pallas_src>

<mosaic_0001>
module attributes {stable_mosaic.version = 11 : i64} {
  func.func @_decoder_rnn_kernel(%arg0: i32, %arg1: memref<8x32xf32, #tpu.memory_space<vmem>>, %arg2: memref<128x384xf32, #tpu.memory_space<vmem>>, %arg3: memref<32x384xf32, #tpu.memory_space<vmem>>, %arg4: memref<1x384xf32, #tpu.memory_space<vmem>>, %arg5: memref<32x128xf32, #tpu.memory_space<vmem>>, %arg6: memref<1x128xf32, #tpu.memory_space<vmem>>, %arg7: memref<8x8x128xf32, #tpu.memory_space<vmem>>, %arg8: memref<8x32xf32, #tpu.memory_space<vmem>>, %arg9: memref<8x32xf32, #tpu.memory_space<vmem>>, %arg10: memref<8x128xf32, #tpu.memory_space<vmem>>) attributes {dimension_semantics = [#tpu.dimension_semantics<arbitrary>], iteration_bounds = array<i64: 1>, scalar_prefetch = 0 : i64, scratch_operands = 2 : i64, tpu.core_type = #tpu.core_type<tc>, window_params = [{pipeline_mode = #tpu.pipeline_mode<synchronous>, transform_indices = @transform_0, window_bounds = array<i64: 8, 32>}, {pipeline_mode = #tpu.pipeline_mode<synchronous>, transform_indices = @transform_1, window_bounds = array<i64: 128, 384>}, {pipeline_mode = #tpu.pipeline_mode<synchronous>, transform_indices = @transform_2, window_bounds = array<i64: 32, 384>}, {pipeline_mode = #tpu.pipeline_mode<synchronous>, transform_indices = @transform_3, window_bounds = array<i64: 1, 384>}, {pipeline_mode = #tpu.pipeline_mode<synchronous>, transform_indices = @transform_4, window_bounds = array<i64: 32, 128>}, {pipeline_mode = #tpu.pipeline_mode<synchronous>, transform_indices = @transform_5, window_bounds = array<i64: 1, 128>}, {transform_indices = @transform_6, window_bounds = array<i64: 8, 8, 128>}, {pipeline_mode = #tpu.pipeline_mode<synchronous>, transform_indices = @transform_7, window_bounds = array<i64: 8, 32>}]} {
    %0 = tpu.iota {dimensions = array<i32: 1>} : vector<8x128xi32>
    %c0_i32 = arith.constant 0 : i32
    %1 = arith.cmpi eq, %arg0, %c0_i32 : i32
    %2 = arith.extui %1 : i1 to i32
    %c0_i32_0 = arith.constant 0 : i32
    %3 = arith.cmpi ne, %2, %c0_i32_0 : i32
    scf.if %3 {
      %c0_177 = arith.constant 0 : index
      %c0_178 = arith.constant 0 : index
      %435 = vector.load %arg1[%c0_177, %c0_178] : memref<8x32xf32, #tpu.memory_space<vmem>>, vector<8x32xf32>
      %c0_179 = arith.constant 0 : index
      %c0_180 = arith.constant 0 : index
      %436 = vector.load %arg9[%c0_179, %c0_180] : memref<8x32xf32, #tpu.memory_space<vmem>>, vector<8x32xf32>
      tpu.vector_store %arg9[%c0_179, %c0_180], %435 {strides = array<i32>} : memref<8x32xf32, #tpu.memory_space<vmem>>, vector<8x32xf32>,
      %c0_i32_181 = arith.constant 0 : i32
      %437 = vector.broadcast %c0_i32_181 : i32 to vector<8x128xi32>
      %438 = arith.cmpi eq, %0, %437 : vector<8x128xi32>
      %439 = arith.extui %438 : vector<8x128xi1> to vector<8x128xi32>
      %440 = arith.sitofp %439 : vector<8x128xi32> to vector<8x128xf32>
      %c0_182 = arith.constant 0 : index
      %c0_183 = arith.constant 0 : index
      %441 = vector.load %arg10[%c0_182, %c0_183] : memref<8x128xf32, #tpu.memory_space<vmem>>, vector<8x128xf32>
      tpu.vector_store %arg10[%c0_182, %c0_183], %440 {strides = array<i32>} : memref<8x128xf32, #tpu.memory_space<vmem>>, vector<8x128xf32>,
    } else {
    }
    %c0 = arith.constant 0 : index
    %c0_1 = arith.constant 0 : index
    %4 = vector.load %arg9[%c0, %c0_1] : memref<8x32xf32, #tpu.memory_space<vmem>>, vector<8x32xf32>
    %c0_2 = arith.constant 0 : index
    %c0_3 = arith.constant 0 : index
    %5 = vector.load %arg10[%c0_2, %c0_3] : memref<8x128xf32, #tpu.memory_space<vmem>>, vector<8x128xf32>
    %c0_4 = arith.constant 0 : index
    %c0_5 = arith.constant 0 : index
    %6 = vector.load %arg2[%c0_4, %c0_5] : memref<128x384xf32, #tpu.memory_space<vmem>>, vector<128x384xf32>
    %cst = arith.constant dense<0.000000e+00> : vector<8x384xf32>
    %7 = tpu.matmul %5, %6, %cst {dimension_numbers = #tpu.dot_dimension_numbers<[1], [0], [0], [1], [0, 0, 1, 1], [], []>} : vector<8x128xf32>, vector<128x384xf32>, vector<8x384xf32> -> vector<8x384xf32>
    %c0_6 = arith.constant 0 : index
    %c0_7 = arith.constant 0 : index
    %8 = vector.load %arg3[%c0_6, %c0_7] : memref<32x384xf32, #tpu.memory_space<vmem>>, vector<32x384xf32>
    %cst_8 = arith.constant dense<0.000000e+00> : vector<8x384xf32>
    %9 = tpu.matmul %4, %8, %cst_8 {dimension_numbers = #tpu.dot_dimension_numbers<[1], [0], [0], [1], [0, 0, 1, 1], [], []>} : vector<8x32xf32>, vector<32x384xf32>, vector<8x384xf32> -> vector<8x384xf32>
    %c0_9 = arith.constant 0 : index
    %c0_10 = arith.constant 0 : index
    %10 = vector.load %arg4[%c0_9, %c0_10] : memref<1x384xf32, #tpu.memory_space<vmem>>, vector<1x384xf32>
    %11 = vector.broadcast %10 : vector<1x384xf32> to vector<8x384xf32>
    %12 = arith.addf %9, %11 : vector<8x384xf32>
    %13 = vector.extract_strided_slice %7 {offsets = [0, 0], sizes = [8, 32], strides = [1, 1]} : vector<8x384xf32> to vector<8x32xf32>
    %14 = vector.extract_strided_slice %12 {offsets = [0, 0], sizes = [8, 32], strides = [1, 1]} : vector<8x384xf32> to vector<8x32xf32>
    %15 = arith.addf %13, %14 : vector<8x32xf32>
    %16 = arith.negf %15 : vector<8x32xf32>
    %17 = math.exp %16 : vector<8x32xf32>
    %cst_11 = arith.constant 1.000000e+00 : f32
    %18 = vector.broadcast %cst_11 : f32 to vector<8x32xf32>
    %19 = arith.addf %18, %17 : vector<8x32xf32>
    %20 = arith.divf %18, %19 : vector<8x32xf32>
    %21 = vector.extract_strided_slice %7 {offsets = [0, 128], sizes = [8, 32], strides = [1, 1]} : vector<8x384xf32> to vector<8x32xf32>
    %22 = vector.extract_strided_slice %12 {offsets = [0, 128], sizes = [8, 32], strides = [1, 1]} : vector<8x384xf32> to vector<8x32xf32>
    %23 = arith.addf %21, %22 : vector<8x32xf32>
    %24 = arith.negf %23 : vector<8x32xf32>
    %25 = math.exp %24 : vector<8x32xf32>
    %cst_12 = arith.constant 1.000000e+00 : f32
    %26 = vector.broadcast %cst_12 : f32 to vector<8x32xf32>
    %27 = arith.addf %26, %25 : vector<8x32xf32>
    %28 = arith.divf %26, %27 : vector<8x32xf32>
    %29 = vector.extract_strided_slice %7 {offsets = [0, 256], sizes = [8, 32], strides = [1, 1]} : vector<8x384xf32> to vector<8x32xf32>
    %30 = vector.extract_strided_slice %12 {offsets = [0, 256], sizes = [8, 32], strides = [1, 1]} : vector<8x384xf32> to vector<8x32xf32>
    %31 = arith.mulf %20, %30 : vector<8x32xf32>
    %32 = arith.addf %29, %31 : vector<8x32xf32>
    %33 = math.tanh %32 : vector<8x32xf32>
    %cst_13 = arith.constant 1.000000e+00 : f32
    %34 = vector.broadcast %cst_13 : f32 to vector<8x32xf32>
    %35 = arith.subf %34, %28 : vector<8x32xf32>
    %36 = arith.mulf %35, %33 : vector<8x32xf32>
    %37 = arith.mulf %28, %4 : vector<8x32xf32>
    %38 = arith.addf %36, %37 : vector<8x32xf32>
    %c0_14 = arith.constant 0 : index
    %c0_15 = arith.constant 0 : index
    %39 = vector.load %arg5[%c0_14, %c0_15] : memref<32x128xf32, #tpu.memory_space<vmem>>, vector<32x128xf32>
    %cst_16 = arith.constant dense<0.000000e+00> : vector<8x128xf32>
    %40 = tpu.matmul %38, %39, %cst_16 {dimension_numbers = #tpu.dot_dimension_numbers<[1], [0], [0], [1], [0, 0, 1, 1], [], []>} : vector<8x32xf32>, vector<32x128xf32>, vector<8x128xf32> -> vector<8x128xf32>
    %c0_17 = arith.constant 0 : index
    %c0_18 = arith.constant 0 : index
    %41 = vector.load %arg6[%c0_17, %c0_18] : memref<1x128xf32, #tpu.memory_space<vmem>>, vector<1x128xf32>
    %42 = vector.broadcast %41 : vector<1x128xf32> to vector<8x128xf32>
    %43 = arith.addf %40, %42 : vector<8x128xf32>
    %c0_19 = arith.constant 0 : index
    %c0_20 = arith.constant 0 : index
    %c0_21 = arith.constant 0 : index
    %44 = vector.load %arg7[%c0_19, %c0_20, %c0_21] : memref<8x8x128xf32, #tpu.memory_space<vmem>>, vector<1x8x128xf32>
    %45 = vector.shape_cast %44 : vector<1x8x128xf32> to vector<8x128xf32>
    %46 = vector.shape_cast %43 : vector<8x128xf32> to vector<1x8x128xf32>
    tpu.vector_store %arg7[%c0_19, %c0_20, %c0_21], %46 {strides = array<i32>} : memref<8x8x128xf32, #tpu.memory_space<vmem>>, vector<1x8x128xf32>,
    %cst_22 = arith.constant dense<0xFF800000> : vector<8xf32>
    %47 = vector.multi_reduction <maximumf>, %43, %cst_22 [1] : vector<8x128xf32> to vector<8xf32>
    %48 = vector.shape_cast %47 : vector<8xf32> to vector<8x1xf32>
    %49 = vector.broadcast %48 : vector<8x1xf32> to vector<8x128xf32>
    %50 = arith.cmpf oge, %43, %49 : vector<8x128xf32>
    %c128_i32 = arith.constant 128 : i32
    %51 = vector.broadcast %c128_i32 : i32 to vector<8x128xi32>
    %52 = arith.select %50, %0, %51 : vector<8x128xi1>, vector<8x128xi32>
    %cst_23 = arith.constant dense<2147483647> : vector<8xi32>
    %53 = vector.multi_reduction <minsi>, %52, %cst_23 [1] : vector<8x128xi32> to vector<8xi32>
    %54 = vector.shape_cast %53 : vector<8xi32> to vector<8x1xi32>
    %55 = vector.broadcast %54 : vector<8x1xi32> to vector<8x128xi32>
    %56 = arith.cmpi eq, %0, %55 : vector<8x128xi32>
    %57 = arith.extui %56 : vector<8x128xi1> to vector<8x128xi32>
    %58 = arith.sitofp %57 : vector<8x128xi32> to vector<8x128xf32>
    %c0_24 = arith.constant 0 : index
    %c0_25 = arith.constant 0 : index
    %59 = vector.load %arg2[%c0_24, %c0_25] : memref<128x384xf32, #tpu.memory_space<vmem>>, vector<128x384xf32>
    %cst_26 = arith.constant dense<0.000000e+00> : vector<8x384xf32>
    %60 = tpu.matmul %58, %59, %cst_26 {dimension_numbers = #tpu.dot_dimension_numbers<[1], [0], [0], [1], [0, 0, 1, 1], [], []>} : vector<8x128xf32>, vector<128x384xf32>, vector<8x384xf32> -> vector<8x384xf32>
    %c0_27 = arith.constant 0 : index
    %c0_28 = arith.constant 0 : index
    %61 = vector.load %arg3[%c0_27, %c0_28] : memref<32x384xf32, #tpu.memory_space<vmem>>, vector<32x384xf32>
    %cst_29 = arith.constant dense<0.000000e+00> : vector<8x384xf32>
    %62 = tpu.matmul %38, %61, %cst_29 {dimension_numbers = #tpu.dot_dimension_numbers<[1], [0], [0], [1], [0, 0, 1, 1], [], []>} : vector<8x32xf32>, vector<32x384xf32>, vector<8x384xf32> -> vector<8x384xf32>
    %c0_30 = arith.constant 0 : index
    %c0_31 = arith.constant 0 : index
    %63 = vector.load %arg4[%c0_30, %c0_31] : memref<1x384xf32, #tpu.memory_space<vmem>>, vector<1x384xf32>
    %64 = vector.broadcast %63 : vector<1x384xf32> to vector<8x384xf32>
    %65 = arith.addf %62, %64 : vector<8x384xf32>
    %66 = vector.extract_strided_slice %60 {offsets = [0, 0], sizes = [8, 32], strides = [1, 1]} : vector<8x384xf32> to vector<8x32xf32>
    %67 = vector.extract_strided_slice %65 {offsets = [0, 0], sizes = [8, 32], strides = [1, 1]} : vector<8x384xf32> to vector<8x32xf32>
    %68 = arith.addf %66, %67 : vector<8x32xf32>
    %69 = arith.negf %68 : vector<8x32xf32>
    %70 = math.exp %69 : vector<8x32xf32>
    %cst_32 = arith.constant 1.000000e+00 : f32
    %71 = vector.broadcast %cst_32 : f32 to vector<8x32xf32>
    %72 = arith.addf %71, %70 : vector<8x32xf32>
    %73 = arith.divf %71, %72 : vector<8x32xf32>
    %74 = vector.extract_strided_slice %60 {offsets = [0, 128], sizes = [8, 32], strides = [1, 1]} : vector<8x384xf32> to vector<8x32xf32>
    %75 = vector.extract_strided_slice %65 {offsets = [0, 128], sizes = [8, 32], strides = [1, 1]} : vector<8x384xf32> to vector<8x32xf32>
    %76 = arith.addf %74, %75 : vector<8x32xf32>
    %77 = arith.negf %76 : vector<8x32xf32>
    %78 = math.exp %77 : vector<8x32xf32>
    %cst_33 = arith.constant 1.000000e+00 : f32
    %79 = vector.broadcast %cst_33 : f32 to vector<8x32xf32>
    %80 = arith.addf %79, %78 : vector<8x32xf32>
    %81 = arith.divf %79, %80 : vector<8x32xf32>
    %82 = vector.extract_strided_slice %60 {offsets = [0, 256], sizes = [8, 32], strides = [1, 1]} : vector<8x384xf32> to vector<8x32xf32>
    %83 = vector.extract_strided_slice %65 {offsets = [0, 256], sizes = [8, 32], strides = [1, 1]} : vector<8x384xf32> to vector<8x32xf32>
    %84 = arith.mulf %73, %83 : vector<8x32xf32>
    %85 = arith.addf %82, %84 : vector<8x32xf32>
    %86 = math.tanh %85 : vector<8x32xf32>
    %cst_34 = arith.constant 1.000000e+00 : f32
    %87 = vector.broadcast %cst_34 : f32 to vector<8x32xf32>
    %88 = arith.subf %87, %81 : vector<8x32xf32>
    %89 = arith.mulf %88, %86 : vector<8x32xf32>
    %90 = arith.mulf %81, %38 : vector<8x32xf32>
    %91 = arith.addf %89, %90 : vector<8x32xf32>
    %c0_35 = arith.constant 0 : index
    %c0_36 = arith.constant 0 : index
    %92 = vector.load %arg5[%c0_35, %c0_36] : memref<32x128xf32, #tpu.memory_space<vmem>>, vector<32x128xf32>
    %cst_37 = arith.constant dense<0.000000e+00> : vector<8x128xf32>
    %93 = tpu.matmul %91, %92, %cst_37 {dimension_numbers = #tpu.dot_dimension_numbers<[1], [0], [0], [1], [0, 0, 1, 1], [], []>} : vector<8x32xf32>, vector<32x128xf32>, vector<8x128xf32> -> vector<8x128xf32>
    %c0_38 = arith.constant 0 : index
    %c0_39 = arith.constant 0 : index
    %94 = vector.load %arg6[%c0_38, %c0_39] : memref<1x128xf32, #tpu.memory_space<vmem>>, vector<1x128xf32>
    %95 = vector.broadcast %94 : vector<1x128xf32> to vector<8x128xf32>
    %96 = arith.addf %93, %95 : vector<8x128xf32>
    %c1 = arith.constant 1 : index
    %c0_40 = arith.constant 0 : index
    %c0_41 = arith.constant 0 : index
    %97 = vector.load %arg7[%c1, %c0_40, %c0_41] : memref<8x8x128xf32, #tpu.memory_space<vmem>>, vector<1x8x128xf32>
    %98 = vector.shape_cast %97 : vector<1x8x128xf32> to vector<8x128xf32>
    %99 = vector.shape_cast %96 : vector<8x128xf32> to vector<1x8x128xf32>
    tpu.vector_store %arg7[%c1, %c0_40, %c0_41], %99 {strides = array<i32>} : memref<8x8x128xf32, #tpu.memory_space<vmem>>, vector<1x8x128xf32>,
    %cst_42 = arith.constant dense<0xFF800000> : vector<8xf32>
    %100 = vector.multi_reduction <maximumf>, %96, %cst_42 [1] : vector<8x128xf32> to vector<8xf32>
    %101 = vector.shape_cast %100 : vector<8xf32> to vector<8x1xf32>
    %102 = vector.broadcast %101 : vector<8x1xf32> to vector<8x128xf32>
    %103 = arith.cmpf oge, %96, %102 : vector<8x128xf32>
    %c128_i32_43 = arith.constant 128 : i32
    %104 = vector.broadcast %c128_i32_43 : i32 to vector<8x128xi32>
    %105 = arith.select %103, %0, %104 : vector<8x128xi1>, vector<8x128xi32>
    %cst_44 = arith.constant dense<2147483647> : vector<8xi32>
    %106 = vector.multi_reduction <minsi>, %105, %cst_44 [1] : vector<8x128xi32> to vector<8xi32>
    %107 = vector.shape_cast %106 : vector<8xi32> to vector<8x1xi32>
    %108 = vector.broadcast %107 : vector<8x1xi32> to vector<8x128xi32>
    %109 = arith.cmpi eq, %0, %108 : vector<8x128xi32>
    %110 = arith.extui %109 : vector<8x128xi1> to vector<8x128xi32>
    %111 = arith.sitofp %110 : vector<8x128xi32> to vector<8x128xf32>
    %c0_45 = arith.constant 0 : index
    %c0_46 = arith.constant 0 : index
    %112 = vector.load %arg2[%c0_45, %c0_46] : memref<128x384xf32, #tpu.memory_space<vmem>>, vector<128x384xf32>
    %cst_47 = arith.constant dense<0.000000e+00> : vector<8x384xf32>
    %113 = tpu.matmul %111, %112, %cst_47 {dimension_numbers = #tpu.dot_dimension_numbers<[1], [0], [0], [1], [0, 0, 1, 1], [], []>} : vector<8x128xf32>, vector<128x384xf32>, vector<8x384xf32> -> vector<8x384xf32>
    %c0_48 = arith.constant 0 : index
    %c0_49 = arith.constant 0 : index
    %114 = vector.load %arg3[%c0_48, %c0_49] : memref<32x384xf32, #tpu.memory_space<vmem>>, vector<32x384xf32>
    %cst_50 = arith.constant dense<0.000000e+00> : vector<8x384xf32>
    %115 = tpu.matmul %91, %114, %cst_50 {dimension_numbers = #tpu.dot_dimension_numbers<[1], [0], [0], [1], [0, 0, 1, 1], [], []>} : vector<8x32xf32>, vector<32x384xf32>, vector<8x384xf32> -> vector<8x384xf32>
    %c0_51 = arith.constant 0 : index
    %c0_52 = arith.constant 0 : index
    %116 = vector.load %arg4[%c0_51, %c0_52] : memref<1x384xf32, #tpu.memory_space<vmem>>, vector<1x384xf32>
    %117 = vector.broadcast %116 : vector<1x384xf32> to vector<8x384xf32>
    %118 = arith.addf %115, %117 : vector<8x384xf32>
    %119 = vector.extract_strided_slice %113 {offsets = [0, 0], sizes = [8, 32], strides = [1, 1]} : vector<8x384xf32> to vector<8x32xf32>
    %120 = vector.extract_strided_slice %118 {offsets = [0, 0], sizes = [8, 32], strides = [1, 1]} : vector<8x384xf32> to vector<8x32xf32>
    %121 = arith.addf %119, %120 : vector<8x32xf32>
    %122 = arith.negf %121 : vector<8x32xf32>
    %123 = math.exp %122 : vector<8x32xf32>
    %cst_53 = arith.constant 1.000000e+00 : f32
    %124 = vector.broadcast %cst_53 : f32 to vector<8x32xf32>
    %125 = arith.addf %124, %123 : vector<8x32xf32>
    %126 = arith.divf %124, %125 : vector<8x32xf32>
    %127 = vector.extract_strided_slice %113 {offsets = [0, 128], sizes = [8, 32], strides = [1, 1]} : vector<8x384xf32> to vector<8x32xf32>
    %128 = vector.extract_strided_slice %118 {offsets = [0, 128], sizes = [8, 32], strides = [1, 1]} : vector<8x384xf32> to vector<8x32xf32>
    %129 = arith.addf %127, %128 : vector<8x32xf32>
    %130 = arith.negf %129 : vector<8x32xf32>
    %131 = math.exp %130 : vector<8x32xf32>
    %cst_54 = arith.constant 1.000000e+00 : f32
    %132 = vector.broadcast %cst_54 : f32 to vector<8x32xf32>
    %133 = arith.addf %132, %131 : vector<8x32xf32>
    %134 = arith.divf %132, %133 : vector<8x32xf32>
    %135 = vector.extract_strided_slice %113 {offsets = [0, 256], sizes = [8, 32], strides = [1, 1]} : vector<8x384xf32> to vector<8x32xf32>
    %136 = vector.extract_strided_slice %118 {offsets = [0, 256], sizes = [8, 32], strides = [1, 1]} : vector<8x384xf32> to vector<8x32xf32>
    %137 = arith.mulf %126, %136 : vector<8x32xf32>
    %138 = arith.addf %135, %137 : vector<8x32xf32>
    %139 = math.tanh %138 : vector<8x32xf32>
    %cst_55 = arith.constant 1.000000e+00 : f32
    %140 = vector.broadcast %cst_55 : f32 to vector<8x32xf32>
    %141 = arith.subf %140, %134 : vector<8x32xf32>
    %142 = arith.mulf %141, %139 : vector<8x32xf32>
    %143 = arith.mulf %134, %91 : vector<8x32xf32>
    %144 = arith.addf %142, %143 : vector<8x32xf32>
    %c0_56 = arith.constant 0 : index
    %c0_57 = arith.constant 0 : index
    %145 = vector.load %arg5[%c0_56, %c0_57] : memref<32x128xf32, #tpu.memory_space<vmem>>, vector<32x128xf32>
    %cst_58 = arith.constant dense<0.000000e+00> : vector<8x128xf32>
    %146 = tpu.matmul %144, %145, %cst_58 {dimension_numbers = #tpu.dot_dimension_numbers<[1], [0], [0], [1], [0, 0, 1, 1], [], []>} : vector<8x32xf32>, vector<32x128xf32>, vector<8x128xf32> -> vector<8x128xf32>
    %c0_59 = arith.constant 0 : index
    %c0_60 = arith.constant 0 : index
    %147 = vector.load %arg6[%c0_59, %c0_60] : memref<1x128xf32, #tpu.memory_space<vmem>>, vector<1x128xf32>
    %148 = vector.broadcast %147 : vector<1x128xf32> to vector<8x128xf32>
    %149 = arith.addf %146, %148 : vector<8x128xf32>
    %c2 = arith.constant 2 : index
    %c0_61 = arith.constant 0 : index
    %c0_62 = arith.constant 0 : index
    %150 = vector.load %arg7[%c2, %c0_61, %c0_62] : memref<8x8x128xf32, #tpu.memory_space<vmem>>, vector<1x8x128xf32>
    %151 = vector.shape_cast %150 : vector<1x8x128xf32> to vector<8x128xf32>
    %152 = vector.shape_cast %149 : vector<8x128xf32> to vector<1x8x128xf32>
    tpu.vector_store %arg7[%c2, %c0_61, %c0_62], %152 {strides = array<i32>} : memref<8x8x128xf32, #tpu.memory_space<vmem>>, vector<1x8x128xf32>,
    %cst_63 = arith.constant dense<0xFF800000> : vector<8xf32>
    %153 = vector.multi_reduction <maximumf>, %149, %cst_63 [1] : vector<8x128xf32> to vector<8xf32>
    %154 = vector.shape_cast %153 : vector<8xf32> to vector<8x1xf32>
    %155 = vector.broadcast %154 : vector<8x1xf32> to vector<8x128xf32>
    %156 = arith.cmpf oge, %149, %155 : vector<8x128xf32>
    %c128_i32_64 = arith.constant 128 : i32
    %157 = vector.broadcast %c128_i32_64 : i32 to vector<8x128xi32>
    %158 = arith.select %156, %0, %157 : vector<8x128xi1>, vector<8x128xi32>
    %cst_65 = arith.constant dense<2147483647> : vector<8xi32>
    %159 = vector.multi_reduction <minsi>, %158, %cst_65 [1] : vector<8x128xi32> to vector<8xi32>
    %160 = vector.shape_cast %159 : vector<8xi32> to vector<8x1xi32>
    %161 = vector.broadcast %160 : vector<8x1xi32> to vector<8x128xi32>
    %162 = arith.cmpi eq, %0, %161 : vector<8x128xi32>
    %163 = arith.extui %162 : vector<8x128xi1> to vector<8x128xi32>
    %164 = arith.sitofp %163 : vector<8x128xi32> to vector<8x128xf32>
    %c0_66 = arith.constant 0 : index
    %c0_67 = arith.constant 0 : index
    %165 = vector.load %arg2[%c0_66, %c0_67] : memref<128x384xf32, #tpu.memory_space<vmem>>, vector<128x384xf32>
    %cst_68 = arith.constant dense<0.000000e+00> : vector<8x384xf32>
    %166 = tpu.matmul %164, %165, %cst_68 {dimension_numbers = #tpu.dot_dimension_numbers<[1], [0], [0], [1], [0, 0, 1, 1], [], []>} : vector<8x128xf32>, vector<128x384xf32>, vector<8x384xf32> -> vector<8x384xf32>
    %c0_69 = arith.constant 0 : index
    %c0_70 = arith.constant 0 : index
    %167 = vector.load %arg3[%c0_69, %c0_70] : memref<32x384xf32, #tpu.memory_space<vmem>>, vector<32x384xf32>
    %cst_71 = arith.constant dense<0.000000e+00> : vector<8x384xf32>
    %168 = tpu.matmul %144, %167, %cst_71 {dimension_numbers = #tpu.dot_dimension_numbers<[1], [0], [0], [1], [0, 0, 1, 1], [], []>} : vector<8x32xf32>, vector<32x384xf32>, vector<8x384xf32> -> vector<8x384xf32>
    %c0_72 = arith.constant 0 : index
    %c0_73 = arith.constant 0 : index
    %169 = vector.load %arg4[%c0_72, %c0_73] : memref<1x384xf32, #tpu.memory_space<vmem>>, vector<1x384xf32>
    %170 = vector.broadcast %169 : vector<1x384xf32> to vector<8x384xf32>
    %171 = arith.addf %168, %170 : vector<8x384xf32>
    %172 = vector.extract_strided_slice %166 {offsets = [0, 0], sizes = [8, 32], strides = [1, 1]} : vector<8x384xf32> to vector<8x32xf32>
    %173 = vector.extract_strided_slice %171 {offsets = [0, 0], sizes = [8, 32], strides = [1, 1]} : vector<8x384xf32> to vector<8x32xf32>
    %174 = arith.addf %172, %173 : vector<8x32xf32>
    %175 = arith.negf %174 : vector<8x32xf32>
    %176 = math.exp %175 : vector<8x32xf32>
    %cst_74 = arith.constant 1.000000e+00 : f32
    %177 = vector.broadcast %cst_74 : f32 to vector<8x32xf32>
    %178 = arith.addf %177, %176 : vector<8x32xf32>
    %179 = arith.divf %177, %178 : vector<8x32xf32>
    %180 = vector.extract_strided_slice %166 {offsets = [0, 128], sizes = [8, 32], strides = [1, 1]} : vector<8x384xf32> to vector<8x32xf32>
    %181 = vector.extract_strided_slice %171 {offsets = [0, 128], sizes = [8, 32], strides = [1, 1]} : vector<8x384xf32> to vector<8x32xf32>
    %182 = arith.addf %180, %181 : vector<8x32xf32>
    %183 = arith.negf %182 : vector<8x32xf32>
    %184 = math.exp %183 : vector<8x32xf32>
    %cst_75 = arith.constant 1.000000e+00 : f32
    %185 = vector.broadcast %cst_75 : f32 to vector<8x32xf32>
    %186 = arith.addf %185, %184 : vector<8x32xf32>
    %187 = arith.divf %185, %186 : vector<8x32xf32>
    %188 = vector.extract_strided_slice %166 {offsets = [0, 256], sizes = [8, 32], strides = [1, 1]} : vector<8x384xf32> to vector<8x32xf32>
    %189 = vector.extract_strided_slice %171 {offsets = [0, 256], sizes = [8, 32], strides = [1, 1]} : vector<8x384xf32> to vector<8x32xf32>
    %190 = arith.mulf %179, %189 : vector<8x32xf32>
    %191 = arith.addf %188, %190 : vector<8x32xf32>
    %192 = math.tanh %191 : vector<8x32xf32>
    %cst_76 = arith.constant 1.000000e+00 : f32
    %193 = vector.broadcast %cst_76 : f32 to vector<8x32xf32>
    %194 = arith.subf %193, %187 : vector<8x32xf32>
    %195 = arith.mulf %194, %192 : vector<8x32xf32>
    %196 = arith.mulf %187, %144 : vector<8x32xf32>
    %197 = arith.addf %195, %196 : vector<8x32xf32>
    %c0_77 = arith.constant 0 : index
    %c0_78 = arith.constant 0 : index
    %198 = vector.load %arg5[%c0_77, %c0_78] : memref<32x128xf32, #tpu.memory_space<vmem>>, vector<32x128xf32>
    %cst_79 = arith.constant dense<0.000000e+00> : vector<8x128xf32>
    %199 = tpu.matmul %197, %198, %cst_79 {dimension_numbers = #tpu.dot_dimension_numbers<[1], [0], [0], [1], [0, 0, 1, 1], [], []>} : vector<8x32xf32>, vector<32x128xf32>, vector<8x128xf32> -> vector<8x128xf32>
    %c0_80 = arith.constant 0 : index
    %c0_81 = arith.constant 0 : index
    %200 = vector.load %arg6[%c0_80, %c0_81] : memref<1x128xf32, #tpu.memory_space<vmem>>, vector<1x128xf32>
    %201 = vector.broadcast %200 : vector<1x128xf32> to vector<8x128xf32>
    %202 = arith.addf %199, %201 : vector<8x128xf32>
    %c3 = arith.constant 3 : index
    %c0_82 = arith.constant 0 : index
    %c0_83 = arith.constant 0 : index
    %203 = vector.load %arg7[%c3, %c0_82, %c0_83] : memref<8x8x128xf32, #tpu.memory_space<vmem>>, vector<1x8x128xf32>
    %204 = vector.shape_cast %203 : vector<1x8x128xf32> to vector<8x128xf32>
    %205 = vector.shape_cast %202 : vector<8x128xf32> to vector<1x8x128xf32>
    tpu.vector_store %arg7[%c3, %c0_82, %c0_83], %205 {strides = array<i32>} : memref<8x8x128xf32, #tpu.memory_space<vmem>>, vector<1x8x128xf32>,
    %cst_84 = arith.constant dense<0xFF800000> : vector<8xf32>
    %206 = vector.multi_reduction <maximumf>, %202, %cst_84 [1] : vector<8x128xf32> to vector<8xf32>
    %207 = vector.shape_cast %206 : vector<8xf32> to vector<8x1xf32>
    %208 = vector.broadcast %207 : vector<8x1xf32> to vector<8x128xf32>
    %209 = arith.cmpf oge, %202, %208 : vector<8x128xf32>
    %c128_i32_85 = arith.constant 128 : i32
    %210 = vector.broadcast %c128_i32_85 : i32 to vector<8x128xi32>
    %211 = arith.select %209, %0, %210 : vector<8x128xi1>, vector<8x128xi32>
    %cst_86 = arith.constant dense<2147483647> : vector<8xi32>
    %212 = vector.multi_reduction <minsi>, %211, %cst_86 [1] : vector<8x128xi32> to vector<8xi32>
    %213 = vector.shape_cast %212 : vector<8xi32> to vector<8x1xi32>
    %214 = vector.broadcast %213 : vector<8x1xi32> to vector<8x128xi32>
    %215 = arith.cmpi eq, %0, %214 : vector<8x128xi32>
    %216 = arith.extui %215 : vector<8x128xi1> to vector<8x128xi32>
    %217 = arith.sitofp %216 : vector<8x128xi32> to vector<8x128xf32>
    %c0_87 = arith.constant 0 : index
    %c0_88 = arith.constant 0 : index
    %218 = vector.load %arg2[%c0_87, %c0_88] : memref<128x384xf32, #tpu.memory_space<vmem>>, vector<128x384xf32>
    %cst_89 = arith.constant dense<0.000000e+00> : vector<8x384xf32>
    %219 = tpu.matmul %217, %218, %cst_89 {dimension_numbers = #tpu.dot_dimension_numbers<[1], [0], [0], [1], [0, 0, 1, 1], [], []>} : vector<8x128xf32>, vector<128x384xf32>, vector<8x384xf32> -> vector<8x384xf32>
    %c0_90 = arith.constant 0 : index
    %c0_91 = arith.constant 0 : index
    %220 = vector.load %arg3[%c0_90, %c0_91] : memref<32x384xf32, #tpu.memory_space<vmem>>, vector<32x384xf32>
    %cst_92 = arith.constant dense<0.000000e+00> : vector<8x384xf32>
    %221 = tpu.matmul %197, %220, %cst_92 {dimension_numbers = #tpu.dot_dimension_numbers<[1], [0], [0], [1], [0, 0, 1, 1], [], []>} : vector<8x32xf32>, vector<32x384xf32>, vector<8x384xf32> -> vector<8x384xf32>
    %c0_93 = arith.constant 0 : index
    %c0_94 = arith.constant 0 : index
    %222 = vector.load %arg4[%c0_93, %c0_94] : memref<1x384xf32, #tpu.memory_space<vmem>>, vector<1x384xf32>
    %223 = vector.broadcast %222 : vector<1x384xf32> to vector<8x384xf32>
    %224 = arith.addf %221, %223 : vector<8x384xf32>
    %225 = vector.extract_strided_slice %219 {offsets = [0, 0], sizes = [8, 32], strides = [1, 1]} : vector<8x384xf32> to vector<8x32xf32>
    %226 = vector.extract_strided_slice %224 {offsets = [0, 0], sizes = [8, 32], strides = [1, 1]} : vector<8x384xf32> to vector<8x32xf32>
    %227 = arith.addf %225, %226 : vector<8x32xf32>
    %228 = arith.negf %227 : vector<8x32xf32>
    %229 = math.exp %228 : vector<8x32xf32>
    %cst_95 = arith.constant 1.000000e+00 : f32
    %230 = vector.broadcast %cst_95 : f32 to vector<8x32xf32>
    %231 = arith.addf %230, %229 : vector<8x32xf32>
    %232 = arith.divf %230, %231 : vector<8x32xf32>
    %233 = vector.extract_strided_slice %219 {offsets = [0, 128], sizes = [8, 32], strides = [1, 1]} : vector<8x384xf32> to vector<8x32xf32>
    %234 = vector.extract_strided_slice %224 {offsets = [0, 128], sizes = [8, 32], strides = [1, 1]} : vector<8x384xf32> to vector<8x32xf32>
    %235 = arith.addf %233, %234 : vector<8x32xf32>
    %236 = arith.negf %235 : vector<8x32xf32>
    %237 = math.exp %236 : vector<8x32xf32>
    %cst_96 = arith.constant 1.000000e+00 : f32
    %238 = vector.broadcast %cst_96 : f32 to vector<8x32xf32>
    %239 = arith.addf %238, %237 : vector<8x32xf32>
    %240 = arith.divf %238, %239 : vector<8x32xf32>
    %241 = vector.extract_strided_slice %219 {offsets = [0, 256], sizes = [8, 32], strides = [1, 1]} : vector<8x384xf32> to vector<8x32xf32>
    %242 = vector.extract_strided_slice %224 {offsets = [0, 256], sizes = [8, 32], strides = [1, 1]} : vector<8x384xf32> to vector<8x32xf32>
    %243 = arith.mulf %232, %242 : vector<8x32xf32>
    %244 = arith.addf %241, %243 : vector<8x32xf32>
    %245 = math.tanh %244 : vector<8x32xf32>
    %cst_97 = arith.constant 1.000000e+00 : f32
    %246 = vector.broadcast %cst_97 : f32 to vector<8x32xf32>
    %247 = arith.subf %246, %240 : vector<8x32xf32>
    %248 = arith.mulf %247, %245 : vector<8x32xf32>
    %249 = arith.mulf %240, %197 : vector<8x32xf32>
    %250 = arith.addf %248, %249 : vector<8x32xf32>
    %c0_98 = arith.constant 0 : index
    %c0_99 = arith.constant 0 : index
    %251 = vector.load %arg5[%c0_98, %c0_99] : memref<32x128xf32, #tpu.memory_space<vmem>>, vector<32x128xf32>
    %cst_100 = arith.constant dense<0.000000e+00> : vector<8x128xf32>
    %252 = tpu.matmul %250, %251, %cst_100 {dimension_numbers = #tpu.dot_dimension_numbers<[1], [0], [0], [1], [0, 0, 1, 1], [], []>} : vector<8x32xf32>, vector<32x128xf32>, vector<8x128xf32> -> vector<8x128xf32>
    %c0_101 = arith.constant 0 : index
    %c0_102 = arith.constant 0 : index
    %253 = vector.load %arg6[%c0_101, %c0_102] : memref<1x128xf32, #tpu.memory_space<vmem>>, vector<1x128xf32>
    %254 = vector.broadcast %253 : vector<1x128xf32> to vector<8x128xf32>
    %255 = arith.addf %252, %254 : vector<8x128xf32>
    %c4 = arith.constant 4 : index
    %c0_103 = arith.constant 0 : index
    %c0_104 = arith.constant 0 : index
    %256 = vector.load %arg7[%c4, %c0_103, %c0_104] : memref<8x8x128xf32, #tpu.memory_space<vmem>>, vector<1x8x128xf32>
    %257 = vector.shape_cast %256 : vector<1x8x128xf32> to vector<8x128xf32>
    %258 = vector.shape_cast %255 : vector<8x128xf32> to vector<1x8x128xf32>
    tpu.vector_store %arg7[%c4, %c0_103, %c0_104], %258 {strides = array<i32>} : memref<8x8x128xf32, #tpu.memory_space<vmem>>, vector<1x8x128xf32>,
    %cst_105 = arith.constant dense<0xFF800000> : vector<8xf32>
    %259 = vector.multi_reduction <maximumf>, %255, %cst_105 [1] : vector<8x128xf32> to vector<8xf32>
    %260 = vector.shape_cast %259 : vector<8xf32> to vector<8x1xf32>
    %261 = vector.broadcast %260 : vector<8x1xf32> to vector<8x128xf32>
    %262 = arith.cmpf oge, %255, %261 : vector<8x128xf32>
    %c128_i32_106 = arith.constant 128 : i32
    %263 = vector.broadcast %c128_i32_106 : i32 to vector<8x128xi32>
    %264 = arith.select %262, %0, %263 : vector<8x128xi1>, vector<8x128xi32>
    %cst_107 = arith.constant dense<2147483647> : vector<8xi32>
    %265 = vector.multi_reduction <minsi>, %264, %cst_107 [1] : vector<8x128xi32> to vector<8xi32>
    %266 = vector.shape_cast %265 : vector<8xi32> to vector<8x1xi32>
    %267 = vector.broadcast %266 : vector<8x1xi32> to vector<8x128xi32>
    %268 = arith.cmpi eq, %0, %267 : vector<8x128xi32>
    %269 = arith.extui %268 : vector<8x128xi1> to vector<8x128xi32>
    %270 = arith.sitofp %269 : vector<8x128xi32> to vector<8x128xf32>
    %c0_108 = arith.constant 0 : index
    %c0_109 = arith.constant 0 : index
    %271 = vector.load %arg2[%c0_108, %c0_109] : memref<128x384xf32, #tpu.memory_space<vmem>>, vector<128x384xf32>
    %cst_110 = arith.constant dense<0.000000e+00> : vector<8x384xf32>
    %272 = tpu.matmul %270, %271, %cst_110 {dimension_numbers = #tpu.dot_dimension_numbers<[1], [0], [0], [1], [0, 0, 1, 1], [], []>} : vector<8x128xf32>, vector<128x384xf32>, vector<8x384xf32> -> vector<8x384xf32>
    %c0_111 = arith.constant 0 : index
    %c0_112 = arith.constant 0 : index
    %273 = vector.load %arg3[%c0_111, %c0_112] : memref<32x384xf32, #tpu.memory_space<vmem>>, vector<32x384xf32>
    %cst_113 = arith.constant dense<0.000000e+00> : vector<8x384xf32>
    %274 = tpu.matmul %250, %273, %cst_113 {dimension_numbers = #tpu.dot_dimension_numbers<[1], [0], [0], [1], [0, 0, 1, 1], [], []>} : vector<8x32xf32>, vector<32x384xf32>, vector<8x384xf32> -> vector<8x384xf32>
    %c0_114 = arith.constant 0 : index
    %c0_115 = arith.constant 0 : index
    %275 = vector.load %arg4[%c0_114, %c0_115] : memref<1x384xf32, #tpu.memory_space<vmem>>, vector<1x384xf32>
    %276 = vector.broadcast %275 : vector<1x384xf32> to vector<8x384xf32>
    %277 = arith.addf %274, %276 : vector<8x384xf32>
    %278 = vector.extract_strided_slice %272 {offsets = [0, 0], sizes = [8, 32], strides = [1, 1]} : vector<8x384xf32> to vector<8x32xf32>
    %279 = vector.extract_strided_slice %277 {offsets = [0, 0], sizes = [8, 32], strides = [1, 1]} : vector<8x384xf32> to vector<8x32xf32>
    %280 = arith.addf %278, %279 : vector<8x32xf32>
    %281 = arith.negf %280 : vector<8x32xf32>
    %282 = math.exp %281 : vector<8x32xf32>
    %cst_116 = arith.constant 1.000000e+00 : f32
    %283 = vector.broadcast %cst_116 : f32 to vector<8x32xf32>
    %284 = arith.addf %283, %282 : vector<8x32xf32>
    %285 = arith.divf %283, %284 : vector<8x32xf32>
    %286 = vector.extract_strided_slice %272 {offsets = [0, 128], sizes = [8, 32], strides = [1, 1]} : vector<8x384xf32> to vector<8x32xf32>
    %287 = vector.extract_strided_slice %277 {offsets = [0, 128], sizes = [8, 32], strides = [1, 1]} : vector<8x384xf32> to vector<8x32xf32>
    %288 = arith.addf %286, %287 : vector<8x32xf32>
    %289 = arith.negf %288 : vector<8x32xf32>
    %290 = math.exp %289 : vector<8x32xf32>
    %cst_117 = arith.constant 1.000000e+00 : f32
    %291 = vector.broadcast %cst_117 : f32 to vector<8x32xf32>
    %292 = arith.addf %291, %290 : vector<8x32xf32>
    %293 = arith.divf %291, %292 : vector<8x32xf32>
    %294 = vector.extract_strided_slice %272 {offsets = [0, 256], sizes = [8, 32], strides = [1, 1]} : vector<8x384xf32> to vector<8x32xf32>
    %295 = vector.extract_strided_slice %277 {offsets = [0, 256], sizes = [8, 32], strides = [1, 1]} : vector<8x384xf32> to vector<8x32xf32>
    %296 = arith.mulf %285, %295 : vector<8x32xf32>
    %297 = arith.addf %294, %296 : vector<8x32xf32>
    %298 = math.tanh %297 : vector<8x32xf32>
    %cst_118 = arith.constant 1.000000e+00 : f32
    %299 = vector.broadcast %cst_118 : f32 to vector<8x32xf32>
    %300 = arith.subf %299, %293 : vector<8x32xf32>
    %301 = arith.mulf %300, %298 : vector<8x32xf32>
    %302 = arith.mulf %293, %250 : vector<8x32xf32>
    %303 = arith.addf %301, %302 : vector<8x32xf32>
    %c0_119 = arith.constant 0 : index
    %c0_120 = arith.constant 0 : index
    %304 = vector.load %arg5[%c0_119, %c0_120] : memref<32x128xf32, #tpu.memory_space<vmem>>, vector<32x128xf32>
    %cst_121 = arith.constant dense<0.000000e+00> : vector<8x128xf32>
    %305 = tpu.matmul %303, %304, %cst_121 {dimension_numbers = #tpu.dot_dimension_numbers<[1], [0], [0], [1], [0, 0, 1, 1], [], []>} : vector<8x32xf32>, vector<32x128xf32>, vector<8x128xf32> -> vector<8x128xf32>
    %c0_122 = arith.constant 0 : index
    %c0_123 = arith.constant 0 : index
    %306 = vector.load %arg6[%c0_122, %c0_123] : memref<1x128xf32, #tpu.memory_space<vmem>>, vector<1x128xf32>
    %307 = vector.broadcast %306 : vector<1x128xf32> to vector<8x128xf32>
    %308 = arith.addf %305, %307 : vector<8x128xf32>
    %c5 = arith.constant 5 : index
    %c0_124 = arith.constant 0 : index
    %c0_125 = arith.constant 0 : index
    %309 = vector.load %arg7[%c5, %c0_124, %c0_125] : memref<8x8x128xf32, #tpu.memory_space<vmem>>, vector<1x8x128xf32>
    %310 = vector.shape_cast %309 : vector<1x8x128xf32> to vector<8x128xf32>
    %311 = vector.shape_cast %308 : vector<8x128xf32> to vector<1x8x128xf32>
    tpu.vector_store %arg7[%c5, %c0_124, %c0_125], %311 {strides = array<i32>} : memref<8x8x128xf32, #tpu.memory_space<vmem>>, vector<1x8x128xf32>,
    %cst_126 = arith.constant dense<0xFF800000> : vector<8xf32>
    %312 = vector.multi_reduction <maximumf>, %308, %cst_126 [1] : vector<8x128xf32> to vector<8xf32>
    %313 = vector.shape_cast %312 : vector<8xf32> to vector<8x1xf32>
    %314 = vector.broadcast %313 : vector<8x1xf32> to vector<8x128xf32>
    %315 = arith.cmpf oge, %308, %314 : vector<8x128xf32>
    %c128_i32_127 = arith.constant 128 : i32
    %316 = vector.broadcast %c128_i32_127 : i32 to vector<8x128xi32>
    %317 = arith.select %315, %0, %316 : vector<8x128xi1>, vector<8x128xi32>
    %cst_128 = arith.constant dense<2147483647> : vector<8xi32>
    %318 = vector.multi_reduction <minsi>, %317, %cst_128 [1] : vector<8x128xi32> to vector<8xi32>
    %319 = vector.shape_cast %318 : vector<8xi32> to vector<8x1xi32>
    %320 = vector.broadcast %319 : vector<8x1xi32> to vector<8x128xi32>
    %321 = arith.cmpi eq, %0, %320 : vector<8x128xi32>
    %322 = arith.extui %321 : vector<8x128xi1> to vector<8x128xi32>
    %323 = arith.sitofp %322 : vector<8x128xi32> to vector<8x128xf32>
    %c0_129 = arith.constant 0 : index
    %c0_130 = arith.constant 0 : index
    %324 = vector.load %arg2[%c0_129, %c0_130] : memref<128x384xf32, #tpu.memory_space<vmem>>, vector<128x384xf32>
    %cst_131 = arith.constant dense<0.000000e+00> : vector<8x384xf32>
    %325 = tpu.matmul %323, %324, %cst_131 {dimension_numbers = #tpu.dot_dimension_numbers<[1], [0], [0], [1], [0, 0, 1, 1], [], []>} : vector<8x128xf32>, vector<128x384xf32>, vector<8x384xf32> -> vector<8x384xf32>
    %c0_132 = arith.constant 0 : index
    %c0_133 = arith.constant 0 : index
    %326 = vector.load %arg3[%c0_132, %c0_133] : memref<32x384xf32, #tpu.memory_space<vmem>>, vector<32x384xf32>
    %cst_134 = arith.constant dense<0.000000e+00> : vector<8x384xf32>
    %327 = tpu.matmul %303, %326, %cst_134 {dimension_numbers = #tpu.dot_dimension_numbers<[1], [0], [0], [1], [0, 0, 1, 1], [], []>} : vector<8x32xf32>, vector<32x384xf32>, vector<8x384xf32> -> vector<8x384xf32>
    %c0_135 = arith.constant 0 : index
    %c0_136 = arith.constant 0 : index
    %328 = vector.load %arg4[%c0_135, %c0_136] : memref<1x384xf32, #tpu.memory_space<vmem>>, vector<1x384xf32>
    %329 = vector.broadcast %328 : vector<1x384xf32> to vector<8x384xf32>
    %330 = arith.addf %327, %329 : vector<8x384xf32>
    %331 = vector.extract_strided_slice %325 {offsets = [0, 0], sizes = [8, 32], strides = [1, 1]} : vector<8x384xf32> to vector<8x32xf32>
    %332 = vector.extract_strided_slice %330 {offsets = [0, 0], sizes = [8, 32], strides = [1, 1]} : vector<8x384xf32> to vector<8x32xf32>
    %333 = arith.addf %331, %332 : vector<8x32xf32>
    %334 = arith.negf %333 : vector<8x32xf32>
    %335 = math.exp %334 : vector<8x32xf32>
    %cst_137 = arith.constant 1.000000e+00 : f32
    %336 = vector.broadcast %cst_137 : f32 to vector<8x32xf32>
    %337 = arith.addf %336, %335 : vector<8x32xf32>
    %338 = arith.divf %336, %337 : vector<8x32xf32>
    %339 = vector.extract_strided_slice %325 {offsets = [0, 128], sizes = [8, 32], strides = [1, 1]} : vector<8x384xf32> to vector<8x32xf32>
    %340 = vector.extract_strided_slice %330 {offsets = [0, 128], sizes = [8, 32], strides = [1, 1]} : vector<8x384xf32> to vector<8x32xf32>
    %341 = arith.addf %339, %340 : vector<8x32xf32>
    %342 = arith.negf %341 : vector<8x32xf32>
    %343 = math.exp %342 : vector<8x32xf32>
    %cst_138 = arith.constant 1.000000e+00 : f32
    %344 = vector.broadcast %cst_138 : f32 to vector<8x32xf32>
    %345 = arith.addf %344, %343 : vector<8x32xf32>
    %346 = arith.divf %344, %345 : vector<8x32xf32>
    %347 = vector.extract_strided_slice %325 {offsets = [0, 256], sizes = [8, 32], strides = [1, 1]} : vector<8x384xf32> to vector<8x32xf32>
    %348 = vector.extract_strided_slice %330 {offsets = [0, 256], sizes = [8, 32], strides = [1, 1]} : vector<8x384xf32> to vector<8x32xf32>
    %349 = arith.mulf %338, %348 : vector<8x32xf32>
    %350 = arith.addf %347, %349 : vector<8x32xf32>
    %351 = math.tanh %350 : vector<8x32xf32>
    %cst_139 = arith.constant 1.000000e+00 : f32
    %352 = vector.broadcast %cst_139 : f32 to vector<8x32xf32>
    %353 = arith.subf %352, %346 : vector<8x32xf32>
    %354 = arith.mulf %353, %351 : vector<8x32xf32>
    %355 = arith.mulf %346, %303 : vector<8x32xf32>
    %356 = arith.addf %354, %355 : vector<8x32xf32>
    %c0_140 = arith.constant 0 : index
    %c0_141 = arith.constant 0 : index
    %357 = vector.load %arg5[%c0_140, %c0_141] : memref<32x128xf32, #tpu.memory_space<vmem>>, vector<32x128xf32>
    %cst_142 = arith.constant dense<0.000000e+00> : vector<8x128xf32>
    %358 = tpu.matmul %356, %357, %cst_142 {dimension_numbers = #tpu.dot_dimension_numbers<[1], [0], [0], [1], [0, 0, 1, 1], [], []>} : vector<8x32xf32>, vector<32x128xf32>, vector<8x128xf32> -> vector<8x128xf32>
    %c0_143 = arith.constant 0 : index
    %c0_144 = arith.constant 0 : index
    %359 = vector.load %arg6[%c0_143, %c0_144] : memref<1x128xf32, #tpu.memory_space<vmem>>, vector<1x128xf32>
    %360 = vector.broadcast %359 : vector<1x128xf32> to vector<8x128xf32>
    %361 = arith.addf %358, %360 : vector<8x128xf32>
    %c6 = arith.constant 6 : index
    %c0_145 = arith.constant 0 : index
    %c0_146 = arith.constant 0 : index
    %362 = vector.load %arg7[%c6, %c0_145, %c0_146] : memref<8x8x128xf32, #tpu.memory_space<vmem>>, vector<1x8x128xf32>
    %363 = vector.shape_cast %362 : vector<1x8x128xf32> to vector<8x128xf32>
    %364 = vector.shape_cast %361 : vector<8x128xf32> to vector<1x8x128xf32>
    tpu.vector_store %arg7[%c6, %c0_145, %c0_146], %364 {strides = array<i32>} : memref<8x8x128xf32, #tpu.memory_space<vmem>>, vector<1x8x128xf32>,
    %cst_147 = arith.constant dense<0xFF800000> : vector<8xf32>
    %365 = vector.multi_reduction <maximumf>, %361, %cst_147 [1] : vector<8x128xf32> to vector<8xf32>
    %366 = vector.shape_cast %365 : vector<8xf32> to vector<8x1xf32>
    %367 = vector.broadcast %366 : vector<8x1xf32> to vector<8x128xf32>
    %368 = arith.cmpf oge, %361, %367 : vector<8x128xf32>
    %c128_i32_148 = arith.constant 128 : i32
    %369 = vector.broadcast %c128_i32_148 : i32 to vector<8x128xi32>
    %370 = arith.select %368, %0, %369 : vector<8x128xi1>, vector<8x128xi32>
    %cst_149 = arith.constant dense<2147483647> : vector<8xi32>
    %371 = vector.multi_reduction <minsi>, %370, %cst_149 [1] : vector<8x128xi32> to vector<8xi32>
    %372 = vector.shape_cast %371 : vector<8xi32> to vector<8x1xi32>
    %373 = vector.broadcast %372 : vector<8x1xi32> to vector<8x128xi32>
    %374 = arith.cmpi eq, %0, %373 : vector<8x128xi32>
    %375 = arith.extui %374 : vector<8x128xi1> to vector<8x128xi32>
    %376 = arith.sitofp %375 : vector<8x128xi32> to vector<8x128xf32>
    %c0_150 = arith.constant 0 : index
    %c0_151 = arith.constant 0 : index
    %377 = vector.load %arg2[%c0_150, %c0_151] : memref<128x384xf32, #tpu.memory_space<vmem>>, vector<128x384xf32>
    %cst_152 = arith.constant dense<0.000000e+00> : vector<8x384xf32>
    %378 = tpu.matmul %376, %377, %cst_152 {dimension_numbers = #tpu.dot_dimension_numbers<[1], [0], [0], [1], [0, 0, 1, 1], [], []>} : vector<8x128xf32>, vector<128x384xf32>, vector<8x384xf32> -> vector<8x384xf32>
    %c0_153 = arith.constant 0 : index
    %c0_154 = arith.constant 0 : index
    %379 = vector.load %arg3[%c0_153, %c0_154] : memref<32x384xf32, #tpu.memory_space<vmem>>, vector<32x384xf32>
    %cst_155 = arith.constant dense<0.000000e+00> : vector<8x384xf32>
    %380 = tpu.matmul %356, %379, %cst_155 {dimension_numbers = #tpu.dot_dimension_numbers<[1], [0], [0], [1], [0, 0, 1, 1], [], []>} : vector<8x32xf32>, vector<32x384xf32>, vector<8x384xf32> -> vector<8x384xf32>
    %c0_156 = arith.constant 0 : index
    %c0_157 = arith.constant 0 : index
    %381 = vector.load %arg4[%c0_156, %c0_157] : memref<1x384xf32, #tpu.memory_space<vmem>>, vector<1x384xf32>
    %382 = vector.broadcast %381 : vector<1x384xf32> to vector<8x384xf32>
    %383 = arith.addf %380, %382 : vector<8x384xf32>
    %384 = vector.extract_strided_slice %378 {offsets = [0, 0], sizes = [8, 32], strides = [1, 1]} : vector<8x384xf32> to vector<8x32xf32>
    %385 = vector.extract_strided_slice %383 {offsets = [0, 0], sizes = [8, 32], strides = [1, 1]} : vector<8x384xf32> to vector<8x32xf32>
    %386 = arith.addf %384, %385 : vector<8x32xf32>
    %387 = arith.negf %386 : vector<8x32xf32>
    %388 = math.exp %387 : vector<8x32xf32>
    %cst_158 = arith.constant 1.000000e+00 : f32
    %389 = vector.broadcast %cst_158 : f32 to vector<8x32xf32>
    %390 = arith.addf %389, %388 : vector<8x32xf32>
    %391 = arith.divf %389, %390 : vector<8x32xf32>
    %392 = vector.extract_strided_slice %378 {offsets = [0, 128], sizes = [8, 32], strides = [1, 1]} : vector<8x384xf32> to vector<8x32xf32>
    %393 = vector.extract_strided_slice %383 {offsets = [0, 128], sizes = [8, 32], strides = [1, 1]} : vector<8x384xf32> to vector<8x32xf32>
    %394 = arith.addf %392, %393 : vector<8x32xf32>
    %395 = arith.negf %394 : vector<8x32xf32>
    %396 = math.exp %395 : vector<8x32xf32>
    %cst_159 = arith.constant 1.000000e+00 : f32
    %397 = vector.broadcast %cst_159 : f32 to vector<8x32xf32>
    %398 = arith.addf %397, %396 : vector<8x32xf32>
    %399 = arith.divf %397, %398 : vector<8x32xf32>
    %400 = vector.extract_strided_slice %378 {offsets = [0, 256], sizes = [8, 32], strides = [1, 1]} : vector<8x384xf32> to vector<8x32xf32>
    %401 = vector.extract_strided_slice %383 {offsets = [0, 256], sizes = [8, 32], strides = [1, 1]} : vector<8x384xf32> to vector<8x32xf32>
    %402 = arith.mulf %391, %401 : vector<8x32xf32>
    %403 = arith.addf %400, %402 : vector<8x32xf32>
    %404 = math.tanh %403 : vector<8x32xf32>
    %cst_160 = arith.constant 1.000000e+00 : f32
    %405 = vector.broadcast %cst_160 : f32 to vector<8x32xf32>
    %406 = arith.subf %405, %399 : vector<8x32xf32>
    %407 = arith.mulf %406, %404 : vector<8x32xf32>
    %408 = arith.mulf %399, %356 : vector<8x32xf32>
    %409 = arith.addf %407, %408 : vector<8x32xf32>
    %c0_161 = arith.constant 0 : index
    %c0_162 = arith.constant 0 : index
    %410 = vector.load %arg5[%c0_161, %c0_162] : memref<32x128xf32, #tpu.memory_space<vmem>>, vector<32x128xf32>
    %cst_163 = arith.constant dense<0.000000e+00> : vector<8x128xf32>
    %411 = tpu.matmul %409, %410, %cst_163 {dimension_numbers = #tpu.dot_dimension_numbers<[1], [0], [0], [1], [0, 0, 1, 1], [], []>} : vector<8x32xf32>, vector<32x128xf32>, vector<8x128xf32> -> vector<8x128xf32>
    %c0_164 = arith.constant 0 : index
    %c0_165 = arith.constant 0 : index
    %412 = vector.load %arg6[%c0_164, %c0_165] : memref<1x128xf32, #tpu.memory_space<vmem>>, vector<1x128xf32>
    %413 = vector.broadcast %412 : vector<1x128xf32> to vector<8x128xf32>
    %414 = arith.addf %411, %413 : vector<8x128xf32>
    %c7 = arith.constant 7 : index
    %c0_166 = arith.constant 0 : index
    %c0_167 = arith.constant 0 : index
    %415 = vector.load %arg7[%c7, %c0_166, %c0_167] : memref<8x8x128xf32, #tpu.memory_space<vmem>>, vector<1x8x128xf32>
    %416 = vector.shape_cast %415 : vector<1x8x128xf32> to vector<8x128xf32>
    %417 = vector.shape_cast %414 : vector<8x128xf32> to vector<1x8x128xf32>
    tpu.vector_store %arg7[%c7, %c0_166, %c0_167], %417 {strides = array<i32>} : memref<8x8x128xf32, #tpu.memory_space<vmem>>, vector<1x8x128xf32>,
    %cst_168 = arith.constant dense<0xFF800000> : vector<8xf32>
    %418 = vector.multi_reduction <maximumf>, %414, %cst_168 [1] : vector<8x128xf32> to vector<8xf32>
    %419 = vector.shape_cast %418 : vector<8xf32> to vector<8x1xf32>
    %420 = vector.broadcast %419 : vector<8x1xf32> to vector<8x128xf32>
    %421 = arith.cmpf oge, %414, %420 : vector<8x128xf32>
    %c128_i32_169 = arith.constant 128 : i32
    %422 = vector.broadcast %c128_i32_169 : i32 to vector<8x128xi32>
    %423 = arith.select %421, %0, %422 : vector<8x128xi1>, vector<8x128xi32>
    %cst_170 = arith.constant dense<2147483647> : vector<8xi32>
    %424 = vector.multi_reduction <minsi>, %423, %cst_170 [1] : vector<8x128xi32> to vector<8xi32>
    %425 = vector.shape_cast %424 : vector<8xi32> to vector<8x1xi32>
    %426 = vector.broadcast %425 : vector<8x1xi32> to vector<8x128xi32>
    %427 = arith.cmpi eq, %0, %426 : vector<8x128xi32>
    %428 = arith.extui %427 : vector<8x128xi1> to vector<8x128xi32>
    %429 = arith.sitofp %428 : vector<8x128xi32> to vector<8x128xf32>
    %c0_171 = arith.constant 0 : index
    %c0_172 = arith.constant 0 : index
    %430 = vector.load %arg9[%c0_171, %c0_172] : memref<8x32xf32, #tpu.memory_space<vmem>>, vector<8x32xf32>
    tpu.vector_store %arg9[%c0_171, %c0_172], %409 {strides = array<i32>} : memref<8x32xf32, #tpu.memory_space<vmem>>, vector<8x32xf32>,
    %c0_173 = arith.constant 0 : index
    %c0_174 = arith.constant 0 : index
    %431 = vector.load %arg10[%c0_173, %c0_174] : memref<8x128xf32, #tpu.memory_space<vmem>>, vector<8x128xf32>
    tpu.vector_store %arg10[%c0_173, %c0_174], %429 {strides = array<i32>} : memref<8x128xf32, #tpu.memory_space<vmem>>, vector<8x128xf32>,
    %c0_i32_175 = arith.constant 0 : i32
    %432 = arith.cmpi eq, %arg0, %c0_i32_175 : i32
    %433 = arith.extui %432 : i1 to i32
    %c0_i32_176 = arith.constant 0 : i32
    %434 = arith.cmpi ne, %433, %c0_i32_176 : i32
    scf.if %434 {
      %c0_177 = arith.constant 0 : index
      %c0_178 = arith.constant 0 : index
      %435 = vector.load %arg8[%c0_177, %c0_178] : memref<8x32xf32, #tpu.memory_space<vmem>>, vector<8x32xf32>
      tpu.vector_store %arg8[%c0_177, %c0_178], %409 {strides = array<i32>} : memref<8x32xf32, #tpu.memory_space<vmem>>, vector<8x32xf32>,
    } else {
    }
    return
  }
  func.func @transform_0(%arg0: i32) -> (i32, i32) {
    %c0_i32 = arith.constant 0 : i32
    %c0_i32_0 = arith.constant 0 : i32
    %c0_i32_1 = arith.constant 0 : i32
    return %c0_i32, %c0_i32_0 : i32, i32
  }
  func.func @transform_1(%arg0: i32) -> (i32, i32) {
    %c0_i32 = arith.constant 0 : i32
    %c0_i32_0 = arith.constant 0 : i32
    %c0_i32_1 = arith.constant 0 : i32
    return %c0_i32, %c0_i32_0 : i32, i32
  }
  func.func @transform_2(%arg0: i32) -> (i32, i32) {
    %c0_i32 = arith.constant 0 : i32
    %c0_i32_0 = arith.constant 0 : i32
    %c0_i32_1 = arith.constant 0 : i32
    return %c0_i32, %c0_i32_0 : i32, i32
  }
  func.func @transform_3(%arg0: i32) -> (i32, i32) {
    %c0_i32 = arith.constant 0 : i32
    %c0_i32_0 = arith.constant 0 : i32
    %c0_i32_1 = arith.constant 0 : i32
    return %c0_i32, %c0_i32_0 : i32, i32
  }
  func.func @transform_4(%arg0: i32) -> (i32, i32) {
    %c0_i32 = arith.constant 0 : i32
    %c0_i32_0 = arith.constant 0 : i32
    %c0_i32_1 = arith.constant 0 : i32
    return %c0_i32, %c0_i32_0 : i32, i32
  }
  func.func @transform_5(%arg0: i32) -> (i32, i32) {
    %c0_i32 = arith.constant 0 : i32
    %c0_i32_0 = arith.constant 0 : i32
    %c0_i32_1 = arith.constant 0 : i32
    return %c0_i32, %c0_i32_0 : i32, i32
  }
  func.func @transform_6(%arg0: i32) -> (i32, i32, i32) {
    %c0_i32 = arith.constant 0 : i32
    %c0_i32_0 = arith.constant 0 : i32
    %c0_i32_1 = arith.constant 0 : i32
    return %arg0, %c0_i32, %c0_i32_0 : i32, i32, i32
  }
  func.func @transform_7(%arg0: i32) -> (i32, i32) {
    %c0_i32 = arith.constant 0 : i32
    %c0_i32_0 = arith.constant 0 : i32
    %c0_i32_1 = arith.constant 0 : i32
    return %c0_i32, %c0_i32_0 : i32, i32
  }
}

</mosaic_0001>

<bundles_post_ra>
// kernel: decoder_rnn_forward.1
= control target key start
LH: loop header
LB: loop body
LE: loop exit
PB: predicated region body
PF: predicated region fallthrough
CT: control target
= control target key end

     0   :  { %v6806_v3 = vmov 0.0   ;;  %vm4789_vm0 = vmmov 0   ;;  %vm32_vm1 = vcmask 261120   ;;  %v6805_v34 = vlaneseq  ;;  %s6795_s1 = inlined_call_operand.vmem [shape: f32[128,384], index: 1, kind: input, shape index: {}]   ;;  %s6796_s0 = inlined_call_operand.vmem [shape: f32[8,32], index: 0, kind: input, shape index: {}]   ;;  %s6797_s2 = inlined_call_operand.vmem [shape: f32[32,384], index: 2, kind: input, shape index: {}]   ;;  %s6798_s4 = inlined_call_operand.vmem [shape: f32[32,128], index: 4, kind: input, shape index: {}]   ;;  %s6799_s3 = inlined_call_operand.vmem [shape: f32[1,384], index: 3, kind: input, shape index: {}]   ;;  %s6800_s5 = inlined_call_operand.vmem [shape: f32[1,128], index: 5, kind: input, shape index: {}]   ;;  %s6801_s6 = inlined_call_operand.vmem [shape: f32[8,8,128], index: 6, kind: output, shape index: {0}]   ;;  %s6802_s7 = inlined_call_operand.vmem [shape: f32[8,32], index: 7, kind: output, shape index: {1}]  }
   0x1   :  { %v4834_v0 = vld [vmem:[%s6795_s1 + $0x170] sm:$0xff]  ;;  %v4839_v1 = vld [vmem:[%s6795_s1 + $0x168] sm:$0xff]  ;;  %v4844_v2 = vld [vmem:[%s6795_s1 + $0x158] sm:$0xff]  ;;  %152 = vmatprep.mubr.f32.mxu0 %v6806_v3  ;;  %4249 = vmatprep.subr.mxu1 %v6806_v3  ;;  %v6803_v50 = vmov 1.0  }
   0x2   :  { %88 = vmatprep.subr.mxu0 %v4834_v0  ;;  %v4852_v4 = vld [vmem:[%s6795_s1 + $0x150] sm:$0xff]  ;;  %4281 = vmatprep.mubr.msk.f32.mxu1 %vm4789_vm0, %v6806_v3  ;;  %v4860_v5 = vld [vmem:[%s6795_s1 + $0x140] sm:$0xff]  ;;  %v4866_v6 = vld [vmem:[%s6795_s1 + $0x138] sm:$0xff]  ;;  %v5070_v41 = vand.u32 127, %v6805_v34 }
   0x3   :  { %89 = vmatpush1.msra.mxu0 %v4839_v1  ;;  %v4872_v7 = vld [vmem:[%s6795_s1 + $0x128] sm:$0xff]  ;;  %v4878_v8 = vld [vmem:[%s6795_s1 + $0x120] sm:$0xff]  ;;  %v4884_v9 = vld [vmem:[%s6795_s1 + $0x110] sm:$0xff] }
   0x4   :  { %90 = vmatprep.subr.mxu0 %v4844_v2  ;;  %6873 = vst [vmem:[#allocation4_spill] sm:$0xff] %v4884_v9  ;;  %v4890_v10 = vld [vmem:[%s6795_s1 + $0x108] sm:$0xff]  ;;  %v4896_v11 = vld [vmem:[%s6795_s1 + $0xf8] sm:$0xff]  ;;  %v4902_v12 = vld [vmem:[%s6795_s1 + $0xf0] sm:$0xff]  ;;  %vm34_vm2 = vcmp.eq.s32.totalorder %v5070_v41, 0 }
   0x5   :  { %91 = vmatpush1.msra.mxu0 %v4852_v4  ;;  %6874 = vst [vmem:[#allocation5_spill] sm:$0xff] %v4890_v10  ;;  %6875 = vst [vmem:[#allocation6_spill] sm:$0xff] %v4896_v11  ;;  %v4908_v13 = vld [vmem:[%s6795_s1 + $0xe0] sm:$0xff]  ;;  %v4914_v14 = vld [vmem:[%s6795_s1 + $0xd8] sm:$0xff] }
   0x6   :  { %92 = vmatprep.subr.mxu0 %v4860_v5  ;;  %6876 = vst [vmem:[#allocation7_spill] sm:$0xff] %v4902_v12  ;;  %6877 = vst [vmem:[#allocation8_spill] sm:$0xff] %v4908_v13  ;;  %v4919_v15 = vld [vmem:[%s6795_s1 + $0x178] sm:$0xff]  ;;  %v4925_v16 = vld [vmem:[%s6795_s1 + $0xc8] sm:$0xff] }
   0x7   :  { %93 = vmatpush1.msra.mxu0 %v4866_v6  ;;  %6878 = vst [vmem:[#allocation9_spill] sm:$0xff] %v4914_v14  ;;  %6879 = vst [vmem:[#allocation10_spill] sm:$0xff] %v4925_v16  ;;  %4250 = vmatpush3.msra.mxu1 %v4919_v15  ;;  %v4931_v17 = vld [vmem:[%s6795_s1 + $0x160] sm:$0xff]  ;;  %v4943_v19 = vld [vmem:[%s6795_s1 + $0x148] sm:$0xff] }
   0x8   :  { %94 = vmatprep.subr.mxu0 %v4872_v7  ;;  %v4937_v18 = vld [vmem:[%s6795_s1 + $0xc0] sm:$0xff]  ;;  %4251 = vmatprep.subr.mxu1 %v6806_v3  ;;  %v4949_v20 = vld [vmem:[%s6795_s1 + $0xb0] sm:$0xff]  ;;  %v4959_v22 = vld [vmem:[%s6795_s1 + $0xa8] sm:$0xff] }
   0x9   :  { %95 = vmatpush1.msra.mxu0 %v4878_v8  ;;  %6880 = vst [vmem:[#allocation11_spill] sm:$0xff] %v4937_v18  ;;  %6881 = vst [vmem:[#allocation12_spill] sm:$0xff] %v4949_v20  ;;  %4252 = vmatpush3.msra.mxu1 %v4931_v17  ;;  %v31_v21 = vld [vmem:[%s6796_s0] sm:$0xff]  ;;  %v4965_v23 = vld [vmem:[%s6795_s1 + $0x130] sm:$0xff] }
   0xa   :  { %96 = vmatprep.subr.mxu0 %v4884_v9  ;;  %6882 = vst [vmem:[#allocation13_spill] sm:$0xff] %v4959_v22  ;;  %4253 = vmatprep.subr.mxu1 %v6806_v3  ;;  %33 = vst.msk [vmem:[#allocation2] sm:$0xff] %vm32_vm1, %v31_v21  ;;  %v4972_v24 = vld [vmem:[%s6795_s1 + $0x98] sm:$0xff]  ;;  %v4979_v25 = vld [vmem:[%s6795_s1 + $0x90] sm:$0xff] }
   0xb   :  { %97 = vmatpush1.msra.mxu0 %v4890_v10  ;;  %6883 = vst [vmem:[#allocation14_spill] sm:$0xff] %v4972_v24  ;;  %4254 = vmatpush3.msra.mxu1 %v4943_v19  ;;  %6884 = vst [vmem:[#allocation15_spill] sm:$0xff] %v4979_v25  ;;  %v4985_v26 = vld [vmem:[%s6795_s1 + $0x118] sm:$0xff]  ;;  %v4991_v27 = vld [vmem:[%s6795_s1 + $0x80] sm:$0xff] }
   0xc   :  { %98 = vmatprep.subr.mxu0 %v4896_v11  ;;  %4255 = vmatprep.subr.mxu1 %v6806_v3  ;;  %6885 = vst [vmem:[#allocation16_spill] sm:$0xff] %v4991_v27  ;;  %v4998_v28 = vld [vmem:[%s6795_s1 + $0x78] sm:$0xff]  ;;  %v5004_v29 = vld [vmem:[%s6795_s1 + $0x100] sm:$0xff]  ;;  %v5010_v30 = vld [vmem:[%s6795_s1 + $0x68] sm:$0xff] }
   0xd   :  { %99 = vmatpush1.msra.mxu0 %v4902_v12  ;;  %4256 = vmatpush3.msra.mxu1 %v4965_v23  ;;  %6886 = vst [vmem:[#allocation17_spill] sm:$0xff] %v4998_v28  ;;  %6887 = vst [vmem:[#allocation18_spill] sm:$0xff] %v5010_v30  ;;  %v5017_v31 = vld [vmem:[%s6795_s1 + $0x60] sm:$0xff]  ;;  %v5023_v32 = vld [vmem:[%s6795_s1 + $0xe8] sm:$0xff] }
   0xe   :  { %100 = vmatprep.subr.mxu0 %v4908_v13  ;;  %4257 = vmatprep.subr.mxu1 %v6806_v3  ;;  %6888 = vst [vmem:[#allocation19_spill] sm:$0xff] %v5017_v31  ;;  %v5029_v33 = vld [vmem:[%s6795_s1 + $0x50] sm:$0xff]  ;;  %v5036_v35 = vld [vmem:[%s6795_s1 + $0x48] sm:$0xff]  ;;  %v5048_v37 = vld [vmem:[%s6795_s1 + $0x38] sm:$0xff] }
   0xf   :  { %101 = vmatpush1.msra.mxu0 %v4914_v14  ;;  %4258 = vmatpush3.msra.mxu1 %v4985_v26  ;;  %6889 = vst [vmem:[#allocation20_spill] sm:$0xff] %v5029_v33  ;;  %6890 = vst [vmem:[#allocation21_spill] sm:$0xff] %v5036_v35  ;;  %v5042_v36 = vld [vmem:[%s6795_s1 + $0xd0] sm:$0xff]  ;;  %v5061_v39 = vld [vmem:[%s6795_s1 + $0xb8] sm:$0xff] }
  0x10   :  { %102 = vmatprep.subr.mxu0 %v4925_v16  ;;  %4259 = vmatprep.subr.mxu1 %v6806_v3  ;;  %6891 = vst [vmem:[#allocation22_spill] sm:$0xff] %v5048_v37  ;;  %v5055_v38 = vld [vmem:[%s6795_s1 + $0x30] sm:$0xff]  ;;  %v5067_v40 = vld [vmem:[%s6795_s1 + $0x20] sm:$0xff]  ;;  %v5077_v42 = vld [vmem:[%s6795_s1 + $0x18] sm:$0xff] }
  0x11   :  { %103 = vmatpush1.msra.mxu0 %v4937_v18  ;;  %4260 = vmatpush3.msra.mxu1 %v5004_v29  ;;  %6892 = vst [vmem:[#allocation23_spill] sm:$0xff] %v5055_v38  ;;  %6893 = vst [vmem:[#allocation24_spill] sm:$0xff] %v5067_v40  ;;  %v5083_v43 = vld [vmem:[%s6795_s1 + $0xa0] sm:$0xff]  ;;  %v5089_v44 = vld [vmem:[%s6795_s1 + $0x8] sm:$0xff] }
  0x12   :  { %104 = vmatprep.subr.mxu0 %v4949_v20  ;;  %4261 = vmatprep.subr.mxu1 %v6806_v3  ;;  %6894 = vst [vmem:[#allocation25_spill] sm:$0xff] %v5077_v42  ;;  %6895 = vst [vmem:[#allocation26_spill] sm:$0xff] %v5089_v44  ;;  %v5096_v45 = vld [vmem:[%s6795_s1] sm:$0xff]  ;;  %v5102_v46 = vld [vmem:[%s6795_s1 + $0x88] sm:$0xff] }
  0x13   :  { %105 = vmatpush1.msra.mxu0 %v4959_v22  ;;  %4262 = vmatpush3.msra.mxu1 %v5023_v32  ;;  %6896 = vst [vmem:[#allocation27_spill] sm:$0xff] %v5096_v45  ;;  %v5109_v47 = vld [vmem:[%s6797_s2 + $0x50] sm:$0xff]  ;;  %v5116_v48 = vld [vmem:[%s6797_s2 + $0x48] sm:$0xff]  ;;  %v5123_v49 = vld [vmem:[%s6797_s2 + $0x38] sm:$0xff] }
  0x14   :  { %106 = vmatprep.subr.mxu0 %v4972_v24  ;;  %4263 = vmatprep.subr.mxu1 %v6806_v3  ;;  %6897 = vst [vmem:[#allocation28_spill] sm:$0xff] %v5109_v47  ;;  %v5133_v51 = vld [vmem:[%s6797_s2 + $0x30] sm:$0xff]  ;;  %v5144_v53 = vld [vmem:[%s6797_s2 + $0x20] sm:$0xff]  ;;  %v5151_v54 = vld [vmem:[%s6797_s2 + $0x18] sm:$0xff] }
  0x15   :  { %107 = vmatpush1.msra.mxu0 %v4979_v25  ;;  %4264 = vmatpush3.msra.mxu1 %v5042_v36  ;;  %v5138_v52 = vld [vmem:[%s6795_s1 + $0x70] sm:$0xff]  ;;  %v5157_v55 = vld [vmem:[%s6795_s1 + $0x58] sm:$0xff]  ;;  %v5163_v56 = vld [vmem:[%s6797_s2 + $0x8] sm:$0xff] }
  0x16   :  { %108 = vmatprep.subr.mxu0 %v4991_v27  ;;  %4265 = vmatprep.subr.mxu1 %v6806_v3  ;;  %v5170_v57 = vld [vmem:[%s6797_s2] sm:$0xff]  ;;  %v5187_v60 = vld [vmem:[%s6795_s1 + $0x28] sm:$0xff]  ;;  %v5197_v61 = vld [vmem:[%s6795_s1 + $0x10] sm:$0xff] }
  0x17   :  { %109 = vmatpush1.msra.mxu0 %v4998_v28  ;;  %4266 = vmatpush3.msra.mxu1 %v5061_v39  ;;  %v5176_v58 = vld [vmem:[%s6795_s1 + $0x40] sm:$0xff]  ;;  %v5205_v62 = vld [vmem:[%s6797_s2 + $0x58] sm:$0xff]  ;;  %v5226_v21 = vld [vmem:[%s6797_s2 + $0x28] sm:$0xff] }
  0x18   :  { %110 = vmatprep.subr.mxu0 %v5010_v30  ;;  %4267 = vmatprep.subr.mxu1 %v6806_v3  ;;  %v5179_v59 = vld [vmem:[#allocation2] sm:$0xff]  ;;  %v5277_v34 = vld [vmem:[%s6798_s4 + $0x18] sm:$0xff] }
  0x19   :  { %111 = vmatpush1.msra.mxu0 %v5017_v31  ;;  %4268 = vmatpush3.msra.mxu1 %v5083_v43  ;;  %v5217_v63 = vld [vmem:[%s6797_s2 + $0x40] sm:$0xff] }
  0x1a   :  { %112 = vmatprep.subr.mxu0 %v5029_v33  ;;  %4269 = vmatprep.subr.mxu1 %v6806_v3 }
  0x1b   :  { %113 = vmatpush1.msra.mxu0 %v5036_v35  ;;  %4270 = vmatpush3.msra.mxu1 %v5102_v46 }
  0x1c   :  { %114 = vmatprep.subr.mxu0 %v5048_v37  ;;  %4271 = vmatprep.subr.mxu1 %v6806_v3 }
  0x1d   :  { %115 = vmatpush1.msra.mxu0 %v5055_v38  ;;  %4272 = vmatpush3.msra.mxu1 %v5138_v52 }
  0x1e   :  { %116 = vmatprep.subr.mxu0 %v5067_v40  ;;  %4273 = vmatprep.subr.mxu1 %v6806_v3 }
  0x1f   :  { %117 = vmatpush1.msra.mxu0 %v5077_v42  ;;  %4274 = vmatpush3.msra.mxu1 %v5157_v55 }
  0x20   :  { %118 = vmatprep.subr.mxu0 %v5089_v44  ;;  %4275 = vmatprep.subr.mxu1 %v6806_v3 }
  0x21   :  { %119 = vmatpush1.msra.mxu0 %v5096_v45  ;;  %4276 = vmatpush3.msra.mxu1 %v5176_v58 }
  0x22   :  { %4031 = vmatmul.mubr.msk.f32.vlgmr.msra.gmra.mxu0 %vm34_vm2, %v6803_v50  ;;  %286 = vmatprep.subr.mxu0 %v5109_v47 }
  0x23   :  { %287 = vmatpush1.msra.mxu0 %v5116_v48  ;;  %326 = vmatprep.mubr.f32.mxu0 %v6806_v3 }
  0x24   :  { %288 = vmatprep.subr.mxu0 %v5123_v49  ;;  %4277 = vmatprep.subr.mxu1 %v6806_v3 }
  0x25   :  { %289 = vmatpush1.msra.mxu0 %v5133_v51  ;;  %4278 = vmatpush3.msra.mxu1 %v5187_v60 }
  0x26   :  { %290 = vmatprep.subr.mxu0 %v5144_v53  ;;  %4279 = vmatprep.subr.mxu1 %v6806_v3 }
  0x27   :  { %291 = vmatpush1.msra.mxu0 %v5151_v54  ;;  %4280 = vmatpush3.msra.mxu1 %v5197_v61 }
  0x28   :  { %292 = vmatprep.subr.mxu0 %v5163_v56  ;;  %4284 = vmatprep.subr.mxu1 %v6806_v3 }
  0x29   :  { %293 = vmatpush1.msra.mxu0 %v5170_v57  ;;  %4282 = vmatmul.mubr.msk.f32.vlgmr.msra.gmra.mxu1 %vm34_vm2, %v6803_v50  ;;  %v5233_v50 = vld [vmem:[%s6797_s2 + $0x10] sm:$0xff] }
  0x2a   :  { %3954 = vmatmul.mubr.msk.f32.vlgmr.msra.gmra.mxu0 %vm32_vm1, %v5179_v59  ;;  %4295 = vmatprep.subr.mxu0 %v6806_v3 }
  0x2b   :  { %4303 = vmatprep.mubr.msk.f32.mxu0 %vm4789_vm0, %v6806_v3  ;;  %4285 = vmatpush3.msra.mxu1 %v5205_v62 }
  0x2c   :  { %4292 = vmatprep.mubr.msk.f32.mxu1 %vm4789_vm0, %v6806_v3  ;;  %4286 = vmatprep.subr.mxu1 %v6806_v3 }
  0x2d   :  { %4287 = vmatpush3.msra.mxu1 %v5217_v63  ;;  %4296 = vmatpush3.msra.mxu0 %v5277_v34 }
  0x2e   :  { %4288 = vmatprep.subr.mxu1 %v6806_v3 }
  0x2f   :  { %4289 = vmatpush3.msra.mxu1 %v5226_v21 }
  0x30   :  { %4290 = vmatprep.subr.mxu1 %v6806_v3 }
  0x31   :  { %4291 = vmatpush3.msra.mxu1 %v5233_v50 }
  0x32   :  { %4293 = vmatmul.mubr.msk.f32.vlgmr.msra.gmra.mxu1 %vm32_vm1, %v5179_v59  ;;  %578 = vmatprep.subr.mxu1 %v4834_v0 }
  0x33   :  { %579 = vmatpush1.msra.mxu1 %v4839_v1  ;;  %642 = vmatprep.mubr.f32.mxu1 %v6806_v3  ;;  %v5282_v3 = vld [vmem:[%s6798_s4 + $0x10] sm:$0xff] }
  0x34   :  { %580 = vmatprep.subr.mxu1 %v4844_v2 }
  0x35   :  { %581 = vmatpush1.msra.mxu1 %v4852_v4 }
  0x36   :  { %582 = vmatprep.subr.mxu1 %v4860_v5 }
  0x37   :  { %583 = vmatpush1.msra.mxu1 %v4866_v6 }
  0x38   :  { %584 = vmatprep.subr.mxu1 %v4872_v7 }
  0x39   :  { %585 = vmatpush1.msra.mxu1 %v4878_v8 }
  0x3a   :  { %586 = vmatprep.subr.mxu1 %v4884_v9 }
  0x3b   :  { %587 = vmatpush1.msra.mxu1 %v4890_v10 }
  0x3c   :  { %588 = vmatprep.subr.mxu1 %v4896_v11 }
  0x3d   :  { %589 = vmatpush1.msra.mxu1 %v4902_v12 }
  0x3e   :  { %590 = vmatprep.subr.mxu1 %v4908_v13 }
  0x3f   :  { %591 = vmatpush1.msra.mxu1 %v4914_v14 }
  0x40   :  { %592 = vmatprep.subr.mxu1 %v4925_v16 }
  0x41   :  { %593 = vmatpush1.msra.mxu1 %v4937_v18 }
  0x42   :  { %594 = vmatprep.subr.mxu1 %v4949_v20 }
  0x43   :  { %595 = vmatpush1.msra.mxu1 %v4959_v22 }
  0x44   :  { %596 = vmatprep.subr.mxu1 %v4972_v24 }
  0x45   :  { %597 = vmatpush1.msra.mxu1 %v4979_v25 }
  0x46   :  { %598 = vmatprep.subr.mxu1 %v4991_v27 }
  0x47   :  { %599 = vmatpush1.msra.mxu1 %v4998_v28 }
  0x48   :  { %600 = vmatprep.subr.mxu1 %v5010_v30 }
  0x49   :  { %601 = vmatpush1.msra.mxu1 %v5017_v31 }
  0x4a   :  { %602 = vmatprep.subr.mxu1 %v5029_v33 }
  0x4b   :  { %603 = vmatpush1.msra.mxu1 %v5036_v35  ;;  %v241_v35 = vld [vmem:[%s6799_s3] sm:$0x7] }
  0x4c   :  { %604 = vmatprep.subr.mxu1 %v5048_v37 }
  0x4d   :  { %605 = vmatpush1.msra.mxu1 %v5055_v38 }
  0x4e   :  { %606 = vmatprep.subr.mxu1 %v5067_v40  ;;  %v6898_v40 = vmov 0.0  }
  0x4f   :  { %607 = vmatpush1.msra.mxu1 %v5077_v42  ;;  %4297 = vmatprep.subr.mxu0 %v6898_v40 }
  0x50   :  { %608 = vmatprep.subr.mxu1 %v5089_v44  ;;  %4298 = vmatpush3.msra.mxu0 %v5282_v3  ;;  %v6899_v44 = vlaneseq }
  0x51   :  { %609 = vmatpush1.msra.mxu1 %v5096_v45  ;;  %v5289_v45 = vld [vmem:[%s6798_s4 + $0x8] sm:$0xff]  ;;  %4299 = vmatprep.subr.mxu0 %v6898_v40 }
  0x52   :  { %772 = vmatprep.subr.mxu1 %v5109_v47  ;;  %v5296_v47 = vld [vmem:[%s6798_s4] sm:$0xff]  ;;  %4300 = vmatpush3.msra.mxu0 %v5289_v45  ;;  %v244_v42 = vshrl.u32 %v6899_v44, 7 }
  0x53   :  { %4301 = vmatprep.subr.mxu0 %v6898_v40 }
  0x54   :  { %4302 = vmatpush3.msra.mxu0 %v5296_v47  ;;  %v5303_v38 = vsub.s32 0, %v244_v42  ;;  %v5309_v31 = vsub.s32 1, %v244_v42  ;;  %v5312_v9 = vsub.s32 2, %v244_v42 }
  0x55   :  { %4306 = vmatprep.subr.mxu0 %v6898_v40 }
  0x56   :  { %6900 = vst [vmem:[#allocation29_spill] sm:$0xff] %v5303_v38  ;;  %v246_v33 = vrot.slane %v241_v35, %v5303_v38  ;;  %6901 = vst [vmem:[#allocation30_spill] sm:$0xff] %v5309_v31  ;;  %v250_v25 = vrot.slane %v241_v35, %v5309_v31 }
  0xe2   :  { %v154_v37 = vpop.f32.mrf.mxu0 }
  0xe4   :  { %v156_v30 = vpop.f32.mrf.mxu0 }
  0xe9   :  { %v225_v20 = vpop.f32.mrf.mxu1 }
  0xea   :  { %v328_v28 = vpop.f32.mrf.mxu0 }
  0xeb   :  { %v329_v27 = vadd.f32 %v328_v28, %v246_v33  ;;  %v4283_v16 = vpop.f32.mrf.mxu1  ;;  %v254_v28 = vrot.slane %v241_v35, %v5312_v9 }
  0xec   :  { %v330_v24 = vpop.f32.mrf.mxu0 }
  0xed   :  { %v403_v22 = vadd.f32 %v329_v27, %v154_v37  ;;  %v331_v18 = vadd.f32 %v330_v24, %v250_v25 }
  0xef   :  { %v3956_v44 = vmul.f32 -1.442695, %v403_v22  ;;  %v410_v14 = vadd.f32 %v331_v18, %v156_v30 }
  0xf1   :  { %4708 = vpow2.f32 %v3956_v44  ;;  %v3957_v12 = vmul.f32 -1.442695, %v410_v14 }
  0xf2   :  { %v399_v13 = vpop.f32.mrf.mxu1 }
  0xf3   :  { %4710 = vpow2.f32 %v3957_v12  ;;  %v400_v27 = vadd.f32 %v399_v13, %v254_v28 }
  0xf4   :  { %v4294_v11 = vpop.f32.mrf.mxu1 }
  0xfe   :  { %v4709_v38 = vpop.eup %4708 }
  0xff   :  { %v407_v10 = vadd.f32 1.0, %v4709_v38 }
 0x100   :  { %v4711_v33 = vpop.eup %4710 }
 0x101   :  { %4712 = vrcp.f32 %v407_v10  ;;  %v414_v31 = vadd.f32 1.0, %v4711_v33  ;;  %v5357_v10 = vld [vmem:[%s6800_s5] ss:$0 sm:$0xff] }
 0x103   :  { %4714 = vrcp.f32 %v414_v31 }
 0x10e   :  { %v4713_v37 = vpop.eup %4712 }
 0x10f   :  { %v417_v22 = vmul.f32 %v4713_v37, %v400_v27 }
 0x110   :  { %v4715_v18 = vpop.eup %4714 }
 0x111   :  { %v418_v16 = vadd.f32 %v417_v22, %v225_v20  ;;  %v420_v24 = vsub.f32 1.0, %v4715_v18  ;;  %v422_v12 = vmul.f32 %v4715_v18, %v5179_v59 }
 0x113   :  { %4716 = vtanh.f32 %v418_v16 }
 0x120   :  { %v4717_v14 = vpop.eup %4716 }
 0x121   :  { %v421_v11 = vmul.f32 %v4717_v14, %v420_v24  ;;  %v6902_v24 = vmov 1.0   ;;  %v6909_v14 = vld [vmem:[#allocation10_spill] sm:$0xff] }
 0x123   :  { %v5316_v25 = vadd.f32 %v422_v12, %v421_v11  ;;  %v6911_v11 = vld [vmem:[#allocation12_spill] sm:$0xff]  ;;  %v6913_v12 = vld [vmem:[#allocation14_spill] sm:$0xff] }
 0x125   :  { %4304 = vmatmul.mubr.msk.f32.vlgmr.msra.gmra.mxu0 %vm32_vm1, %v5316_v25 }
 0x126   :  { %4307 = vmatpush3.msra.mxu0 %v4919_v15  ;;  %4338 = vmatprep.mubr.msk.f32.mxu0 %vm4789_vm0, %v6898_v40 }
 0x127   :  { %4308 = vmatprep.subr.mxu0 %v6898_v40 }
 0x128   :  { %4309 = vmatpush3.msra.mxu0 %v4931_v17 }
 0x129   :  { %4310 = vmatprep.subr.mxu0 %v6898_v40 }
 0x12a   :  { %4311 = vmatpush3.msra.mxu0 %v4943_v19 }
 0x12b   :  { %4312 = vmatprep.subr.mxu0 %v6898_v40 }
 0x12c   :  { %4313 = vmatpush3.msra.mxu0 %v4965_v23 }
 0x12d   :  { %4314 = vmatprep.subr.mxu0 %v6898_v40 }
 0x12e   :  { %4315 = vmatpush3.msra.mxu0 %v4985_v26 }
 0x12f   :  { %4316 = vmatprep.subr.mxu0 %v6898_v40 }
 0x130   :  { %4317 = vmatpush3.msra.mxu0 %v5004_v29 }
 0x131   :  { %4318 = vmatprep.subr.mxu0 %v6898_v40 }
 0x132   :  { %4319 = vmatpush3.msra.mxu0 %v5023_v32 }
 0x133   :  { %4320 = vmatprep.subr.mxu0 %v6898_v40 }
 0x134   :  { %4321 = vmatpush3.msra.mxu0 %v5042_v36 }
 0x135   :  { %4322 = vmatprep.subr.mxu0 %v6898_v40 }
 0x136   :  { %4323 = vmatpush3.msra.mxu0 %v5061_v39 }
 0x137   :  { %4324 = vmatprep.subr.mxu0 %v6898_v40 }
 0x138   :  { %4325 = vmatpush3.msra.mxu0 %v5083_v43 }
 0x139   :  { %4326 = vmatprep.subr.mxu0 %v6898_v40 }
 0x13a   :  { %4327 = vmatpush3.msra.mxu0 %v5102_v46 }
 0x13b   :  { %4328 = vmatprep.subr.mxu0 %v6898_v40 }
 0x13c   :  { %4329 = vmatpush3.msra.mxu0 %v5138_v52 }
 0x13d   :  { %4330 = vmatprep.subr.mxu0 %v6898_v40 }
 0x13e   :  { %4331 = vmatpush3.msra.mxu0 %v5157_v55 }
 0x13f   :  { %4332 = vmatprep.subr.mxu0 %v6898_v40 }
 0x140   :  { %4333 = vmatpush3.msra.mxu0 %v5176_v58 }
 0x141   :  { %4334 = vmatprep.subr.mxu0 %v6898_v40 }
 0x142   :  { %4335 = vmatpush3.msra.mxu0 %v5187_v60 }
 0x143   :  { %4336 = vmatprep.subr.mxu0 %v6898_v40 }
 0x144   :  { %4337 = vmatpush3.msra.mxu0 %v5197_v61 }
 0x145   :  { %4341 = vmatprep.subr.mxu0 %v6898_v40 }
 0x1e5   :  { %v504_v13 = vpop.f32.mrf.mxu0 }
 0x1e6   :  { %v505_v20 = vadd.f32 %v5357_v10, %v504_v13  ;;  %v6914_v13 = vld [vmem:[#allocation15_spill] sm:$0xff] }
 0x1e7   :  { %v4305_v30 = vpop.f32.mrf.mxu0 }
 0x1e8   :  { %508 = vst [vmem:[%s6801_s6] sm:$0xff] %v505_v20  ;;  %509 = vmax.xlane.f32.xlu0 %v505_v20  ;;  %v6916_v30 = vld [vmem:[#allocation17_spill] sm:$0xff] }
 0x271   :  { %v510_v31 = vpop.xlane.xlu0 %509 }
 0x272   :  { %vm511_vm3 = vcmp.ge.f32.partialorder %v505_v20, %v510_v31  ;;  %v6915_v20 = vld [vmem:[#allocation16_spill] sm:$0xff]  ;;  %v6917_v31 = vld [vmem:[#allocation18_spill] sm:$0xff] }
 0x273   :  { %v512_v35 = vsel %vm511_vm3, %v5070_v41, 128 }
 0x274   :  { %v514_v38 = vshra.s32 %v512_v35, 16  ;;  %v513_v59 = vand.u32 65535, %v512_v35  ;;  %v6918_v35 = vld [vmem:[#allocation19_spill] sm:$0xff] }
 0x276   :  { %v516_v42 = vcvt.s32.f32 %v514_v38  ;;  %v515_v28 = vcvt.s32.f32 %v513_v59  ;;  %v6919_v38 = vld [vmem:[#allocation20_spill] sm:$0xff]  ;;  %v6921_v59 = vld [vmem:[#allocation22_spill] sm:$0xff] }
 0x278   :  { %517 = vmin.xlane.f32.xlu0 %v516_v42 }
 0x301   :  { %v518_v44 = vpop.xlane.xlu0 %517 }
 0x302   :  { %vm519_vm4 = vcmp.eq.f32.partialorder %v516_v42, %v518_v44  ;;  %v524_v27 = vcvt.f32.s32 %v518_v44  ;;  %v6920_v42 = vld [vmem:[#allocation21_spill] sm:$0xff]  ;;  %v6922_v44 = vld [vmem:[#allocation23_spill] sm:$0xff] }
 0x303   :  { %v520_v33 = vsel %vm519_vm4, %v515_v28, inf  ;;  %v6923_v28 = vld [vmem:[#allocation24_spill] sm:$0xff] }
 0x304   :  { %521 = vmin.xlane.f32.xlu1 %v520_v33  ;;  %v525_v22 = vshll.u32 %v524_v27, 16  ;;  %v6924_v33 = vld [vmem:[#allocation25_spill] sm:$0xff]  ;;  %v6925_v27 = vld [vmem:[#allocation26_spill] sm:$0xff] }
 0x38d   :  { %v522_v37 = vpop.xlane.xlu1 %521 }
 0x38e   :  { %v523_v16 = vcvt.f32.s32 %v522_v37  ;;  %v6926_v37 = vld [vmem:[#allocation27_spill] sm:$0xff] }
 0x390   :  { %v526_v18 = vadd.s32 %v525_v22, %v523_v16  ;;  %v6927_v22 = vld [vmem:[#allocation28_spill] sm:$0xff] }
 0x392   :  { %vm527_vm5 = vcmp.eq.s32.totalorder %v5070_v41, %v526_v18 }
 0x393   :  { %3961 = vmatmul.mubr.msk.f32.vlgmr.msra.gmra.mxu1 %vm527_vm5, %v6902_v24  ;;  %4339 = vmatmul.mubr.msk.f32.vlgmr.msra.gmra.mxu0 %vm527_vm5, %v6902_v24 }
 0x394   :  { %773 = vmatpush1.msra.mxu1 %v5116_v48  ;;  %4342 = vmatpush3.msra.mxu0 %v5205_v62 }
 0x395   :  { %774 = vmatprep.subr.mxu1 %v5123_v49  ;;  %4343 = vmatprep.subr.mxu0 %v6898_v40 }
 0x396   :  { %775 = vmatpush1.msra.mxu1 %v5133_v51  ;;  %4344 = vmatpush3.msra.mxu0 %v5217_v63 }
 0x397   :  { %776 = vmatprep.subr.mxu1 %v5144_v53  ;;  %4345 = vmatprep.subr.mxu0 %v6898_v40 }
 0x398   :  { %777 = vmatpush1.msra.mxu1 %v5151_v54  ;;  %4346 = vmatpush3.msra.mxu0 %v5226_v21 }
 0x399   :  { %778 = vmatprep.subr.mxu1 %v5163_v56  ;;  %4347 = vmatprep.subr.mxu0 %v6898_v40 }
 0x39a   :  { %779 = vmatpush1.msra.mxu1 %v5170_v57  ;;  %812 = vmatprep.mubr.f32.mxu1 %v6898_v40 }
 0x39b   :  { %4348 = vmatpush3.msra.mxu0 %v5233_v50  ;;  %4349 = vmatprep.mubr.msk.f32.mxu0 %vm4789_vm0, %v6898_v40 }
 0x39c   :  { %3963 = vmatmul.mubr.msk.f32.vlgmr.msra.gmra.mxu1 %vm32_vm1, %v5316_v25  ;;  %4350 = vmatmul.mubr.msk.f32.vlgmr.msra.gmra.mxu0 %vm32_vm1, %v5316_v25 }
 0x39d   :  { %4352 = vmatprep.subr.mxu1 %v6898_v40  ;;  %4360 = vmatprep.mubr.msk.f32.mxu1 %vm4789_vm0, %v6898_v40 }
 0x39e   :  { %4353 = vmatpush3.msra.mxu1 %v5277_v34  ;;  %1065 = vmatprep.subr.mxu0 %v4834_v0  ;;  %v6903_v0 = vld [vmem:[#allocation4_spill] sm:$0xff] }
 0x39f   :  { %4354 = vmatprep.subr.mxu1 %v6898_v40  ;;  %1066 = vmatpush1.msra.mxu0 %v4839_v1  ;;  %v6904_v1 = vld [vmem:[#allocation5_spill] sm:$0xff] }
 0x3a0   :  { %4355 = vmatpush3.msra.mxu1 %v5282_v3  ;;  %1067 = vmatprep.subr.mxu0 %v4844_v2  ;;  %v6905_v2 = vld [vmem:[#allocation6_spill] sm:$0xff] }
 0x3a1   :  { %4356 = vmatprep.subr.mxu1 %v6898_v40  ;;  %1068 = vmatpush1.msra.mxu0 %v4852_v4  ;;  %v6906_v4 = vld [vmem:[#allocation7_spill] sm:$0xff] }
 0x3a2   :  { %4357 = vmatpush3.msra.mxu1 %v5289_v45  ;;  %1069 = vmatprep.subr.mxu0 %v4860_v5  ;;  %v6907_v5 = vld [vmem:[#allocation8_spill] sm:$0xff] }
 0x3a3   :  { %4358 = vmatprep.subr.mxu1 %v6898_v40  ;;  %1070 = vmatpush1.msra.mxu0 %v4866_v6  ;;  %v6908_v6 = vld [vmem:[#allocation9_spill] sm:$0xff] }
 0x3a4   :  { %4359 = vmatpush3.msra.mxu1 %v5296_v47  ;;  %1071 = vmatprep.subr.mxu0 %v4872_v7  ;;  %v6910_v7 = vld [vmem:[#allocation11_spill] sm:$0xff] }
 0x3a5   :  { %4363 = vmatprep.subr.mxu1 %v6898_v40  ;;  %1072 = vmatpush1.msra.mxu0 %v4878_v8  ;;  %v6912_v8 = vld [vmem:[#allocation13_spill] sm:$0xff] }
 0x3a6   :  { %1073 = vmatprep.subr.mxu0 %v6903_v0  ;;  %1129 = vmatprep.mubr.f32.mxu0 %v6898_v40 }
 0x3a7   :  { %1074 = vmatpush1.msra.mxu0 %v6904_v1  ;;  %v731_v1 = vld [vmem:[%s6799_s3] sm:$0x7] }
 0x3a8   :  { %1075 = vmatprep.subr.mxu0 %v6905_v2  ;;  %v6928_v2 = vld [vmem:[#allocation29_spill] sm:$0xff] }
 0x3a9   :  { %1076 = vmatpush1.msra.mxu0 %v6906_v4  ;;  %v736_v4 = vrot.slane %v731_v1, %v6928_v2 }
 0x3aa   :  { %1077 = vmatprep.subr.mxu0 %v6907_v5 }
 0x3ab   :  { %1078 = vmatpush1.msra.mxu0 %v6908_v6 }
 0x3ac   :  { %1079 = vmatprep.subr.mxu0 %v6909_v14 }
 0x3ad   :  { %1080 = vmatpush1.msra.mxu0 %v6910_v7 }
 0x3ae   :  { %1081 = vmatprep.subr.mxu0 %v6911_v11  ;;  %v6929_v11 = vld [vmem:[#allocation30_spill] sm:$0xff] }
 0x3af   :  { %1082 = vmatpush1.msra.mxu0 %v6912_v8  ;;  %v740_v8 = vrot.slane %v731_v1, %v6929_v11 }
 0x3b0   :  { %1083 = vmatprep.subr.mxu0 %v6913_v12 }
 0x3b1   :  { %1084 = vmatpush1.msra.mxu0 %v6914_v13 }
 0x3b2   :  { %1085 = vmatprep.subr.mxu0 %v6915_v20 }
 0x3b3   :  { %1086 = vmatpush1.msra.mxu0 %v6916_v30 }
 0x3b4   :  { %1087 = vmatprep.subr.mxu0 %v6917_v31 }
 0x3b5   :  { %1088 = vmatpush1.msra.mxu0 %v6918_v35 }
 0x3b6   :  { %1089 = vmatprep.subr.mxu0 %v6919_v38 }
 0x3b7   :  { %1090 = vmatpush1.msra.mxu0 %v6920_v42 }
 0x3b8   :  { %1091 = vmatprep.subr.mxu0 %v6921_v59 }
 0x3b9   :  { %1092 = vmatpush1.msra.mxu0 %v6922_v44 }
 0x3ba   :  { %1093 = vmatprep.subr.mxu0 %v6923_v28  ;;  %v744_v28 = vrot.slane %v731_v1, %v5312_v9 }
 0x3bb   :  { %1094 = vmatpush1.msra.mxu0 %v6924_v33 }
 0x3bc   :  { %1095 = vmatprep.subr.mxu0 %v6925_v27 }
 0x3bd   :  { %1096 = vmatpush1.msra.mxu0 %v6926_v37 }
 0x3be   :  { %1259 = vmatprep.subr.mxu0 %v6927_v22 }
 0x453   :  { %v715_v16 = vpop.f32.mrf.mxu0  ;;  %v644_v0 = vpop.f32.mrf.mxu1 }
 0x455   :  { %v4340_v18 = vpop.f32.mrf.mxu0  ;;  %v646_v5 = vpop.f32.mrf.mxu1 }
 0x45c   :  { %v814_v6 = vpop.f32.mrf.mxu1  ;;  %v885_v14 = vpop.f32.mrf.mxu0 }
 0x45d   :  { %v815_v7 = vadd.f32 %v814_v6, %v736_v4  ;;  %v886_v27 = vadd.f32 %v885_v14, %v744_v28 }
 0x45e   :  { %v816_v12 = vpop.f32.mrf.mxu1  ;;  %v4351_v13 = vpop.f32.mrf.mxu0 }
 0x45f   :  { %v889_v20 = vadd.f32 %v815_v7, %v644_v0  ;;  %v817_v31 = vadd.f32 %v816_v12, %v740_v8 }
 0x461   :  { %v3965_v30 = vmul.f32 -1.442695, %v889_v20  ;;  %v896_v35 = vadd.f32 %v817_v31, %v646_v5 }
 0x463   :  { %4718 = vpow2.f32 %v3965_v30  ;;  %v3966_v38 = vmul.f32 -1.442695, %v896_v35 }
 0x465   :  { %4720 = vpow2.f32 %v3966_v38 }
 0x470   :  { %v4719_v42 = vpop.eup %4718 }
 0x471   :  { %v893_v59 = vadd.f32 1.0, %v4719_v42 }
 0x472   :  { %v4721_v44 = vpop.eup %4720 }
 0x473   :  { %4722 = vrcp.f32 %v893_v59  ;;  %v900_v33 = vadd.f32 1.0, %v4721_v44 }
 0x475   :  { %4724 = vrcp.f32 %v900_v33 }
 0x480   :  { %v4723_v37 = vpop.eup %4722 }
 0x481   :  { %v903_v22 = vmul.f32 %v4723_v37, %v886_v27 }
 0x482   :  { %v4725_v0 = vpop.eup %4724 }
 0x483   :  { %v904_v18 = vadd.f32 %v903_v22, %v715_v16  ;;  %v906_v4 = vsub.f32 1.0, %v4725_v0  ;;  %v908_v5 = vmul.f32 %v4725_v0, %v5316_v25 }
 0x485   :  { %4726 = vtanh.f32 %v904_v18 }
 0x492   :  { %v4727_v6 = vpop.eup %4726 }
 0x493   :  { %v907_v7 = vmul.f32 %v4727_v6, %v906_v4 }
 0x495   :  { %v5440_v8 = vadd.f32 %v908_v5, %v907_v7  ;;  %v5551_v5 = vld [vmem:[%s6795_s1 + $0x168] sm:$0xff] }
 0x497   :  { %4361 = vmatmul.mubr.msk.f32.vlgmr.msra.gmra.mxu1 %vm32_vm1, %v5440_v8 }
 0x498   :  { %4364 = vmatpush3.msra.mxu1 %v4919_v15  ;;  %4395 = vmatprep.mubr.msk.f32.mxu1 %vm4789_vm0, %v6898_v40 }
 0x499   :  { %4365 = vmatprep.subr.mxu1 %v6898_v40 }
 0x49a   :  { %4366 = vmatpush3.msra.mxu1 %v4931_v17 }
 0x49b   :  { %4367 = vmatprep.subr.mxu1 %v6898_v40 }
 0x49c   :  { %4368 = vmatpush3.msra.mxu1 %v4943_v19 }
 0x49d   :  { %4369 = vmatprep.subr.mxu1 %v6898_v40 }
 0x49e   :  { %4370 = vmatpush3.msra.mxu1 %v4965_v23 }
 0x49f   :  { %4371 = vmatprep.subr.mxu1 %v6898_v40 }
 0x4a0   :  { %4372 = vmatpush3.msra.mxu1 %v4985_v26 }
 0x4a1   :  { %4373 = vmatprep.subr.mxu1 %v6898_v40 }
 0x4a2   :  { %4374 = vmatpush3.msra.mxu1 %v5004_v29 }
 0x4a3   :  { %4375 = vmatprep.subr.mxu1 %v6898_v40 }
 0x4a4   :  { %4376 = vmatpush3.msra.mxu1 %v5023_v32 }
 0x4a5   :  { %4377 = vmatprep.subr.mxu1 %v6898_v40 }
 0x4a6   :  { %4378 = vmatpush3.msra.mxu1 %v5042_v36 }
 0x4a7   :  { %4379 = vmatprep.subr.mxu1 %v6898_v40 }
 0x4a8   :  { %4380 = vmatpush3.msra.mxu1 %v5061_v39 }
 0x4a9   :  { %4381 = vmatprep.subr.mxu1 %v6898_v40 }
 0x4aa   :  { %4382 = vmatpush3.msra.mxu1 %v5083_v43 }
 0x4ab   :  { %4383 = vmatprep.subr.mxu1 %v6898_v40 }
 0x4ac   :  { %4384 = vmatpush3.msra.mxu1 %v5102_v46 }
 0x4ad   :  { %4385 = vmatprep.subr.mxu1 %v6898_v40 }
 0x4ae   :  { %4386 = vmatpush3.msra.mxu1 %v5138_v52 }
 0x4af   :  { %4387 = vmatprep.subr.mxu1 %v6898_v40 }
 0x4b0   :  { %4388 = vmatpush3.msra.mxu1 %v5157_v55 }
 0x4b1   :  { %4389 = vmatprep.subr.mxu1 %v6898_v40 }
 0x4b2   :  { %4390 = vmatpush3.msra.mxu1 %v5176_v58 }
 0x4b3   :  { %4391 = vmatprep.subr.mxu1 %v6898_v40 }
 0x4b4   :  { %4392 = vmatpush3.msra.mxu1 %v5187_v60 }
 0x4b5   :  { %4393 = vmatprep.subr.mxu1 %v6898_v40 }
 0x4b6   :  { %4394 = vmatpush3.msra.mxu1 %v5197_v61 }
 0x4b7   :  { %4398 = vmatprep.subr.mxu1 %v6898_v40 }
 0x557   :  { %v990_v15 = vpop.f32.mrf.mxu1 }
 0x558   :  { %v991_v17 = vadd.f32 %v5357_v10, %v990_v15  ;;  %v5563_v15 = vld [vmem:[%s6795_s1 + $0x158] sm:$0xff] }
 0x559   :  { %v4362_v19 = vpop.f32.mrf.mxu1 }
 0x55a   :  { %3969 = vst [vmem:[%s6801_s6 + $0x8] sm:$0xff] %v991_v17  ;;  %996 = vmax.xlane.f32.xlu1 %v991_v17  ;;  %v5573_v19 = vld [vmem:[%s6795_s1 + $0x160] sm:$0xff] }
 0x5e3   :  { %v997_v23 = vpop.xlane.xlu1 %996 }
 0x5e4   :  { %vm998_vm6 = vcmp.ge.f32.partialorder %v991_v17, %v997_v23  ;;  %v5568_v17 = vld [vmem:[%s6795_s1 + $0x150] sm:$0xff]  ;;  %v5580_v23 = vld [vmem:[%s6795_s1 + $0x140] sm:$0xff] }
 0x5e5   :  { %v999_v26 = vsel %vm998_vm6, %v5070_v41, 128 }
 0x5e6   :  { %v1001_v29 = vshra.s32 %v999_v26, 16  ;;  %v1000_v36 = vand.u32 65535, %v999_v26  ;;  %v5585_v26 = vld [vmem:[%s6795_s1 + $0x148] sm:$0xff] }
 0x5e8   :  { %v1003_v32 = vcvt.s32.f32 %v1001_v29  ;;  %v1002_v43 = vcvt.s32.f32 %v1000_v36  ;;  %v5592_v29 = vld [vmem:[%s6795_s1 + $0x138] sm:$0xff]  ;;  %v5604_v36 = vld [vmem:[%s6795_s1 + $0x130] sm:$0xff] }
 0x5ea   :  { %1004 = vmin.xlane.f32.xlu0 %v1003_v32 }
 0x673   :  { %v1005_v39 = vpop.xlane.xlu0 %1004 }
 0x674   :  { %vm1006_vm7 = vcmp.eq.f32.partialorder %v1003_v32, %v1005_v39  ;;  %v1011_v52 = vcvt.f32.s32 %v1005_v39  ;;  %v5599_v32 = vld [vmem:[%s6795_s1 + $0x128] sm:$0xff]  ;;  %v5611_v39 = vld [vmem:[%s6795_s1 + $0x120] sm:$0xff] }
 0x675   :  { %v1007_v46 = vsel %vm1006_vm7, %v1002_v43, inf  ;;  %v5618_v43 = vld [vmem:[%s6795_s1 + $0x110] sm:$0xff] }
 0x676   :  { %1008 = vmin.xlane.f32.xlu1 %v1007_v46  ;;  %v1012_v58 = vshll.u32 %v1011_v52, 16  ;;  %6930 = vst [vmem:[#allocation4_spill] sm:$0xff] %v5618_v43  ;;  %v5623_v46 = vld [vmem:[%s6795_s1 + $0x118] sm:$0xff]  ;;  %v5630_v52 = vld [vmem:[%s6795_s1 + $0x108] sm:$0xff] }
 0x677   :  { %6931 = vst [vmem:[#allocation5_spill] sm:$0xff] %v5630_v52 }
 0x6ff   :  { %v1009_v55 = vpop.xlane.xlu1 %1008 }
 0x700   :  { %v1010_v60 = vcvt.f32.s32 %v1009_v55  ;;  %v5637_v55 = vld [vmem:[%s6795_s1 + $0xf8] sm:$0xff] }
 0x701   :  { %6932 = vst [vmem:[#allocation6_spill] sm:$0xff] %v5637_v55 }
 0x702   :  { %v1013_v61 = vadd.s32 %v1012_v58, %v1010_v60  ;;  %v5642_v58 = vld [vmem:[%s6795_s1 + $0x100] sm:$0xff]  ;;  %v5649_v60 = vld [vmem:[%s6795_s1 + $0xf0] sm:$0xff] }
 0x703   :  { %6933 = vst [vmem:[#allocation7_spill] sm:$0xff] %v5649_v60 }
 0x704   :  { %vm1014_vm8 = vcmp.eq.s32.totalorder %v5070_v41, %v1013_v61  ;;  %v5656_v61 = vld [vmem:[%s6795_s1 + $0xe0] sm:$0xff] }
 0x705   :  { %3971 = vmatmul.mubr.msk.f32.vlgmr.msra.gmra.mxu0 %vm1014_vm8, %v6902_v24  ;;  %4396 = vmatmul.mubr.msk.f32.vlgmr.msra.gmra.mxu1 %vm1014_vm8, %v6902_v24  ;;  %6934 = vst [vmem:[#allocation8_spill] sm:$0xff] %v5656_v61 }
 0x706   :  { %1260 = vmatpush1.msra.mxu0 %v5116_v48  ;;  %4399 = vmatpush3.msra.mxu1 %v5205_v62 }
 0x707   :  { %1261 = vmatprep.subr.mxu0 %v5123_v49  ;;  %4400 = vmatprep.subr.mxu1 %v6898_v40 }
 0x708   :  { %1262 = vmatpush1.msra.mxu0 %v5133_v51  ;;  %4401 = vmatpush3.msra.mxu1 %v5217_v63 }
 0x709   :  { %1263 = vmatprep.subr.mxu0 %v5144_v53  ;;  %4402 = vmatprep.subr.mxu1 %v6898_v40 }
 0x70a   :  { %1264 = vmatpush1.msra.mxu0 %v5151_v54  ;;  %4403 = vmatpush3.msra.mxu1 %v5226_v21 }
 0x70b   :  { %1265 = vmatprep.subr.mxu0 %v5163_v56  ;;  %4404 = vmatprep.subr.mxu1 %v6898_v40 }
 0x70c   :  { %1266 = vmatpush1.msra.mxu0 %v5170_v57  ;;  %1299 = vmatprep.mubr.f32.mxu0 %v6898_v40 }
 0x70d   :  { %4405 = vmatpush3.msra.mxu1 %v5233_v50  ;;  %4406 = vmatprep.mubr.msk.f32.mxu1 %vm4789_vm0, %v6898_v40 }
 0x70e   :  { %3973 = vmatmul.mubr.msk.f32.vlgmr.msra.gmra.mxu0 %vm32_vm1, %v5440_v8  ;;  %4407 = vmatmul.mubr.msk.f32.vlgmr.msra.gmra.mxu1 %vm32_vm1, %v5440_v8 }
 0x70f   :  { %4409 = vmatprep.subr.mxu0 %v6898_v40  ;;  %4417 = vmatprep.mubr.msk.f32.mxu0 %vm4789_vm0, %v6898_v40 }
 0x710   :  { %4410 = vmatpush3.msra.mxu0 %v5277_v34  ;;  %1616 = vmatprep.mubr.f32.mxu1 %v6898_v40  ;;  %v1218_v34 = vld [vmem:[%s6799_s3] sm:$0x7] }
 0x711   :  { %4411 = vmatprep.subr.mxu0 %v6898_v40  ;;  %v1223_v51 = vrot.slane %v1218_v34, %v6928_v2  ;;  %v1231_v13 = vrot.slane %v1218_v34, %v5312_v9 }
 0x712   :  { %4412 = vmatpush3.msra.mxu0 %v5282_v3 }
 0x713   :  { %4413 = vmatprep.subr.mxu0 %v6898_v40 }
 0x714   :  { %4414 = vmatpush3.msra.mxu0 %v5289_v45  ;;  %v1227_v45 = vrot.slane %v1218_v34, %v6929_v11  ;;  %v5680_v34 = vld [vmem:[%s6795_s1 + $0xd0] sm:$0xff] }
 0x715   :  { %4415 = vmatprep.subr.mxu0 %v6898_v40 }
 0x716   :  { %4416 = vmatpush3.msra.mxu0 %v5296_v47 }
 0x717   :  { %4420 = vmatprep.subr.mxu0 %v6898_v40 }
 0x7c5   :  { %v1202_v48 = vpop.f32.mrf.mxu1  ;;  %v1131_v50 = vpop.f32.mrf.mxu0 }
 0x7c7   :  { %v4397_v49 = vpop.f32.mrf.mxu1  ;;  %v1133_v3 = vpop.f32.mrf.mxu0 }
 0x7c8   :  { %v5668_v49 = vld [vmem:[%s6795_s1 + $0xd8] sm:$0xff] }
 0x7c9   :  { %6935 = vst [vmem:[#allocation9_spill] sm:$0xff] %v5668_v49 }
 0x7ce   :  { %v1301_v53 = vpop.f32.mrf.mxu0  ;;  %v1372_v54 = vpop.f32.mrf.mxu1 }
 0x7cf   :  { %v1302_v56 = vadd.f32 %v1301_v53, %v1223_v51  ;;  %v1373_v30 = vadd.f32 %v1372_v54, %v1231_v13  ;;  %v5687_v51 = vld [vmem:[%s6795_s1 + $0xc0] sm:$0xff]  ;;  %v5699_v53 = vld [vmem:[%s6795_s1 + $0xb8] sm:$0xff]  ;;  %v5706_v54 = vld [vmem:[%s6795_s1 + $0xa8] sm:$0xff] }
 0x7d0   :  { %v1303_v57 = vpop.f32.mrf.mxu0  ;;  %v4408_v62 = vpop.f32.mrf.mxu1  ;;  %6937 = vst [vmem:[#allocation11_spill] sm:$0xff] %v5687_v51  ;;  %6939 = vst [vmem:[#allocation13_spill] sm:$0xff] %v5706_v54  ;;  %v5789_v13 = vld [vmem:[%s6795_s1 + $0x38] sm:$0xff] }
 0x7d1   :  { %v1376_v47 = vadd.f32 %v1302_v56, %v1131_v50  ;;  %v1304_v21 = vadd.f32 %v1303_v57, %v1227_v45  ;;  %v5675_v50 = vld [vmem:[%s6795_s1 + $0xc8] sm:$0xff]  ;;  %v5713_v56 = vld [vmem:[%s6795_s1 + $0x98] sm:$0xff]  ;;  %v5718_v45 = vld [vmem:[%s6795_s1 + $0xa0] sm:$0xff]  ;;  %6948 = vst [vmem:[#allocation22_spill] sm:$0xff] %v5789_v13 }
 0x7d2   :  { %6936 = vst [vmem:[#allocation10_spill] sm:$0xff] %v5675_v50  ;;  %6940 = vst [vmem:[#allocation14_spill] sm:$0xff] %v5713_v56  ;;  %v5725_v57 = vld [vmem:[%s6795_s1 + $0x90] sm:$0xff]  ;;  %v5732_v62 = vld [vmem:[%s6795_s1 + $0x80] sm:$0xff] }
 0x7d3   :  { %v3975_v63 = vmul.f32 -1.442695, %v1376_v47  ;;  %v1383_v25 = vadd.f32 %v1304_v21, %v1133_v3  ;;  %v5694_v3 = vld [vmem:[%s6795_s1 + $0xb0] sm:$0xff]  ;;  %6941 = vst [vmem:[#allocation15_spill] sm:$0xff] %v5725_v57  ;;  %6942 = vst [vmem:[#allocation16_spill] sm:$0xff] %v5732_v62  ;;  %v5737_v47 = vld [vmem:[%s6795_s1 + $0x88] sm:$0xff] }
 0x7d4   :  { %6938 = vst [vmem:[#allocation12_spill] sm:$0xff] %v5694_v3  ;;  %v5751_v21 = vld [vmem:[%s6795_s1 + $0x68] sm:$0xff] }
 0x7d5   :  { %4728 = vpow2.f32 %v3975_v63  ;;  %v3976_v16 = vmul.f32 -1.442695, %v1383_v25  ;;  %v5744_v63 = vld [vmem:[%s6795_s1 + $0x78] sm:$0xff]  ;;  %6944 = vst [vmem:[#allocation18_spill] sm:$0xff] %v5751_v21  ;;  %v5756_v25 = vld [vmem:[%s6795_s1 + $0x70] sm:$0xff] }
 0x7d6   :  { %6943 = vst [vmem:[#allocation17_spill] sm:$0xff] %v5744_v63 }
 0x7d7   :  { %4730 = vpow2.f32 %v3976_v16  ;;  %v5763_v16 = vld [vmem:[%s6795_s1 + $0x60] sm:$0xff] }
 0x7d8   :  { %6945 = vst [vmem:[#allocation19_spill] sm:$0xff] %v5763_v16 }
 0x7e2   :  { %v4729_v1 = vpop.eup %4728 }
 0x7e3   :  { %v1380_v14 = vadd.f32 1.0, %v4729_v1  ;;  %v5770_v1 = vld [vmem:[%s6795_s1 + $0x50] sm:$0xff] }
 0x7e4   :  { %v4731_v12 = vpop.eup %4730  ;;  %6946 = vst [vmem:[#allocation20_spill] sm:$0xff] %v5770_v1 }
 0x7e5   :  { %4732 = vrcp.f32 %v1380_v14  ;;  %v1387_v20 = vadd.f32 1.0, %v4731_v12  ;;  %v5775_v14 = vld [vmem:[%s6795_s1 + $0x58] sm:$0xff]  ;;  %v5782_v12 = vld [vmem:[%s6795_s1 + $0x48] sm:$0xff] }
 0x7e6   :  { %6947 = vst [vmem:[#allocation21_spill] sm:$0xff] %v5782_v12 }
 0x7e7   :  { %4734 = vrcp.f32 %v1387_v20  ;;  %v5794_v20 = vld [vmem:[%s6795_s1 + $0x40] sm:$0xff] }
 0x7f2   :  { %v4733_v31 = vpop.eup %4732 }
 0x7f3   :  { %v1390_v35 = vmul.f32 %v4733_v31, %v1373_v30  ;;  %v5801_v30 = vld [vmem:[%s6795_s1 + $0x30] sm:$0xff] }
 0x7f4   :  { %v4735_v42 = vpop.eup %4734  ;;  %6949 = vst [vmem:[#allocation23_spill] sm:$0xff] %v5801_v30 }
 0x7f5   :  { %v1391_v38 = vadd.f32 %v1390_v35, %v1202_v48  ;;  %v1393_v59 = vsub.f32 1.0, %v4735_v42  ;;  %v1395_v33 = vmul.f32 %v4735_v42, %v5440_v8  ;;  %v5556_v8 = vld [vmem:[%s6795_s1 + $0x178] sm:$0xff]  ;;  %v5661_v48 = vld [vmem:[%s6795_s1 + $0xe8] sm:$0xff] }
 0x7f7   :  { %4736 = vtanh.f32 %v1391_v38 }
 0x804   :  { %v4737_v44 = vpop.eup %4736 }
 0x805   :  { %v1394_v28 = vmul.f32 %v4737_v44, %v1393_v59  ;;  %v5814_v59 = vld [vmem:[%s6795_s1 + $0x20] sm:$0xff]  ;;  %v5820_v44 = vld [vmem:[%s6795_s1 + $0x18] sm:$0xff] }
 0x806   :  { %6950 = vst [vmem:[#allocation24_spill] sm:$0xff] %v5814_v59  ;;  %6951 = vst [vmem:[#allocation25_spill] sm:$0xff] %v5820_v44 }
 0x807   :  { %v5526_v27 = vadd.f32 %v1395_v33, %v1394_v28  ;;  %v5825_v28 = vld [vmem:[%s6795_s1 + $0x28] sm:$0xff] }
 0x808   :  { %v5832_v33 = vld [vmem:[%s6795_s1 + $0x8] sm:$0xff] }
 0x809   :  { %4418 = vmatmul.mubr.msk.f32.vlgmr.msra.gmra.mxu0 %vm32_vm1, %v5526_v27  ;;  %6952 = vst [vmem:[#allocation26_spill] sm:$0xff] %v5832_v33 }
 0x80a   :  { %4452 = vmatprep.mubr.msk.f32.mxu0 %vm4789_vm0, %v6898_v40  ;;  %4421 = vmatpush3.msra.mxu0 %v5556_v8 }
 0x80b   :  { %4422 = vmatprep.subr.mxu0 %v6898_v40 }
 0x80c   :  { %4423 = vmatpush3.msra.mxu0 %v5573_v19 }
 0x80d   :  { %4424 = vmatprep.subr.mxu0 %v6898_v40 }
 0x80e   :  { %4425 = vmatpush3.msra.mxu0 %v5585_v26 }
 0x80f   :  { %4426 = vmatprep.subr.mxu0 %v6898_v40 }
 0x810   :  { %4427 = vmatpush3.msra.mxu0 %v5604_v36 }
 0x811   :  { %4428 = vmatprep.subr.mxu0 %v6898_v40 }
 0x812   :  { %4429 = vmatpush3.msra.mxu0 %v5623_v46 }
 0x813   :  { %4430 = vmatprep.subr.mxu0 %v6898_v40 }
 0x814   :  { %4431 = vmatpush3.msra.mxu0 %v5642_v58 }
 0x815   :  { %4432 = vmatprep.subr.mxu0 %v6898_v40 }
 0x816   :  { %4433 = vmatpush3.msra.mxu0 %v5661_v48 }
 0x817   :  { %4434 = vmatprep.subr.mxu0 %v6898_v40 }
 0x818   :  { %4435 = vmatpush3.msra.mxu0 %v5680_v34 }
 0x819   :  { %4436 = vmatprep.subr.mxu0 %v6898_v40 }
 0x81a   :  { %4437 = vmatpush3.msra.mxu0 %v5699_v53 }
 0x81b   :  { %4438 = vmatprep.subr.mxu0 %v6898_v40 }
 0x81c   :  { %4439 = vmatpush3.msra.mxu0 %v5718_v45 }
 0x81d   :  { %4440 = vmatprep.subr.mxu0 %v6898_v40 }
 0x81e   :  { %4441 = vmatpush3.msra.mxu0 %v5737_v47 }
 0x81f   :  { %4442 = vmatprep.subr.mxu0 %v6898_v40 }
 0x820   :  { %4443 = vmatpush3.msra.mxu0 %v5756_v25 }
 0x821   :  { %4444 = vmatprep.subr.mxu0 %v6898_v40 }
 0x822   :  { %4445 = vmatpush3.msra.mxu0 %v5775_v14 }
 0x823   :  { %4446 = vmatprep.subr.mxu0 %v6898_v40 }
 0x824   :  { %4447 = vmatpush3.msra.mxu0 %v5794_v20 }
 0x825   :  { %4448 = vmatprep.subr.mxu0 %v6898_v40 }
 0x826   :  { %4449 = vmatpush3.msra.mxu0 %v5825_v28 }
 0x827   :  { %4450 = vmatprep.subr.mxu0 %v6898_v40 }
 0x8c9   :  { %v1477_v37 = vpop.f32.mrf.mxu0 }
 0x8ca   :  { %v1478_v22 = vadd.f32 %v5357_v10, %v1477_v37  ;;  %v5546_v10 = vld [vmem:[%s6795_s1 + $0x170] sm:$0xff]  ;;  %v5839_v37 = vld [vmem:[%s6795_s1] sm:$0xff] }
 0x8cb   :  { %v4419_v18 = vpop.f32.mrf.mxu0  ;;  %1552 = vmatprep.subr.mxu1 %v5546_v10  ;;  %6953 = vst [vmem:[#allocation27_spill] sm:$0xff] %v5839_v37 }
 0x8cc   :  { %3979 = vst [vmem:[%s6801_s6 + $0x10] sm:$0xff] %v1478_v22  ;;  %1483 = vmax.xlane.f32.xlu0 %v1478_v22  ;;  %1553 = vmatpush1.msra.mxu1 %v5551_v5  ;;  %v5851_v18 = vld [vmem:[%s6797_s2 + $0x50] sm:$0xff] }
 0x8cd   :  { %1554 = vmatprep.subr.mxu1 %v5563_v15  ;;  %6954 = vst [vmem:[#allocation28_spill] sm:$0xff] %v5851_v18 }
 0x8ce   :  { %1555 = vmatpush1.msra.mxu1 %v5568_v17 }
 0x8cf   :  { %1556 = vmatprep.subr.mxu1 %v5580_v23 }
 0x8d0   :  { %1557 = vmatpush1.msra.mxu1 %v5592_v29 }
 0x8d1   :  { %1558 = vmatprep.subr.mxu1 %v5599_v32 }
 0x8d2   :  { %1559 = vmatpush1.msra.mxu1 %v5611_v39 }
 0x8d3   :  { %1560 = vmatprep.subr.mxu1 %v5618_v43 }
 0x8d4   :  { %1561 = vmatpush1.msra.mxu1 %v5630_v52 }
 0x8d5   :  { %1562 = vmatprep.subr.mxu1 %v5637_v55 }
 0x8d6   :  { %1563 = vmatpush1.msra.mxu1 %v5649_v60 }
 0x8d7   :  { %1564 = vmatprep.subr.mxu1 %v5656_v61 }
 0x8d8   :  { %1565 = vmatpush1.msra.mxu1 %v5668_v49 }
 0x8d9   :  { %1566 = vmatprep.subr.mxu1 %v5675_v50 }
 0x8da   :  { %1567 = vmatpush1.msra.mxu1 %v5687_v51 }
 0x8db   :  { %1568 = vmatprep.subr.mxu1 %v5694_v3 }
 0x8dc   :  { %1569 = vmatpush1.msra.mxu1 %v5706_v54 }
 0x8dd   :  { %1570 = vmatprep.subr.mxu1 %v5713_v56 }
 0x8de   :  { %1571 = vmatpush1.msra.mxu1 %v5725_v57 }
 0x8df   :  { %1572 = vmatprep.subr.mxu1 %v5732_v62 }
 0x8e0   :  { %1573 = vmatpush1.msra.mxu1 %v5744_v63 }
 0x8e1   :  { %1574 = vmatprep.subr.mxu1 %v5751_v21 }
 0x8e2   :  { %1575 = vmatpush1.msra.mxu1 %v5763_v16 }
 0x8e3   :  { %1576 = vmatprep.subr.mxu1 %v5770_v1 }
 0x8e4   :  { %1577 = vmatpush1.msra.mxu1 %v5782_v12 }
 0x8e5   :  { %1578 = vmatprep.subr.mxu1 %v5789_v13 }
 0x8e6   :  { %1579 = vmatpush1.msra.mxu1 %v5801_v30 }
 0x8e7   :  { %1580 = vmatprep.subr.mxu1 %v5814_v59 }
 0x8e8   :  { %1581 = vmatpush1.msra.mxu1 %v5820_v44 }
 0x8e9   :  { %1582 = vmatprep.subr.mxu1 %v5832_v33 }
 0x8ea   :  { %1583 = vmatpush1.msra.mxu1 %v5839_v37 }
 0x8eb   :  { %1746 = vmatprep.subr.mxu1 %v5851_v18 }
 0x955   :  { %v1484_v0 = vpop.xlane.xlu0 %1483 }
 0x956   :  { %vm1485_vm9 = vcmp.ge.f32.partialorder %v1478_v22, %v1484_v0  ;;  %v5844_v22 = vld [vmem:[%s6795_s1 + $0x10] sm:$0xff] }
 0x957   :  { %v5537_v4 = vsel %vm1485_vm9, %v5070_v41, 128  ;;  %4451 = vmatpush3.msra.mxu0 %v5844_v22 }
 0x958   :  { %v1488_v6 = vshra.s32 %v5537_v4, 16  ;;  %v1487_v31 = vand.u32 65535, %v5537_v4  ;;  %4455 = vmatprep.subr.mxu0 %v6898_v40 }
 0x95a   :  { %v5540_v7 = vcvt.s32.f32 %v1488_v6  ;;  %v1489_v38 = vcvt.s32.f32 %v1487_v31 }
 0x95c   :  { %1491 = vmin.xlane.f32.xlu1 %v5540_v7 }
 0x9e5   :  { %v1492_v35 = vpop.xlane.xlu1 %1491 }
 0x9e6   :  { %vm1493_vm10 = vcmp.eq.f32.partialorder %v5540_v7, %v1492_v35  ;;  %v1498_v0 = vcvt.f32.s32 %v1492_v35  ;;  %v5869_v35 = vld [vmem:[%s6797_s2 + $0x38] sm:$0xff] }
 0x9e7   :  { %v1494_v42 = vsel %vm1493_vm10, %v1489_v38, inf  ;;  %v5858_v38 = vld [vmem:[%s6797_s2 + $0x48] sm:$0xff]  ;;  %6956 = vst [vmem:[#allocation32_spill] sm:$0xff] %v5869_v35 }
 0x9e8   :  { %1495 = vmin.xlane.f32.xlu0 %v1494_v42  ;;  %v1499_v6 = vshll.u32 %v1498_v0, 16  ;;  %v5863_v42 = vld [vmem:[%s6797_s2 + $0x58] sm:$0xff]  ;;  %v5876_v0 = vld [vmem:[%s6797_s2 + $0x30] sm:$0xff] }
 0x9e9   :  { %6955 = vst [vmem:[#allocation31_spill] sm:$0xff] %v5863_v42 }
 0xa71   :  { %v1496_v4 = vpop.xlane.xlu0 %1495 }
 0xa72   :  { %v1497_v7 = vcvt.f32.s32 %v1496_v4  ;;  %v5881_v4 = vld [vmem:[%s6797_s2 + $0x40] sm:$0xff] }
 0xa73   :  { %6957 = vst [vmem:[#allocation33_spill] sm:$0xff] %v5881_v4 }
 0xa74   :  { %v1500_v31 = vadd.s32 %v1499_v6, %v1497_v7  ;;  %v5888_v6 = vld [vmem:[%s6797_s2 + $0x20] sm:$0xff]  ;;  %v5895_v7 = vld [vmem:[%s6797_s2 + $0x18] sm:$0xff] }
 0xa76   :  { %vm1501_vm11 = vcmp.eq.s32.totalorder %v5070_v41, %v1500_v31  ;;  %v5900_v31 = vld [vmem:[%s6797_s2 + $0x28] sm:$0xff] }
 0xa77   :  { %3981 = vmatmul.mubr.msk.f32.vlgmr.msra.gmra.mxu1 %vm1501_vm11, %v6902_v24  ;;  %4453 = vmatmul.mubr.msk.f32.vlgmr.msra.gmra.mxu0 %vm1501_vm11, %v6902_v24 }
 0xa78   :  { %1747 = vmatpush1.msra.mxu1 %v5858_v38  ;;  %4456 = vmatpush3.msra.mxu0 %v5863_v42  ;;  %v5914_v42 = vld [vmem:[%s6797_s2] sm:$0xff] }
 0xa79   :  { %1748 = vmatprep.subr.mxu1 %v5869_v35  ;;  %4457 = vmatprep.subr.mxu0 %v6898_v40  ;;  %v5907_v35 = vld [vmem:[%s6797_s2 + $0x8] sm:$0xff] }
 0xa7a   :  { %1749 = vmatpush1.msra.mxu1 %v5876_v0  ;;  %4458 = vmatpush3.msra.mxu0 %v5881_v4  ;;  %v5921_v4 = vld [vmem:[%s6797_s2 + $0x10] sm:$0xff] }
 0xa7b   :  { %1750 = vmatprep.subr.mxu1 %v5888_v6  ;;  %4459 = vmatprep.subr.mxu0 %v6898_v40 }
 0xa7c   :  { %1751 = vmatpush1.msra.mxu1 %v5895_v7  ;;  %4460 = vmatpush3.msra.mxu0 %v5900_v31 }
 0xa7d   :  { %1752 = vmatprep.subr.mxu1 %v5907_v35  ;;  %4461 = vmatprep.subr.mxu0 %v6898_v40 }
 0xa7e   :  { %1753 = vmatpush1.msra.mxu1 %v5914_v42  ;;  %1786 = vmatprep.mubr.f32.mxu1 %v6898_v40 }
 0xa7f   :  { %4462 = vmatpush3.msra.mxu0 %v5921_v4  ;;  %4463 = vmatprep.mubr.msk.f32.mxu0 %vm4789_vm0, %v6898_v40 }
 0xa80   :  { %3983 = vmatmul.mubr.msk.f32.vlgmr.msra.gmra.mxu1 %vm32_vm1, %v5526_v27  ;;  %4464 = vmatmul.mubr.msk.f32.vlgmr.msra.gmra.mxu0 %vm32_vm1, %v5526_v27 }
 0xa81   :  { %4466 = vmatprep.subr.mxu1 %v6898_v40  ;;  %4474 = vmatprep.mubr.msk.f32.mxu1 %vm4789_vm0, %v6898_v40 }
 0xa82   :  { %2039 = vmatprep.subr.mxu0 %v5546_v10  ;;  %2103 = vmatprep.mubr.f32.mxu0 %v6898_v40 }
 0xa83   :  { %2040 = vmatpush1.msra.mxu0 %v5551_v5 }
 0xa84   :  { %2041 = vmatprep.subr.mxu0 %v5563_v15 }
 0xa85   :  { %2042 = vmatpush1.msra.mxu0 %v5568_v17 }
 0xa86   :  { %2043 = vmatprep.subr.mxu0 %v5580_v23 }
 0xa87   :  { %2044 = vmatpush1.msra.mxu0 %v5592_v29 }
 0xa88   :  { %2045 = vmatprep.subr.mxu0 %v5599_v32 }
 0xa89   :  { %2046 = vmatpush1.msra.mxu0 %v5611_v39 }
 0xa8a   :  { %2047 = vmatprep.subr.mxu0 %v5618_v43 }
 0xa8b   :  { %2048 = vmatpush1.msra.mxu0 %v5630_v52 }
 0xa8c   :  { %2049 = vmatprep.subr.mxu0 %v5637_v55 }
 0xa8d   :  { %2050 = vmatpush1.msra.mxu0 %v5649_v60 }
 0xa8e   :  { %2051 = vmatprep.subr.mxu0 %v5656_v61 }
 0xa8f   :  { %2052 = vmatpush1.msra.mxu0 %v5668_v49 }
 0xa90   :  { %2053 = vmatprep.subr.mxu0 %v5675_v50 }
 0xa91   :  { %2054 = vmatpush1.msra.mxu0 %v5687_v51 }
 0xa92   :  { %2055 = vmatprep.subr.mxu0 %v5694_v3 }
 0xa93   :  { %2056 = vmatpush1.msra.mxu0 %v5706_v54 }
 0xa94   :  { %2057 = vmatprep.subr.mxu0 %v5713_v56 }
 0xa95   :  { %2058 = vmatpush1.msra.mxu0 %v5725_v57 }
 0xa96   :  { %2059 = vmatprep.subr.mxu0 %v5732_v62 }
 0xa97   :  { %2060 = vmatpush1.msra.mxu0 %v5744_v63 }
 0xa98   :  { %2061 = vmatprep.subr.mxu0 %v5751_v21 }
 0xa99   :  { %2062 = vmatpush1.msra.mxu0 %v5763_v16 }
 0xa9a   :  { %2063 = vmatprep.subr.mxu0 %v5770_v1  ;;  %v5974_v1 = vld [vmem:[%s6798_s4 + $0x18] sm:$0xff] }
 0xa9b   :  { %2064 = vmatpush1.msra.mxu0 %v5782_v12  ;;  %4467 = vmatpush3.msra.mxu1 %v5974_v1 }
 0xa9c   :  { %2065 = vmatprep.subr.mxu0 %v5789_v13  ;;  %v5979_v13 = vld [vmem:[%s6798_s4 + $0x10] sm:$0xff]  ;;  %4468 = vmatprep.subr.mxu1 %v6898_v40 }
 0xa9d   :  { %2066 = vmatpush1.msra.mxu0 %v5801_v30  ;;  %4469 = vmatpush3.msra.mxu1 %v5979_v13  ;;  %v1705_v30 = vld [vmem:[%s6799_s3] sm:$0x7] }
 0xa9e   :  { %2067 = vmatprep.subr.mxu0 %v5814_v59  ;;  %4470 = vmatprep.subr.mxu1 %v6898_v40  ;;  %v1710_v12 = vrot.slane %v1705_v30, %v6928_v2  ;;  %v1714_v57 = vrot.slane %v1705_v30, %v6929_v11  ;;  %v1718_v2 = vrot.slane %v1705_v30, %v5312_v9 }
 0xa9f   :  { %2068 = vmatpush1.msra.mxu0 %v5820_v44 }
 0xaa0   :  { %2069 = vmatprep.subr.mxu0 %v5832_v33 }
 0xaa1   :  { %2070 = vmatpush1.msra.mxu0 %v5839_v37  ;;  %v5986_v37 = vld [vmem:[%s6798_s4 + $0x8] sm:$0xff] }
 0xaa2   :  { %2233 = vmatprep.subr.mxu0 %v5851_v18  ;;  %v5993_v18 = vld [vmem:[%s6798_s4] sm:$0xff]  ;;  %4471 = vmatpush3.msra.mxu1 %v5986_v37 }
 0xaa3   :  { %4472 = vmatprep.subr.mxu1 %v6898_v40 }
 0xaa4   :  { %4473 = vmatpush3.msra.mxu1 %v5993_v18 }
 0xaa5   :  { %4477 = vmatprep.subr.mxu1 %v6898_v40 }
 0xb37   :  { %v1689_v33 = vpop.f32.mrf.mxu0  ;;  %v1618_v59 = vpop.f32.mrf.mxu1 }
 0xb39   :  { %v4454_v44 = vpop.f32.mrf.mxu0  ;;  %v1620_v16 = vpop.f32.mrf.mxu1 }
 0xb40   :  { %v1788_v21 = vpop.f32.mrf.mxu1  ;;  %v1859_v63 = vpop.f32.mrf.mxu0 }
 0xb41   :  { %v1789_v62 = vadd.f32 %v1788_v21, %v1710_v12  ;;  %v1860_v43 = vadd.f32 %v1859_v63, %v1718_v2  ;;  %v6047_v2 = vld [vmem:[%s6800_s5] ss:$0 sm:$0xff] }
 0xb42   :  { %v1790_v56 = vpop.f32.mrf.mxu1  ;;  %v4465_v54 = vpop.f32.mrf.mxu0 }
 0xb43   :  { %v1863_v3 = vadd.f32 %v1789_v62, %v1618_v59  ;;  %v1791_v50 = vadd.f32 %v1790_v56, %v1714_v57 }
 0xb45   :  { %v3985_v51 = vmul.f32 -1.442695, %v1863_v3  ;;  %v1870_v44 = vadd.f32 %v1791_v50, %v1620_v16 }
 0xb47   :  { %4738 = vpow2.f32 %v3985_v51  ;;  %v3986_v49 = vmul.f32 -1.442695, %v1870_v44 }
 0xb49   :  { %4740 = vpow2.f32 %v3986_v49 }
 0xb54   :  { %v4739_v61 = vpop.eup %4738 }
 0xb55   :  { %v1867_v60 = vadd.f32 1.0, %v4739_v61 }
 0xb56   :  { %v4741_v55 = vpop.eup %4740 }
 0xb57   :  { %4742 = vrcp.f32 %v1867_v60  ;;  %v1874_v52 = vadd.f32 1.0, %v4741_v55 }
 0xb59   :  { %4744 = vrcp.f32 %v1874_v52 }
 0xb64   :  { %v4743_v21 = vpop.eup %4742 }
 0xb65   :  { %v1877_v12 = vmul.f32 %v4743_v21, %v1860_v43 }
 0xb66   :  { %v4745_v54 = vpop.eup %4744 }
 0xb67   :  { %v1878_v11 = vadd.f32 %v1877_v12, %v1689_v33  ;;  %v1880_v3 = vsub.f32 1.0, %v4745_v54  ;;  %v1882_v50 = vmul.f32 %v4745_v54, %v5526_v27  ;;  %v6958_v12 = vld [vmem:[#allocation31_spill] sm:$0xff]  ;;  %v6959_v54 = vld [vmem:[#allocation32_spill] sm:$0xff] }
 0xb69   :  { %4746 = vtanh.f32 %v1878_v11 }
 0xb76   :  { %v4747_v56 = vpop.eup %4746 }
 0xb77   :  { %v1881_v51 = vmul.f32 %v4747_v56, %v1880_v3  ;;  %v6960_v3 = vld [vmem:[#allocation33_spill] sm:$0xff]  ;;  %v6967_v56 = vld [vmem:[#allocation10_spill] sm:$0xff] }
 0xb79   :  { %v6006_v49 = vadd.f32 %v1882_v50, %v1881_v51  ;;  %v6969_v51 = vld [vmem:[#allocation12_spill] sm:$0xff]  ;;  %v6971_v50 = vld [vmem:[#allocation14_spill] sm:$0xff] }
 0xb7b   :  { %4475 = vmatmul.mubr.msk.f32.vlgmr.msra.gmra.mxu1 %vm32_vm1, %v6006_v49 }
 0xb7c   :  { %4478 = vmatpush3.msra.mxu1 %v5556_v8  ;;  %4509 = vmatprep.mubr.msk.f32.mxu1 %vm4789_vm0, %v6898_v40 }
 0xb7d   :  { %4479 = vmatprep.subr.mxu1 %v6898_v40 }
 0xb7e   :  { %4480 = vmatpush3.msra.mxu1 %v5573_v19 }
 0xb7f   :  { %4481 = vmatprep.subr.mxu1 %v6898_v40 }
 0xb80   :  { %4482 = vmatpush3.msra.mxu1 %v5585_v26 }
 0xb81   :  { %4483 = vmatprep.subr.mxu1 %v6898_v40 }
 0xb82   :  { %4484 = vmatpush3.msra.mxu1 %v5604_v36 }
 0xb83   :  { %4485 = vmatprep.subr.mxu1 %v6898_v40 }
 0xb84   :  { %4486 = vmatpush3.msra.mxu1 %v5623_v46 }
 0xb85   :  { %4487 = vmatprep.subr.mxu1 %v6898_v40 }
 0xb86   :  { %4488 = vmatpush3.msra.mxu1 %v5642_v58 }
 0xb87   :  { %4489 = vmatprep.subr.mxu1 %v6898_v40 }
 0xb88   :  { %4490 = vmatpush3.msra.mxu1 %v5661_v48 }
 0xb89   :  { %4491 = vmatprep.subr.mxu1 %v6898_v40 }
 0xb8a   :  { %4492 = vmatpush3.msra.mxu1 %v5680_v34 }
 0xb8b   :  { %4493 = vmatprep.subr.mxu1 %v6898_v40 }
 0xb8c   :  { %4494 = vmatpush3.msra.mxu1 %v5699_v53 }
 0xb8d   :  { %4495 = vmatprep.subr.mxu1 %v6898_v40 }
 0xb8e   :  { %4496 = vmatpush3.msra.mxu1 %v5718_v45 }
 0xb8f   :  { %4497 = vmatprep.subr.mxu1 %v6898_v40 }
 0xb90   :  { %4498 = vmatpush3.msra.mxu1 %v5737_v47 }
 0xb91   :  { %4499 = vmatprep.subr.mxu1 %v6898_v40 }
 0xb92   :  { %4500 = vmatpush3.msra.mxu1 %v5756_v25 }
 0xb93   :  { %4501 = vmatprep.subr.mxu1 %v6898_v40 }
 0xb94   :  { %4502 = vmatpush3.msra.mxu1 %v5775_v14 }
 0xb95   :  { %4503 = vmatprep.subr.mxu1 %v6898_v40 }
 0xb96   :  { %4504 = vmatpush3.msra.mxu1 %v5794_v20 }
 0xb97   :  { %4505 = vmatprep.subr.mxu1 %v6898_v40 }
 0xb98   :  { %4506 = vmatpush3.msra.mxu1 %v5825_v28 }
 0xb99   :  { %4507 = vmatprep.subr.mxu1 %v6898_v40 }
 0xb9a   :  { %4508 = vmatpush3.msra.mxu1 %v5844_v22 }
 0xb9b   :  { %4512 = vmatprep.subr.mxu1 %v6898_v40 }
 0xc3b   :  { %v1964_v11 = vpop.f32.mrf.mxu1 }
 0xc3c   :  { %v1965_v27 = vadd.f32 %v6047_v2, %v1964_v11  ;;  %v6972_v11 = vld [vmem:[#allocation15_spill] sm:$0xff] }
 0xc3d   :  { %v4476_v43 = vpop.f32.mrf.mxu1 }
 0xc3e   :  { %3989 = vst [vmem:[%s6801_s6 + $0x18] sm:$0xff] %v1965_v27  ;;  %1970 = vmax.xlane.f32.xlu1 %v1965_v27  ;;  %v6974_v43 = vld [vmem:[#allocation17_spill] sm:$0xff] }
 0xcc7   :  { %v1971_v52 = vpop.xlane.xlu1 %1970 }
 0xcc8   :  { %vm1972_vm12 = vcmp.ge.f32.partialorder %v1965_v27, %v1971_v52  ;;  %v6973_v27 = vld [vmem:[#allocation16_spill] sm:$0xff]  ;;  %v6975_v52 = vld [vmem:[#allocation18_spill] sm:$0xff] }
 0xcc9   :  { %v1973_v55 = vsel %vm1972_vm12, %v5070_v41, 128 }
 0xcca   :  { %v1975_v60 = vshra.s32 %v1973_v55, 16  ;;  %v1974_v57 = vand.u32 65535, %v1973_v55  ;;  %v6976_v55 = vld [vmem:[#allocation19_spill] sm:$0xff] }
 0xccc   :  { %v1977_v61 = vcvt.s32.f32 %v1975_v60  ;;  %v1976_v63 = vcvt.s32.f32 %v1974_v57  ;;  %v6977_v60 = vld [vmem:[#allocation20_spill] sm:$0xff]  ;;  %v6979_v57 = vld [vmem:[#allocation22_spill] sm:$0xff] }
 0xcce   :  { %1978 = vmin.xlane.f32.xlu0 %v1977_v61 }
 0xd57   :  { %v1979_v62 = vpop.xlane.xlu0 %1978 }
 0xd58   :  { %vm1980_vm13 = vcmp.eq.f32.partialorder %v1977_v61, %v1979_v62  ;;  %v1985_v30 = vcvt.f32.s32 %v1979_v62  ;;  %v6978_v61 = vld [vmem:[#allocation21_spill] sm:$0xff]  ;;  %v6980_v62 = vld [vmem:[#allocation23_spill] sm:$0xff] }
 0xd59   :  { %v1981_v16 = vsel %vm1980_vm13, %v1976_v63, inf  ;;  %v6981_v63 = vld [vmem:[#allocation24_spill] sm:$0xff] }
 0xd5a   :  { %1982 = vmin.xlane.f32.xlu1 %v1981_v16  ;;  %v1986_v33 = vshll.u32 %v1985_v30, 16  ;;  %v6982_v16 = vld [vmem:[#allocation25_spill] sm:$0xff]  ;;  %v6983_v30 = vld [vmem:[#allocation26_spill] sm:$0xff] }
 0xde3   :  { %v1983_v59 = vpop.xlane.xlu1 %1982 }
 0xde4   :  { %v1984_v44 = vcvt.f32.s32 %v1983_v59  ;;  %v6984_v59 = vld [vmem:[#allocation27_spill] sm:$0xff] }
 0xde6   :  { %v1987_v21 = vadd.s32 %v1986_v33, %v1984_v44  ;;  %v6985_v33 = vld [vmem:[#allocation28_spill] sm:$0xff] }
 0xde8   :  { %vm1988_vm14 = vcmp.eq.s32.totalorder %v5070_v41, %v1987_v21 }
 0xde9   :  { %3991 = vmatmul.mubr.msk.f32.vlgmr.msra.gmra.mxu0 %vm1988_vm14, %v6902_v24  ;;  %4510 = vmatmul.mubr.msk.f32.vlgmr.msra.gmra.mxu1 %vm1988_vm14, %v6902_v24 }
 0xdea   :  { %2234 = vmatpush1.msra.mxu0 %v5858_v38  ;;  %4513 = vmatpush3.msra.mxu1 %v6958_v12 }
 0xdeb   :  { %2235 = vmatprep.subr.mxu0 %v6959_v54  ;;  %4514 = vmatprep.subr.mxu1 %v6898_v40 }
 0xdec   :  { %2236 = vmatpush1.msra.mxu0 %v5876_v0  ;;  %4515 = vmatpush3.msra.mxu1 %v6960_v3 }
 0xded   :  { %2237 = vmatprep.subr.mxu0 %v5888_v6  ;;  %4516 = vmatprep.subr.mxu1 %v6898_v40 }
 0xdee   :  { %2238 = vmatpush1.msra.mxu0 %v5895_v7  ;;  %4517 = vmatpush3.msra.mxu1 %v5900_v31 }
 0xdef   :  { %2239 = vmatprep.subr.mxu0 %v5907_v35  ;;  %4518 = vmatprep.subr.mxu1 %v6898_v40 }
 0xdf0   :  { %2240 = vmatpush1.msra.mxu0 %v5914_v42  ;;  %2273 = vmatprep.mubr.f32.mxu0 %v6898_v40 }
 0xdf1   :  { %4519 = vmatpush3.msra.mxu1 %v5921_v4  ;;  %4520 = vmatprep.mubr.msk.f32.mxu1 %vm4789_vm0, %v6898_v40 }
 0xdf2   :  { %3993 = vmatmul.mubr.msk.f32.vlgmr.msra.gmra.mxu0 %vm32_vm1, %v6006_v49  ;;  %4521 = vmatmul.mubr.msk.f32.vlgmr.msra.gmra.mxu1 %vm32_vm1, %v6006_v49 }
 0xdf3   :  { %4523 = vmatprep.subr.mxu0 %v6898_v40  ;;  %4531 = vmatprep.mubr.msk.f32.mxu0 %vm4789_vm0, %v6898_v40 }
 0xdf4   :  { %4524 = vmatpush3.msra.mxu0 %v5974_v1  ;;  %2526 = vmatprep.subr.mxu1 %v5546_v10  ;;  %v6961_v10 = vld [vmem:[#allocation4_spill] sm:$0xff] }
 0xdf5   :  { %4525 = vmatprep.subr.mxu0 %v6898_v40  ;;  %2527 = vmatpush1.msra.mxu1 %v5551_v5  ;;  %v6962_v5 = vld [vmem:[#allocation5_spill] sm:$0xff] }
 0xdf6   :  { %4526 = vmatpush3.msra.mxu0 %v5979_v13  ;;  %2528 = vmatprep.subr.mxu1 %v5563_v15  ;;  %v6963_v15 = vld [vmem:[#allocation6_spill] sm:$0xff] }
 0xdf7   :  { %4527 = vmatprep.subr.mxu0 %v6898_v40  ;;  %2529 = vmatpush1.msra.mxu1 %v5568_v17  ;;  %v6964_v17 = vld [vmem:[#allocation7_spill] sm:$0xff] }
 0xdf8   :  { %4528 = vmatpush3.msra.mxu0 %v5986_v37  ;;  %2530 = vmatprep.subr.mxu1 %v5580_v23  ;;  %v6965_v23 = vld [vmem:[#allocation8_spill] sm:$0xff] }
 0xdf9   :  { %4529 = vmatprep.subr.mxu0 %v6898_v40  ;;  %2531 = vmatpush1.msra.mxu1 %v5592_v29  ;;  %v6966_v29 = vld [vmem:[#allocation9_spill] sm:$0xff] }
 0xdfa   :  { %4530 = vmatpush3.msra.mxu0 %v5993_v18  ;;  %2532 = vmatprep.subr.mxu1 %v5599_v32  ;;  %v6968_v32 = vld [vmem:[#allocation11_spill] sm:$0xff] }
 0xdfb   :  { %4534 = vmatprep.subr.mxu0 %v6898_v40  ;;  %2533 = vmatpush1.msra.mxu1 %v5611_v39  ;;  %v6970_v39 = vld [vmem:[#allocation13_spill] sm:$0xff] }
 0xdfc   :  { %2534 = vmatprep.subr.mxu1 %v6961_v10  ;;  %2590 = vmatprep.mubr.f32.mxu1 %v6898_v40 }
 0xdfd   :  { %2535 = vmatpush1.msra.mxu1 %v6962_v5  ;;  %v2192_v5 = vld [vmem:[%s6799_s3] sm:$0x7] }
 0xdfe   :  { %2536 = vmatprep.subr.mxu1 %v6963_v15  ;;  %v6986_v15 = vld [vmem:[#allocation29_spill] sm:$0xff] }
 0xdff   :  { %2537 = vmatpush1.msra.mxu1 %v6964_v17  ;;  %v2197_v17 = vrot.slane %v2192_v5, %v6986_v15 }
 0xe00   :  { %2538 = vmatprep.subr.mxu1 %v6965_v23 }
 0xe01   :  { %2539 = vmatpush1.msra.mxu1 %v6966_v29 }
 0xe02   :  { %2540 = vmatprep.subr.mxu1 %v6967_v56 }
 0xe03   :  { %2541 = vmatpush1.msra.mxu1 %v6968_v32 }
 0xe04   :  { %2542 = vmatprep.subr.mxu1 %v6969_v51  ;;  %v6987_v51 = vld [vmem:[#allocation30_spill] sm:$0xff] }
 0xe05   :  { %2543 = vmatpush1.msra.mxu1 %v6970_v39  ;;  %v2201_v39 = vrot.slane %v2192_v5, %v6987_v51 }
 0xe06   :  { %2544 = vmatprep.subr.mxu1 %v6971_v50 }
 0xe07   :  { %2545 = vmatpush1.msra.mxu1 %v6972_v11 }
 0xe08   :  { %2546 = vmatprep.subr.mxu1 %v6973_v27 }
 0xe09   :  { %2547 = vmatpush1.msra.mxu1 %v6974_v43 }
 0xe0a   :  { %2548 = vmatprep.subr.mxu1 %v6975_v52 }
 0xe0b   :  { %2549 = vmatpush1.msra.mxu1 %v6976_v55 }
 0xe0c   :  { %2550 = vmatprep.subr.mxu1 %v6977_v60 }
 0xe0d   :  { %2551 = vmatpush1.msra.mxu1 %v6978_v61 }
 0xe0e   :  { %2552 = vmatprep.subr.mxu1 %v6979_v57 }
 0xe0f   :  { %2553 = vmatpush1.msra.mxu1 %v6980_v62 }
 0xe10   :  { %2554 = vmatprep.subr.mxu1 %v6981_v63  ;;  %v2205_v63 = vrot.slane %v2192_v5, %v5312_v9 }
 0xe11   :  { %2555 = vmatpush1.msra.mxu1 %v6982_v16 }
 0xe12   :  { %2556 = vmatprep.subr.mxu1 %v6983_v30 }
 0xe13   :  { %2557 = vmatpush1.msra.mxu1 %v6984_v59 }
 0xe14   :  { %2720 = vmatprep.subr.mxu1 %v6985_v33 }
 0xea9   :  { %v2176_v44 = vpop.f32.mrf.mxu1  ;;  %v2105_v10 = vpop.f32.mrf.mxu0 }
 0xeab   :  { %v4511_v21 = vpop.f32.mrf.mxu1  ;;  %v2107_v23 = vpop.f32.mrf.mxu0 }
 0xeb2   :  { %v2275_v29 = vpop.f32.mrf.mxu0  ;;  %v2346_v56 = vpop.f32.mrf.mxu1 }
 0xeb3   :  { %v2276_v32 = vadd.f32 %v2275_v29, %v2197_v17  ;;  %v2347_v30 = vadd.f32 %v2346_v56, %v2205_v63 }
 0xeb4   :  { %v2277_v50 = vpop.f32.mrf.mxu0  ;;  %v4522_v11 = vpop.f32.mrf.mxu1 }
 0xeb5   :  { %v2350_v27 = vadd.f32 %v2276_v32, %v2105_v10  ;;  %v2278_v52 = vadd.f32 %v2277_v50, %v2201_v39 }
 0xeb7   :  { %v3995_v43 = vmul.f32 -1.442695, %v2350_v27  ;;  %v2357_v55 = vadd.f32 %v2278_v52, %v2107_v23 }
 0xeb9   :  { %4748 = vpow2.f32 %v3995_v43  ;;  %v3996_v60 = vmul.f32 -1.442695, %v2357_v55 }
 0xebb   :  { %4750 = vpow2.f32 %v3996_v60 }
 0xec6   :  { %v4749_v61 = vpop.eup %4748 }
 0xec7   :  { %v2354_v57 = vadd.f32 1.0, %v4749_v61 }
 0xec8   :  { %v4751_v62 = vpop.eup %4750 }
 0xec9   :  { %4752 = vrcp.f32 %v2354_v57  ;;  %v2361_v16 = vadd.f32 1.0, %v4751_v62 }
 0xecb   :  { %4754 = vrcp.f32 %v2361_v16 }
 0xed6   :  { %v4753_v59 = vpop.eup %4752 }
 0xed7   :  { %v2364_v33 = vmul.f32 %v4753_v59, %v2347_v30 }
 0xed8   :  { %v4755_v10 = vpop.eup %4754 }
 0xed9   :  { %v2365_v21 = vadd.f32 %v2364_v33, %v2176_v44  ;;  %v2367_v17 = vsub.f32 1.0, %v4755_v10  ;;  %v2369_v23 = vmul.f32 %v4755_v10, %v6006_v49 }
 0xedb   :  { %4756 = vtanh.f32 %v2365_v21 }
 0xee8   :  { %v4757_v29 = vpop.eup %4756 }
 0xee9   :  { %v2368_v32 = vmul.f32 %v4757_v29, %v2367_v17 }
 0xeeb   :  { %v6130_v39 = vadd.f32 %v2369_v23, %v2368_v32  ;;  %v6241_v23 = vld [vmem:[%s6795_s1 + $0x168] sm:$0xff] }
 0xeed   :  { %4532 = vmatmul.mubr.msk.f32.vlgmr.msra.gmra.mxu0 %vm32_vm1, %v6130_v39 }
 0xeee   :  { %4535 = vmatpush3.msra.mxu0 %v5556_v8  ;;  %4566 = vmatprep.mubr.msk.f32.mxu0 %vm4789_vm0, %v6898_v40 }
 0xeef   :  { %4536 = vmatprep.subr.mxu0 %v6898_v40 }
 0xef0   :  { %4537 = vmatpush3.msra.mxu0 %v5573_v19 }
 0xef1   :  { %4538 = vmatprep.subr.mxu0 %v6898_v40 }
 0xef2   :  { %4539 = vmatpush3.msra.mxu0 %v5585_v26 }
 0xef3   :  { %4540 = vmatprep.subr.mxu0 %v6898_v40 }
 0xef4   :  { %4541 = vmatpush3.msra.mxu0 %v5604_v36 }
 0xef5   :  { %4542 = vmatprep.subr.mxu0 %v6898_v40 }
 0xef6   :  { %4543 = vmatpush3.msra.mxu0 %v5623_v46 }
 0xef7   :  { %4544 = vmatprep.subr.mxu0 %v6898_v40 }
 0xef8   :  { %4545 = vmatpush3.msra.mxu0 %v5642_v58 }
 0xef9   :  { %4546 = vmatprep.subr.mxu0 %v6898_v40 }
 0xefa   :  { %4547 = vmatpush3.msra.mxu0 %v5661_v48 }
 0xefb   :  { %4548 = vmatprep.subr.mxu0 %v6898_v40 }
 0xefc   :  { %4549 = vmatpush3.msra.mxu0 %v5680_v34 }
 0xefd   :  { %4550 = vmatprep.subr.mxu0 %v6898_v40 }
 0xefe   :  { %4551 = vmatpush3.msra.mxu0 %v5699_v53 }
 0xeff   :  { %4552 = vmatprep.subr.mxu0 %v6898_v40 }
 0xf00   :  { %4553 = vmatpush3.msra.mxu0 %v5718_v45 }
 0xf01   :  { %4554 = vmatprep.subr.mxu0 %v6898_v40 }
 0xf02   :  { %4555 = vmatpush3.msra.mxu0 %v5737_v47 }
 0xf03   :  { %4556 = vmatprep.subr.mxu0 %v6898_v40 }
 0xf04   :  { %4557 = vmatpush3.msra.mxu0 %v5756_v25 }
 0xf05   :  { %4558 = vmatprep.subr.mxu0 %v6898_v40 }
 0xf06   :  { %4559 = vmatpush3.msra.mxu0 %v5775_v14 }
 0xf07   :  { %4560 = vmatprep.subr.mxu0 %v6898_v40 }
 0xf08   :  { %4561 = vmatpush3.msra.mxu0 %v5794_v20 }
 0xf09   :  { %4562 = vmatprep.subr.mxu0 %v6898_v40 }
 0xf0a   :  { %4563 = vmatpush3.msra.mxu0 %v5825_v28 }
 0xf0b   :  { %4564 = vmatprep.subr.mxu0 %v6898_v40 }
 0xf0c   :  { %4565 = vmatpush3.msra.mxu0 %v5844_v22 }
 0xf0d   :  { %4569 = vmatprep.subr.mxu0 %v6898_v40 }
 0xfad   :  { %v2451_v8 = vpop.f32.mrf.mxu0 }
 0xfae   :  { %v2452_v19 = vadd.f32 %v6047_v2, %v2451_v8  ;;  %v6253_v8 = vld [vmem:[%s6795_s1 + $0x158] sm:$0xff] }
 0xfaf   :  { %v4533_v26 = vpop.f32.mrf.mxu0 }
 0xfb0   :  { %3999 = vst [vmem:[%s6801_s6 + $0x20] sm:$0xff] %v2452_v19  ;;  %2457 = vmax.xlane.f32.xlu0 %v2452_v19  ;;  %v6263_v26 = vld [vmem:[%s6795_s1 + $0x160] sm:$0xff] }
0x1039   :  { %v2458_v36 = vpop.xlane.xlu0 %2457 }
0x103a   :  { %vm2459_vm15 = vcmp.ge.f32.partialorder %v2452_v19, %v2458_v36  ;;  %v6258_v19 = vld [vmem:[%s6795_s1 + $0x150] sm:$0xff]  ;;  %v6270_v36 = vld [vmem:[%s6795_s1 + $0x140] sm:$0xff] }
0x103b   :  { %v2460_v46 = vsel %vm2459_vm15, %v5070_v41, 128 }
0x103c   :  { %v2462_v58 = vshra.s32 %v2460_v46, 16  ;;  %v2461_v34 = vand.u32 65535, %v2460_v46  ;;  %v6275_v46 = vld [vmem:[%s6795_s1 + $0x148] sm:$0xff] }
0x103e   :  { %v2464_v48 = vcvt.s32.f32 %v2462_v58  ;;  %v2463_v45 = vcvt.s32.f32 %v2461_v34  ;;  %v6282_v58 = vld [vmem:[%s6795_s1 + $0x138] sm:$0xff]  ;;  %v6294_v34 = vld [vmem:[%s6795_s1 + $0x130] sm:$0xff] }
0x1040   :  { %2465 = vmin.xlane.f32.xlu1 %v2464_v48 }
0x10c9   :  { %v2466_v53 = vpop.xlane.xlu1 %2465 }
0x10ca   :  { %vm2467_vm2 = vcmp.eq.f32.partialorder %v2464_v48, %v2466_v53  ;;  %v2472_v25 = vcvt.f32.s32 %v2466_v53  ;;  %v6289_v48 = vld [vmem:[%s6795_s1 + $0x128] sm:$0xff]  ;;  %v6301_v53 = vld [vmem:[%s6795_s1 + $0x120] sm:$0xff] }
0x10cb   :  { %v2468_v47 = vsel %vm2467_vm2, %v2463_v45, inf  ;;  %v6308_v45 = vld [vmem:[%s6795_s1 + $0x110] sm:$0xff] }
0x10cc   :  { %2469 = vmin.xlane.f32.xlu0 %v2468_v47  ;;  %v2473_v20 = vshll.u32 %v2472_v25, 16  ;;  %v6313_v47 = vld [vmem:[%s6795_s1 + $0x118] sm:$0xff]  ;;  %v6320_v25 = vld [vmem:[%s6795_s1 + $0x108] sm:$0xff] }
0x1155   :  { %v2470_v14 = vpop.xlane.xlu0 %2469 }
0x1156   :  { %v2471_v28 = vcvt.f32.s32 %v2470_v14  ;;  %v6327_v14 = vld [vmem:[%s6795_s1 + $0xf8] sm:$0xff] }
0x1158   :  { %v2474_v22 = vadd.s32 %v2473_v20, %v2471_v28  ;;  %v6332_v20 = vld [vmem:[%s6795_s1 + $0x100] sm:$0xff]  ;;  %v6339_v28 = vld [vmem:[%s6795_s1 + $0xf0] sm:$0xff] }
0x115a   :  { %vm2475_vm3 = vcmp.eq.s32.totalorder %v5070_v41, %v2474_v22  ;;  %v6346_v22 = vld [vmem:[%s6795_s1 + $0xe0] sm:$0xff] }
0x115b   :  { %4001 = vmatmul.mubr.msk.f32.vlgmr.msra.gmra.mxu1 %vm2475_vm3, %v6902_v24  ;;  %4567 = vmatmul.mubr.msk.f32.vlgmr.msra.gmra.mxu0 %vm2475_vm3, %v6902_v24 }
0x115c   :  { %2721 = vmatpush1.msra.mxu1 %v5858_v38  ;;  %4570 = vmatpush3.msra.mxu0 %v6958_v12 }
0x115d   :  { %2722 = vmatprep.subr.mxu1 %v6959_v54  ;;  %4571 = vmatprep.subr.mxu0 %v6898_v40 }
0x115e   :  { %2723 = vmatpush1.msra.mxu1 %v5876_v0  ;;  %4572 = vmatpush3.msra.mxu0 %v6960_v3 }
0x115f   :  { %2724 = vmatprep.subr.mxu1 %v5888_v6  ;;  %4573 = vmatprep.subr.mxu0 %v6898_v40 }
0x1160   :  { %2725 = vmatpush1.msra.mxu1 %v5895_v7  ;;  %4574 = vmatpush3.msra.mxu0 %v5900_v31 }
0x1161   :  { %2726 = vmatprep.subr.mxu1 %v5907_v35  ;;  %4575 = vmatprep.subr.mxu0 %v6898_v40 }
0x1162   :  { %2727 = vmatpush1.msra.mxu1 %v5914_v42  ;;  %2760 = vmatprep.mubr.f32.mxu1 %v6898_v40 }
0x1163   :  { %4576 = vmatpush3.msra.mxu0 %v5921_v4  ;;  %4577 = vmatprep.mubr.msk.f32.mxu0 %vm4789_vm0, %v6898_v40 }
0x1164   :  { %4003 = vmatmul.mubr.msk.f32.vlgmr.msra.gmra.mxu1 %vm32_vm1, %v6130_v39  ;;  %4578 = vmatmul.mubr.msk.f32.vlgmr.msra.gmra.mxu0 %vm32_vm1, %v6130_v39 }
0x1165   :  { %4580 = vmatprep.subr.mxu1 %v6898_v40  ;;  %4588 = vmatprep.mubr.msk.f32.mxu1 %vm4789_vm0, %v6898_v40 }
0x1166   :  { %4581 = vmatpush3.msra.mxu1 %v5974_v1  ;;  %3077 = vmatprep.mubr.f32.mxu0 %v6898_v40  ;;  %v2679_v1 = vld [vmem:[%s6799_s3] sm:$0x7] }
0x1167   :  { %4582 = vmatprep.subr.mxu1 %v6898_v40  ;;  %v2684_v0 = vrot.slane %v2679_v1, %v6986_v15  ;;  %v2692_v11 = vrot.slane %v2679_v1, %v5312_v9 }
0x1168   :  { %4583 = vmatpush3.msra.mxu1 %v5979_v13 }
0x1169   :  { %4584 = vmatprep.subr.mxu1 %v6898_v40 }
0x116a   :  { %4585 = vmatpush3.msra.mxu1 %v5986_v37  ;;  %v2688_v37 = vrot.slane %v2679_v1, %v6987_v51  ;;  %v6370_v1 = vld [vmem:[%s6795_s1 + $0xd0] sm:$0xff] }
0x116b   :  { %4586 = vmatprep.subr.mxu1 %v6898_v40 }
0x116c   :  { %4587 = vmatpush3.msra.mxu1 %v5993_v18 }
0x116d   :  { %4591 = vmatprep.subr.mxu1 %v6898_v40 }
0x121b   :  { %v2663_v38 = vpop.f32.mrf.mxu0  ;;  %v2592_v35 = vpop.f32.mrf.mxu1 }
0x121d   :  { %v4568_v42 = vpop.f32.mrf.mxu0  ;;  %v2594_v13 = vpop.f32.mrf.mxu1 }
0x121e   :  { %v6358_v42 = vld [vmem:[%s6795_s1 + $0xd8] sm:$0xff] }
0x1224   :  { %v2762_v4 = vpop.f32.mrf.mxu1  ;;  %v2833_v6 = vpop.f32.mrf.mxu0 }
0x1225   :  { %v2763_v7 = vadd.f32 %v2762_v4, %v2684_v0  ;;  %v2834_v43 = vadd.f32 %v2833_v6, %v2692_v11  ;;  %v6377_v0 = vld [vmem:[%s6795_s1 + $0xc0] sm:$0xff]  ;;  %v6389_v4 = vld [vmem:[%s6795_s1 + $0xb8] sm:$0xff]  ;;  %v6396_v6 = vld [vmem:[%s6795_s1 + $0xa8] sm:$0xff] }
0x1226   :  { %v2764_v31 = vpop.f32.mrf.mxu1  ;;  %v4579_v49 = vpop.f32.mrf.mxu0  ;;  %v6479_v11 = vld [vmem:[%s6795_s1 + $0x38] sm:$0xff] }
0x1227   :  { %v2837_v18 = vadd.f32 %v2763_v7, %v2592_v35  ;;  %v2765_v54 = vadd.f32 %v2764_v31, %v2688_v37  ;;  %v6365_v35 = vld [vmem:[%s6795_s1 + $0xc8] sm:$0xff]  ;;  %v6403_v7 = vld [vmem:[%s6795_s1 + $0x98] sm:$0xff]  ;;  %v6408_v37 = vld [vmem:[%s6795_s1 + $0xa0] sm:$0xff] }
0x1228   :  { %v6415_v31 = vld [vmem:[%s6795_s1 + $0x90] sm:$0xff]  ;;  %v6422_v49 = vld [vmem:[%s6795_s1 + $0x80] sm:$0xff] }
0x1229   :  { %v4005_v12 = vmul.f32 -1.442695, %v2837_v18  ;;  %v2844_v3 = vadd.f32 %v2765_v54, %v2594_v13  ;;  %v6384_v13 = vld [vmem:[%s6795_s1 + $0xb0] sm:$0xff]  ;;  %v6427_v18 = vld [vmem:[%s6795_s1 + $0x88] sm:$0xff] }
0x122a   :  { %v6441_v54 = vld [vmem:[%s6795_s1 + $0x68] sm:$0xff] }
0x122b   :  { %4758 = vpow2.f32 %v4005_v12  ;;  %v4006_v44 = vmul.f32 -1.442695, %v2844_v3  ;;  %v6434_v12 = vld [vmem:[%s6795_s1 + $0x78] sm:$0xff]  ;;  %v6446_v3 = vld [vmem:[%s6795_s1 + $0x70] sm:$0xff] }
0x122d   :  { %4760 = vpow2.f32 %v4006_v44  ;;  %v6453_v44 = vld [vmem:[%s6795_s1 + $0x60] sm:$0xff] }
0x1238   :  { %v4759_v5 = vpop.eup %4758 }
0x1239   :  { %v2841_v56 = vadd.f32 1.0, %v4759_v5  ;;  %v6460_v5 = vld [vmem:[%s6795_s1 + $0x50] sm:$0xff] }
0x123a   :  { %v4761_v50 = vpop.eup %4760 }
0x123b   :  { %4762 = vrcp.f32 %v2841_v56  ;;  %v2848_v27 = vadd.f32 1.0, %v4761_v50  ;;  %v6465_v56 = vld [vmem:[%s6795_s1 + $0x58] sm:$0xff]  ;;  %v6472_v50 = vld [vmem:[%s6795_s1 + $0x48] sm:$0xff] }
0x123d   :  { %4764 = vrcp.f32 %v2848_v27  ;;  %v6484_v27 = vld [vmem:[%s6795_s1 + $0x40] sm:$0xff] }
0x1248   :  { %v4763_v52 = vpop.eup %4762 }
0x1249   :  { %v2851_v55 = vmul.f32 %v4763_v52, %v2834_v43  ;;  %v6491_v43 = vld [vmem:[%s6795_s1 + $0x30] sm:$0xff] }
0x124a   :  { %v4765_v61 = vpop.eup %4764 }
0x124b   :  { %v2852_v60 = vadd.f32 %v2851_v55, %v2663_v38  ;;  %v2854_v57 = vsub.f32 1.0, %v4765_v61  ;;  %v2856_v16 = vmul.f32 %v4765_v61, %v6130_v39  ;;  %v6246_v39 = vld [vmem:[%s6795_s1 + $0x178] sm:$0xff]  ;;  %v6351_v38 = vld [vmem:[%s6795_s1 + $0xe8] sm:$0xff] }
0x124d   :  { %4766 = vtanh.f32 %v2852_v60 }
0x125a   :  { %v4767_v62 = vpop.eup %4766 }
0x125b   :  { %v2855_v63 = vmul.f32 %v4767_v62, %v2854_v57  ;;  %v6504_v57 = vld [vmem:[%s6795_s1 + $0x20] sm:$0xff]  ;;  %v6510_v62 = vld [vmem:[%s6795_s1 + $0x18] sm:$0xff] }
0x125d   :  { %v6216_v30 = vadd.f32 %v2856_v16, %v2855_v63  ;;  %v6515_v63 = vld [vmem:[%s6795_s1 + $0x28] sm:$0xff] }
0x125e   :  { %v6522_v16 = vld [vmem:[%s6795_s1 + $0x8] sm:$0xff] }
0x125f   :  { %4589 = vmatmul.mubr.msk.f32.vlgmr.msra.gmra.mxu1 %vm32_vm1, %v6216_v30 }
0x1260   :  { %4623 = vmatprep.mubr.msk.f32.mxu1 %vm4789_vm0, %v6898_v40  ;;  %4592 = vmatpush3.msra.mxu1 %v6246_v39 }
0x1261   :  { %4593 = vmatprep.subr.mxu1 %v6898_v40 }
0x1262   :  { %4594 = vmatpush3.msra.mxu1 %v6263_v26 }
0x1263   :  { %4595 = vmatprep.subr.mxu1 %v6898_v40 }
0x1264   :  { %4596 = vmatpush3.msra.mxu1 %v6275_v46 }
0x1265   :  { %4597 = vmatprep.subr.mxu1 %v6898_v40 }
0x1266   :  { %4598 = vmatpush3.msra.mxu1 %v6294_v34 }
0x1267   :  { %4599 = vmatprep.subr.mxu1 %v6898_v40 }
0x1268   :  { %4600 = vmatpush3.msra.mxu1 %v6313_v47 }
0x1269   :  { %4601 = vmatprep.subr.mxu1 %v6898_v40 }
0x126a   :  { %4602 = vmatpush3.msra.mxu1 %v6332_v20 }
0x126b   :  { %4603 = vmatprep.subr.mxu1 %v6898_v40 }
0x126c   :  { %4604 = vmatpush3.msra.mxu1 %v6351_v38 }
0x126d   :  { %4605 = vmatprep.subr.mxu1 %v6898_v40 }
0x126e   :  { %4606 = vmatpush3.msra.mxu1 %v6370_v1 }
0x126f   :  { %4607 = vmatprep.subr.mxu1 %v6898_v40 }
0x1270   :  { %4608 = vmatpush3.msra.mxu1 %v6389_v4 }
0x1271   :  { %4609 = vmatprep.subr.mxu1 %v6898_v40 }
0x1272   :  { %4610 = vmatpush3.msra.mxu1 %v6408_v37 }
0x1273   :  { %4611 = vmatprep.subr.mxu1 %v6898_v40 }
0x1274   :  { %4612 = vmatpush3.msra.mxu1 %v6427_v18 }
0x1275   :  { %4613 = vmatprep.subr.mxu1 %v6898_v40 }
0x1276   :  { %4614 = vmatpush3.msra.mxu1 %v6446_v3 }
0x1277   :  { %4615 = vmatprep.subr.mxu1 %v6898_v40 }
0x1278   :  { %4616 = vmatpush3.msra.mxu1 %v6465_v56 }
0x1279   :  { %4617 = vmatprep.subr.mxu1 %v6898_v40 }
0x127a   :  { %4618 = vmatpush3.msra.mxu1 %v6484_v27 }
0x127b   :  { %4619 = vmatprep.subr.mxu1 %v6898_v40 }
0x127c   :  { %4620 = vmatpush3.msra.mxu1 %v6515_v63 }
0x127d   :  { %4621 = vmatprep.subr.mxu1 %v6898_v40 }
0x131f   :  { %v2938_v59 = vpop.f32.mrf.mxu1 }
0x1320   :  { %v2939_v33 = vadd.f32 %v6047_v2, %v2938_v59  ;;  %v6236_v2 = vld [vmem:[%s6795_s1 + $0x170] sm:$0xff]  ;;  %v6529_v59 = vld [vmem:[%s6795_s1] sm:$0xff] }
0x1321   :  { %v4590_v21 = vpop.f32.mrf.mxu1  ;;  %3013 = vmatprep.subr.mxu0 %v6236_v2 }
0x1322   :  { %4009 = vst [vmem:[%s6801_s6 + $0x28] sm:$0xff] %v2939_v33  ;;  %2944 = vmax.xlane.f32.xlu1 %v2939_v33  ;;  %3014 = vmatpush1.msra.mxu0 %v6241_v23  ;;  %v6541_v21 = vld [vmem:[%s6797_s2 + $0x50] sm:$0xff] }
0x1323   :  { %3015 = vmatprep.subr.mxu0 %v6253_v8 }
0x1324   :  { %3016 = vmatpush1.msra.mxu0 %v6258_v19 }
0x1325   :  { %3017 = vmatprep.subr.mxu0 %v6270_v36 }
0x1326   :  { %3018 = vmatpush1.msra.mxu0 %v6282_v58 }
0x1327   :  { %3019 = vmatprep.subr.mxu0 %v6289_v48 }
0x1328   :  { %3020 = vmatpush1.msra.mxu0 %v6301_v53 }
0x1329   :  { %3021 = vmatprep.subr.mxu0 %v6308_v45 }
0x132a   :  { %3022 = vmatpush1.msra.mxu0 %v6320_v25 }
0x132b   :  { %3023 = vmatprep.subr.mxu0 %v6327_v14 }
0x132c   :  { %3024 = vmatpush1.msra.mxu0 %v6339_v28 }
0x132d   :  { %3025 = vmatprep.subr.mxu0 %v6346_v22 }
0x132e   :  { %3026 = vmatpush1.msra.mxu0 %v6358_v42 }
0x132f   :  { %3027 = vmatprep.subr.mxu0 %v6365_v35 }
0x1330   :  { %3028 = vmatpush1.msra.mxu0 %v6377_v0 }
0x1331   :  { %3029 = vmatprep.subr.mxu0 %v6384_v13 }
0x1332   :  { %3030 = vmatpush1.msra.mxu0 %v6396_v6 }
0x1333   :  { %3031 = vmatprep.subr.mxu0 %v6403_v7 }
0x1334   :  { %3032 = vmatpush1.msra.mxu0 %v6415_v31 }
0x1335   :  { %3033 = vmatprep.subr.mxu0 %v6422_v49 }
0x1336   :  { %3034 = vmatpush1.msra.mxu0 %v6434_v12 }
0x1337   :  { %3035 = vmatprep.subr.mxu0 %v6441_v54 }
0x1338   :  { %3036 = vmatpush1.msra.mxu0 %v6453_v44 }
0x1339   :  { %3037 = vmatprep.subr.mxu0 %v6460_v5 }
0x133a   :  { %3038 = vmatpush1.msra.mxu0 %v6472_v50 }
0x133b   :  { %3039 = vmatprep.subr.mxu0 %v6479_v11 }
0x133c   :  { %3040 = vmatpush1.msra.mxu0 %v6491_v43 }
0x133d   :  { %3041 = vmatprep.subr.mxu0 %v6504_v57 }
0x133e   :  { %3042 = vmatpush1.msra.mxu0 %v6510_v62 }
0x133f   :  { %3043 = vmatprep.subr.mxu0 %v6522_v16 }
0x1340   :  { %3044 = vmatpush1.msra.mxu0 %v6529_v59 }
0x1341   :  { %3207 = vmatprep.subr.mxu0 %v6541_v21 }
0x13ab   :  { %v2945_v10 = vpop.xlane.xlu1 %2944 }
0x13ac   :  { %vm2946_vm4 = vcmp.ge.f32.partialorder %v2939_v33, %v2945_v10  ;;  %v6534_v33 = vld [vmem:[%s6795_s1 + $0x10] sm:$0xff] }
0x13ad   :  { %v6227_v17 = vsel %vm2946_vm4, %v5070_v41, 128  ;;  %4622 = vmatpush3.msra.mxu1 %v6534_v33 }
0x13ae   :  { %v2949_v29 = vshra.s32 %v6227_v17, 16  ;;  %v2948_v52 = vand.u32 65535, %v6227_v17  ;;  %4626 = vmatprep.subr.mxu1 %v6898_v40 }
0x13b0   :  { %v6230_v32 = vcvt.s32.f32 %v2949_v29  ;;  %v2950_v60 = vcvt.s32.f32 %v2948_v52 }
0x13b2   :  { %2952 = vmin.xlane.f32.xlu0 %v6230_v32 }
0x143b   :  { %v2953_v55 = vpop.xlane.xlu0 %2952 }
0x143c   :  { %vm2954_vm5 = vcmp.eq.f32.partialorder %v6230_v32, %v2953_v55  ;;  %v2959_v10 = vcvt.f32.s32 %v2953_v55  ;;  %v6559_v55 = vld [vmem:[%s6797_s2 + $0x38] sm:$0xff] }
0x143d   :  { %v2955_v61 = vsel %vm2954_vm5, %v2950_v60, inf  ;;  %v6548_v60 = vld [vmem:[%s6797_s2 + $0x48] sm:$0xff]  ;;  %6989 = vst [vmem:[#allocation32_spill] sm:$0xff] %v6559_v55 }
0x143e   :  { %2956 = vmin.xlane.f32.xlu1 %v2955_v61  ;;  %v2960_v29 = vshll.u32 %v2959_v10, 16  ;;  %v6553_v61 = vld [vmem:[%s6797_s2 + $0x58] sm:$0xff]  ;;  %v6566_v10 = vld [vmem:[%s6797_s2 + $0x30] sm:$0xff] }
0x143f   :  { %6988 = vst [vmem:[#allocation31_spill] sm:$0xff] %v6553_v61 }
0x14c7   :  { %v2957_v17 = vpop.xlane.xlu1 %2956 }
0x14c8   :  { %v2958_v32 = vcvt.f32.s32 %v2957_v17  ;;  %v6571_v17 = vld [vmem:[%s6797_s2 + $0x40] sm:$0xff] }
0x14c9   :  { %6990 = vst [vmem:[#allocation33_spill] sm:$0xff] %v6571_v17 }
0x14ca   :  { %v2961_v52 = vadd.s32 %v2960_v29, %v2958_v32  ;;  %v6578_v29 = vld [vmem:[%s6797_s2 + $0x20] sm:$0xff]  ;;  %v6585_v32 = vld [vmem:[%s6797_s2 + $0x18] sm:$0xff] }
0x14cc   :  { %vm2962_vm6 = vcmp.eq.s32.totalorder %v5070_v41, %v2961_v52  ;;  %v6590_v52 = vld [vmem:[%s6797_s2 + $0x28] sm:$0xff] }
0x14cd   :  { %4011 = vmatmul.mubr.msk.f32.vlgmr.msra.gmra.mxu0 %vm2962_vm6, %v6902_v24  ;;  %4624 = vmatmul.mubr.msk.f32.vlgmr.msra.gmra.mxu1 %vm2962_vm6, %v6902_v24 }
0x14ce   :  { %3208 = vmatpush1.msra.mxu0 %v6548_v60  ;;  %4627 = vmatpush3.msra.mxu1 %v6553_v61  ;;  %v6604_v61 = vld [vmem:[%s6797_s2] sm:$0xff] }
0x14cf   :  { %3209 = vmatprep.subr.mxu0 %v6559_v55  ;;  %4628 = vmatprep.subr.mxu1 %v6898_v40  ;;  %v6597_v55 = vld [vmem:[%s6797_s2 + $0x8] sm:$0xff] }
0x14d0   :  { %3210 = vmatpush1.msra.mxu0 %v6566_v10  ;;  %4629 = vmatpush3.msra.mxu1 %v6571_v17  ;;  %v6611_v17 = vld [vmem:[%s6797_s2 + $0x10] sm:$0xff] }
0x14d1   :  { %3211 = vmatprep.subr.mxu0 %v6578_v29  ;;  %4630 = vmatprep.subr.mxu1 %v6898_v40 }
0x14d2   :  { %3212 = vmatpush1.msra.mxu0 %v6585_v32  ;;  %4631 = vmatpush3.msra.mxu1 %v6590_v52 }
0x14d3   :  { %3213 = vmatprep.subr.mxu0 %v6597_v55  ;;  %4632 = vmatprep.subr.mxu1 %v6898_v40 }
0x14d4   :  { %3214 = vmatpush1.msra.mxu0 %v6604_v61  ;;  %3247 = vmatprep.mubr.f32.mxu0 %v6898_v40 }
0x14d5   :  { %4633 = vmatpush3.msra.mxu1 %v6611_v17  ;;  %4634 = vmatprep.mubr.msk.f32.mxu1 %vm4789_vm0, %v6898_v40 }
0x14d6   :  { %4013 = vmatmul.mubr.msk.f32.vlgmr.msra.gmra.mxu0 %vm32_vm1, %v6216_v30  ;;  %4635 = vmatmul.mubr.msk.f32.vlgmr.msra.gmra.mxu1 %vm32_vm1, %v6216_v30 }
0x14d7   :  { %4637 = vmatprep.subr.mxu0 %v6898_v40  ;;  %4645 = vmatprep.mubr.msk.f32.mxu0 %vm4789_vm0, %v6898_v40 }
0x14d8   :  { %3500 = vmatprep.subr.mxu1 %v6236_v2  ;;  %3564 = vmatprep.mubr.f32.mxu1 %v6898_v40  ;;  %v6664_v2 = vld [vmem:[%s6798_s4 + $0x18] sm:$0xff] }
0x14d9   :  { %3501 = vmatpush1.msra.mxu1 %v6241_v23  ;;  %v6669_v23 = vld [vmem:[%s6798_s4 + $0x10] sm:$0xff]  ;;  %4638 = vmatpush3.msra.mxu0 %v6664_v2 }
0x14da   :  { %3502 = vmatprep.subr.mxu1 %v6253_v8  ;;  %4639 = vmatprep.subr.mxu0 %v6898_v40  ;;  %v6676_v8 = vld [vmem:[%s6798_s4 + $0x8] sm:$0xff] }
0x14db   :  { %3503 = vmatpush1.msra.mxu1 %v6258_v19  ;;  %4640 = vmatpush3.msra.mxu0 %v6669_v23  ;;  %v6683_v19 = vld [vmem:[%s6798_s4] sm:$0xff] }
0x14dc   :  { %3504 = vmatprep.subr.mxu1 %v6270_v36  ;;  %4641 = vmatprep.subr.mxu0 %v6898_v40 }
0x14dd   :  { %3505 = vmatpush1.msra.mxu1 %v6282_v58  ;;  %4642 = vmatpush3.msra.mxu0 %v6676_v8 }
0x14de   :  { %3506 = vmatprep.subr.mxu1 %v6289_v48  ;;  %4643 = vmatprep.subr.mxu0 %v6898_v40 }
0x14df   :  { %3507 = vmatpush1.msra.mxu1 %v6301_v53  ;;  %4644 = vmatpush3.msra.mxu0 %v6683_v19  ;;  %v3166_v53 = vld [vmem:[%s6799_s3] sm:$0x7] }
0x14e0   :  { %3508 = vmatprep.subr.mxu1 %v6308_v45  ;;  %4648 = vmatprep.subr.mxu0 %v6898_v40  ;;  %v3171_v45 = vrot.slane %v3166_v53, %v6986_v15 }
0x14e1   :  { %3509 = vmatpush1.msra.mxu1 %v6320_v25 }
0x14e2   :  { %3510 = vmatprep.subr.mxu1 %v6327_v14 }
0x14e3   :  { %3511 = vmatpush1.msra.mxu1 %v6339_v28 }
0x14e4   :  { %3512 = vmatprep.subr.mxu1 %v6346_v22 }
0x14e5   :  { %3513 = vmatpush1.msra.mxu1 %v6358_v42  ;;  %v3175_v42 = vrot.slane %v3166_v53, %v6987_v51 }
0x14e6   :  { %3514 = vmatprep.subr.mxu1 %v6365_v35 }
0x14e7   :  { %3515 = vmatpush1.msra.mxu1 %v6377_v0 }
0x14e8   :  { %3516 = vmatprep.subr.mxu1 %v6384_v13 }
0x14e9   :  { %3517 = vmatpush1.msra.mxu1 %v6396_v6 }
0x14ea   :  { %3518 = vmatprep.subr.mxu1 %v6403_v7 }
0x14eb   :  { %3519 = vmatpush1.msra.mxu1 %v6415_v31 }
0x14ec   :  { %3520 = vmatprep.subr.mxu1 %v6422_v49 }
0x14ed   :  { %3521 = vmatpush1.msra.mxu1 %v6434_v12 }
0x14ee   :  { %3522 = vmatprep.subr.mxu1 %v6441_v54 }
0x14ef   :  { %3523 = vmatpush1.msra.mxu1 %v6453_v44 }
0x14f0   :  { %3524 = vmatprep.subr.mxu1 %v6460_v5  ;;  %v3179_v5 = vrot.slane %v3166_v53, %v5312_v9  ;;  %v6992_v53 = vld [vmem:[#allocation32_spill] sm:$0xff] }
0x14f1   :  { %3525 = vmatpush1.msra.mxu1 %v6472_v50 }
0x14f2   :  { %3526 = vmatprep.subr.mxu1 %v6479_v11 }
0x14f3   :  { %3527 = vmatpush1.msra.mxu1 %v6491_v43 }
0x14f4   :  { %3528 = vmatprep.subr.mxu1 %v6504_v57 }
0x14f5   :  { %3529 = vmatpush1.msra.mxu1 %v6510_v62 }
0x14f6   :  { %3530 = vmatprep.subr.mxu1 %v6522_v16 }
0x14f7   :  { %3531 = vmatpush1.msra.mxu1 %v6529_v59 }
0x14f8   :  { %3694 = vmatprep.subr.mxu1 %v6541_v21 }
0x158d   :  { %v3150_v36 = vpop.f32.mrf.mxu1  ;;  %v3079_v48 = vpop.f32.mrf.mxu0 }
0x158f   :  { %v4625_v58 = vpop.f32.mrf.mxu1  ;;  %v3081_v25 = vpop.f32.mrf.mxu0 }
0x1596   :  { %v3249_v14 = vpop.f32.mrf.mxu0  ;;  %v3320_v28 = vpop.f32.mrf.mxu1 }
0x1597   :  { %v3250_v22 = vadd.f32 %v3249_v14, %v3171_v45  ;;  %v3321_v11 = vadd.f32 %v3320_v28, %v3179_v5 }
0x1598   :  { %v3251_v35 = vpop.f32.mrf.mxu0  ;;  %v4636_v0 = vpop.f32.mrf.mxu1 }
0x1599   :  { %v3324_v13 = vadd.f32 %v3250_v22, %v3079_v48  ;;  %v3252_v7 = vadd.f32 %v3251_v35, %v3175_v42 }
0x159b   :  { %v4015_v6 = vmul.f32 -1.442695, %v3324_v13  ;;  %v3331_v31 = vadd.f32 %v3252_v7, %v3081_v25  ;;  %v6993_v25 = vld [vmem:[#allocation33_spill] sm:$0xff] }
0x159d   :  { %4768 = vpow2.f32 %v4015_v6  ;;  %v4016_v49 = vmul.f32 -1.442695, %v3331_v31 }
0x159f   :  { %4770 = vpow2.f32 %v4016_v49 }
0x15aa   :  { %v4769_v12 = vpop.eup %4768 }
0x15ab   :  { %v3328_v54 = vadd.f32 1.0, %v4769_v12 }
0x15ac   :  { %v4771_v44 = vpop.eup %4770 }
0x15ad   :  { %4772 = vrcp.f32 %v3328_v54  ;;  %v3335_v50 = vadd.f32 1.0, %v4771_v44 }
0x15af   :  { %4774 = vrcp.f32 %v3335_v50 }
0x15ba   :  { %v4773_v43 = vpop.eup %4772 }
0x15bb   :  { %v3338_v57 = vmul.f32 %v4773_v43, %v3321_v11 }
0x15bc   :  { %v4775_v16 = vpop.eup %4774 }
0x15bd   :  { %v3339_v62 = vadd.f32 %v3338_v57, %v3150_v36  ;;  %v3341_v59 = vsub.f32 1.0, %v4775_v16  ;;  %v3343_v48 = vmul.f32 %v4775_v16, %v6216_v30  ;;  %v6737_v30 = vld [vmem:[%s6800_s5] ss:$0 sm:$0xff] }
0x15be   :  { %v6991_v36 = vld [vmem:[#allocation31_spill] sm:$0xff] }
0x15bf   :  { %4776 = vtanh.f32 %v3339_v62 }
0x15cc   :  { %v4777_v21 = vpop.eup %4776 }
0x15cd   :  { %v3342_v58 = vmul.f32 %v4777_v21, %v3341_v59 }
0x15cf   :  { %v6696_v45 = vadd.f32 %v3343_v48, %v3342_v58 }
0x15d1   :  { %4646 = vmatmul.mubr.msk.f32.vlgmr.msra.gmra.mxu0 %vm32_vm1, %v6696_v45 }
0x15d2   :  { %4649 = vmatpush3.msra.mxu0 %v6246_v39  ;;  %4680 = vmatprep.mubr.msk.f32.mxu0 %vm4789_vm0, %v6898_v40 }
0x15d3   :  { %4650 = vmatprep.subr.mxu0 %v6898_v40 }
0x15d4   :  { %4651 = vmatpush3.msra.mxu0 %v6263_v26 }
0x15d5   :  { %4652 = vmatprep.subr.mxu0 %v6898_v40 }
0x15d6   :  { %4653 = vmatpush3.msra.mxu0 %v6275_v46 }
0x15d7   :  { %4654 = vmatprep.subr.mxu0 %v6898_v40 }
0x15d8   :  { %4655 = vmatpush3.msra.mxu0 %v6294_v34 }
0x15d9   :  { %4656 = vmatprep.subr.mxu0 %v6898_v40 }
0x15da   :  { %4657 = vmatpush3.msra.mxu0 %v6313_v47 }
0x15db   :  { %4658 = vmatprep.subr.mxu0 %v6898_v40 }
0x15dc   :  { %4659 = vmatpush3.msra.mxu0 %v6332_v20 }
0x15dd   :  { %4660 = vmatprep.subr.mxu0 %v6898_v40 }
0x15de   :  { %4661 = vmatpush3.msra.mxu0 %v6351_v38 }
0x15df   :  { %4662 = vmatprep.subr.mxu0 %v6898_v40 }
0x15e0   :  { %4663 = vmatpush3.msra.mxu0 %v6370_v1 }
0x15e1   :  { %4664 = vmatprep.subr.mxu0 %v6898_v40 }
0x15e2   :  { %4665 = vmatpush3.msra.mxu0 %v6389_v4 }
0x15e3   :  { %4666 = vmatprep.subr.mxu0 %v6898_v40 }
0x15e4   :  { %4667 = vmatpush3.msra.mxu0 %v6408_v37 }
0x15e5   :  { %4668 = vmatprep.subr.mxu0 %v6898_v40 }
0x15e6   :  { %4669 = vmatpush3.msra.mxu0 %v6427_v18 }
0x15e7   :  { %4670 = vmatprep.subr.mxu0 %v6898_v40 }
0x15e8   :  { %4671 = vmatpush3.msra.mxu0 %v6446_v3 }
0x15e9   :  { %4672 = vmatprep.subr.mxu0 %v6898_v40 }
0x15ea   :  { %4673 = vmatpush3.msra.mxu0 %v6465_v56 }
0x15eb   :  { %4674 = vmatprep.subr.mxu0 %v6898_v40 }
0x15ec   :  { %4675 = vmatpush3.msra.mxu0 %v6484_v27 }
0x15ed   :  { %4676 = vmatprep.subr.mxu0 %v6898_v40 }
0x15ee   :  { %4677 = vmatpush3.msra.mxu0 %v6515_v63 }
0x15ef   :  { %4678 = vmatprep.subr.mxu0 %v6898_v40 }
0x15f0   :  { %4679 = vmatpush3.msra.mxu0 %v6534_v33 }
0x15f1   :  { %4683 = vmatprep.subr.mxu0 %v6898_v40 }
0x1691   :  { %v3425_v39 = vpop.f32.mrf.mxu0 }
0x1692   :  { %v3426_v26 = vadd.f32 %v6737_v30, %v3425_v39 }
0x1693   :  { %v4647_v46 = vpop.f32.mrf.mxu0 }
0x1694   :  { %4019 = vst [vmem:[%s6801_s6 + $0x30] sm:$0xff] %v3426_v26  ;;  %3431 = vmax.xlane.f32.xlu0 %v3426_v26 }
0x171d   :  { %v3432_v34 = vpop.xlane.xlu0 %3431 }
0x171e   :  { %vm3433_vm7 = vcmp.ge.f32.partialorder %v3426_v26, %v3432_v34 }
0x171f   :  { %v3434_v47 = vsel %vm3433_vm7, %v5070_v41, 128 }
0x1720   :  { %v3436_v20 = vshra.s32 %v3434_v47, 16  ;;  %v3435_v1 = vand.u32 65535, %v3434_v47 }
0x1722   :  { %v3438_v38 = vcvt.s32.f32 %v3436_v20  ;;  %v3437_v37 = vcvt.s32.f32 %v3435_v1 }
0x1724   :  { %3439 = vmin.xlane.f32.xlu1 %v3438_v38 }
0x17ad   :  { %v3440_v4 = vpop.xlane.xlu1 %3439 }
0x17ae   :  { %vm3441_vm8 = vcmp.eq.f32.partialorder %v3438_v38, %v3440_v4  ;;  %v3446_v3 = vcvt.f32.s32 %v3440_v4 }
0x17af   :  { %v3442_v18 = vsel %vm3441_vm8, %v3437_v37, inf }
0x17b0   :  { %3443 = vmin.xlane.f32.xlu0 %v3442_v18  ;;  %v3447_v27 = vshll.u32 %v3446_v3, 16 }
0x1839   :  { %v3444_v56 = vpop.xlane.xlu0 %3443 }
0x183a   :  { %v3445_v63 = vcvt.f32.s32 %v3444_v56 }
0x183c   :  { %v3448_v33 = vadd.s32 %v3447_v27, %v3445_v63 }
0x183e   :  { %vm3449_vm9 = vcmp.eq.s32.totalorder %v5070_v41, %v3448_v33 }
0x183f   :  { %4021 = vmatmul.mubr.msk.f32.vlgmr.msra.gmra.mxu1 %vm3449_vm9, %v6902_v24  ;;  %4681 = vmatmul.mubr.msk.f32.vlgmr.msra.gmra.mxu0 %vm3449_vm9, %v6902_v24 }
0x1840   :  { %3695 = vmatpush1.msra.mxu1 %v6548_v60  ;;  %4684 = vmatpush3.msra.mxu0 %v6991_v36 }
0x1841   :  { %3696 = vmatprep.subr.mxu1 %v6992_v53  ;;  %4685 = vmatprep.subr.mxu0 %v6898_v40 }
0x1842   :  { %3697 = vmatpush1.msra.mxu1 %v6566_v10  ;;  %4686 = vmatpush3.msra.mxu0 %v6993_v25 }
0x1843   :  { %3698 = vmatprep.subr.mxu1 %v6578_v29  ;;  %4687 = vmatprep.subr.mxu0 %v6898_v40 }
0x1844   :  { %3699 = vmatpush1.msra.mxu1 %v6585_v32  ;;  %4688 = vmatpush3.msra.mxu0 %v6590_v52 }
0x1845   :  { %3700 = vmatprep.subr.mxu1 %v6597_v55  ;;  %4689 = vmatprep.subr.mxu0 %v6898_v40 }
0x1846   :  { %3701 = vmatpush1.msra.mxu1 %v6604_v61  ;;  %3734 = vmatprep.mubr.f32.mxu1 %v6898_v40  ;;  %v3653_v61 = vld [vmem:[%s6799_s3] sm:$0x7] }
0x1847   :  { %4690 = vmatpush3.msra.mxu0 %v6611_v17  ;;  %4691 = vmatprep.mubr.msk.f32.mxu0 %vm4789_vm0, %v6898_v40  ;;  %v3658_v55 = vrot.slane %v3653_v61, %v6986_v15  ;;  %v3662_v52 = vrot.slane %v3653_v61, %v6987_v51  ;;  %v3666_v15 = vrot.slane %v3653_v61, %v5312_v9 }
0x1848   :  { %4023 = vmatmul.mubr.msk.f32.vlgmr.msra.gmra.mxu1 %vm32_vm1, %v6696_v45  ;;  %4692 = vmatmul.mubr.msk.f32.vlgmr.msra.gmra.mxu0 %vm32_vm1, %v6696_v45 }
0x1849   :  { %4694 = vmatprep.subr.mxu1 %v6898_v40  ;;  %4702 = vmatprep.mubr.msk.f32.mxu1 %vm4789_vm0, %v6898_v40 }
0x184a   :  { %4695 = vmatpush3.msra.mxu1 %v6664_v2 }
0x184b   :  { %4696 = vmatprep.subr.mxu1 %v6898_v40 }
0x184c   :  { %4697 = vmatpush3.msra.mxu1 %v6669_v23 }
0x184d   :  { %4698 = vmatprep.subr.mxu1 %v6898_v40 }
0x184e   :  { %4699 = vmatpush3.msra.mxu1 %v6676_v8 }
0x184f   :  { %4700 = vmatprep.subr.mxu1 %v6898_v40 }
0x1850   :  { %4701 = vmatpush3.msra.mxu1 %v6683_v19 }
0x18ff   :  { %v3637_v41 = vpop.f32.mrf.mxu0  ;;  %v3566_v60 = vpop.f32.mrf.mxu1 }
0x1901   :  { %v4682_v24 = vpop.f32.mrf.mxu0  ;;  %v3568_v10 = vpop.f32.mrf.mxu1 }
0x1908   :  { %v3736_v17 = vpop.f32.mrf.mxu1  ;;  %v3807_v29 = vpop.f32.mrf.mxu0 }
0x1909   :  { %v3737_v32 = vadd.f32 %v3736_v17, %v3658_v55  ;;  %v3808_v13 = vadd.f32 %v3807_v29, %v3666_v15 }
0x190a   :  { %v3738_v2 = vpop.f32.mrf.mxu1  ;;  %v4693_v23 = vpop.f32.mrf.mxu0 }
0x190b   :  { %v3811_v40 = vadd.f32 %v3737_v32, %v3566_v60  ;;  %v3739_v19 = vadd.f32 %v3738_v2, %v3662_v52 }
0x190d   :  { %v4025_v8 = vmul.f32 -1.442695, %v3811_v40  ;;  %v3818_v14 = vadd.f32 %v3739_v19, %v3568_v10 }
0x190f   :  { %4778 = vpow2.f32 %v4025_v8  ;;  %v4026_v28 = vmul.f32 -1.442695, %v3818_v14 }
0x1911   :  { %4780 = vpow2.f32 %v4026_v28 }
0x191c   :  { %v4779_v22 = vpop.eup %4778 }
0x191d   :  { %v3815_v42 = vadd.f32 1.0, %v4779_v22 }
0x191e   :  { %v4781_v35 = vpop.eup %4780 }
0x191f   :  { %4782 = vrcp.f32 %v3815_v42  ;;  %v3822_v0 = vadd.f32 1.0, %v4781_v35 }
0x1921   :  { %4784 = vrcp.f32 %v3822_v0 }
0x192c   :  { %v4783_v6 = vpop.eup %4782 }
0x192d   :  { %v3825_v7 = vmul.f32 %v4783_v6, %v3808_v13 }
0x192e   :  { %v4785_v31 = vpop.eup %4784 }
0x192f   :  { %v3826_v51 = vadd.f32 %v3825_v7, %v3637_v41  ;;  %v3828_v49 = vsub.f32 1.0, %v4785_v31  ;;  %v3830_v44 = vmul.f32 %v4785_v31, %v6696_v45 }
0x1931   :  { %4786 = vtanh.f32 %v3826_v51 }
0x193e   :  { %v4787_v12 = vpop.eup %4786 }
0x193f   :  { %v3829_v54 = vmul.f32 %v4787_v12, %v3828_v49 }
0x1941   :  { %v3831_v5 = vadd.f32 %v3830_v44, %v3829_v54 }
0x1943   :  { %4703 = vmatmul.mubr.msk.f32.vlgmr.msra.gmra.mxu1 %vm32_vm1, %v3831_v5  ;;  %3939 = vst.msk [vmem:[#allocation2] sm:$0xff] %vm32_vm1, %v3831_v5  ;;  %3944 = vst.msk [vmem:[%s6802_s7] sm:$0xff] %vm32_vm1, %v3831_v5 }
0x1a03   :  { %v3912_v9 = vpop.f32.mrf.mxu1 }
0x1a04   :  { %v3913_v50 = vadd.f32 %v6737_v30, %v3912_v9 }
0x1a05   :  { %v4704_v11 = vpop.f32.mrf.mxu1 }
0x1a06   :  { %4029 = vst [vmem:[%s6801_s6 + $0x38] sm:$0xff] %v3913_v50 }

</bundles_post_ra>
